<compile_context>
chip_gen: v6e
topology: v6e:2x2x1
jax: 0.10.0
libtpu: 0.0.40
codegen_flags: <defaults>
</compile_context>

<pallas_src>
import jax
import jax.numpy as jnp
from jax.experimental import pallas as pl
from jax.experimental.pallas import tpu as pltpu


def _box_avg_kernel(v_ref, byz_ref, bx_ref, o_ref):
    bb, x, yz = v_ref.shape

    # ---- Y & Z box-sums: one MXU matmul against the Kronecker band matrix ----
    v = v_ref[...].reshape(bb * x, yz)          # merge major dims: layout-free
    t = jnp.dot(
        v, byz_ref[...],
        preferred_element_type=jnp.float32,
        precision=jax.lax.Precision.HIGHEST,
    ).reshape(bb, x, yz)

    # ---- X box-sum: small left band matmul per volume (1/win^3 pre-folded) ----
    bx = bx_ref[...]
    for bi in range(bb):                         # static unroll over volumes
        o_ref[bi] = jnp.dot(
            bx, t[bi],
            preferred_element_type=jnp.float32,
            precision=jax.lax.Precision.HIGHEST,
        ).astype(o_ref.dtype)


def _band(n, win):
    """band[i, j] = 1 if input index i lies in the box window of output j."""
    half = win // 2
    idx = jnp.arange(n)
    d = idx[:, None] - idx[None, :]              # d = i - j
    return ((d >= -half) & (d <= win - half - 1)).astype(jnp.float32)


def _pick_batch_block(b, per_vol_bytes, max_block_bytes=2 * 1024 * 1024):
    """Largest divisor of b whose block fits the cap, keeping >= 2 grid steps
    (when b allows) so both v7x TensorCores get work."""
    bb = max(1, min(b, max_block_bytes // max(per_vol_bytes, 1)))
    while bb > 1 and (b % bb != 0 or (b // bb) < 2):
        bb -= 1
    return bb


def averaging_kernel(v, win=11):
    n, c, x, y, z = v.shape
    b, yz = n * c, y * z
    v2 = v.astype(jnp.float32).reshape(b, x, yz)          # lane-dense last axis

    # Constant band matrices (computed once in the wrapper, DMA'd once per core).
    byz = jnp.einsum("ab,cd->acbd", _band(y, win), _band(z, win)).reshape(yz, yz)
    bx = _band(x, win).T * (1.0 / float(win ** 3))        # scale folded in

    bb = _pick_batch_block(b, x * yz * 4)
    grid = (b // bb,)

    out = pl.pallas_call(
        _box_avg_kernel,
        out_shape=jax.ShapeDtypeStruct((b, x, yz), jnp.float32),
        grid_spec=pltpu.PrefetchScalarGridSpec(
            num_scalar_prefetch=0,
            grid=grid,
            in_specs=[
                pl.BlockSpec((bb, x, yz), lambda i: (i, 0, 0)),
                pl.BlockSpec((yz, yz), lambda i: (0, 0)),
                pl.BlockSpec((x, x), lambda i: (0, 0)),
            ],
            out_specs=pl.BlockSpec((bb, x, yz), lambda i: (i, 0, 0)),
        ),
        compiler_params=pltpu.CompilerParams(
            dimension_semantics=("parallel",),
            vmem_limit_bytes=64 * 1024 * 1024,
        ),
    )(v2, byz, bx)
    return out.reshape(n, c, x, y, z)


def _reference(v, win=11):
    """Pure-JAX mirror of the PyTorch cumsum formulation (float32)."""
    half = win // 2
    pad = [(0, 0), (0, 0), (half + 1, half), (half + 1, half), (half + 1, half)]
    vp = jnp.pad(v.astype(jnp.float32), pad)
    cs = jnp.cumsum(jnp.cumsum(jnp.cumsum(vp, axis=2), axis=3), axis=4)
    x, y, z = v.shape[2:]
    w = win
    out = (cs[:, :, w:, w:, w:] - cs[:, :, w:, w:, :z] - cs[:, :, w:, :y, w:]
           - cs[:, :, :x, w:, w:] + cs[:, :, w:, :y, :z] + cs[:, :, :x, w:, :z]
           + cs[:, :, :x, :y, w:] - cs[:, :, :x, :y, :z])
    return out / float(win ** 3)


if __name__ == "__main__":
    key = jax.random.PRNGKey(0)
    v = jax.random.normal(key, (2, 4, 16, 16, 16), dtype=jnp.float32)

    out = averaging_kernel(v, win=11)
    out = jax.block_until_ready(out)

    assert out.shape == (2, 4, 16, 16, 16)
    assert out.dtype == jnp.float32

    ref = _reference(v, win=11)
    max_err = float(jnp.max(jnp.abs(out - ref)))
    assert max_err < 1e-3, f"max abs err {max_err}"

    print("KERNEL_OK")
</pallas_src>

<mosaic_0001>
module attributes {stable_mosaic.version = 11 : i64} {
  func.func @_box_avg_kernel(%arg0: i32, %arg1: memref<4x16x256xf32, #tpu.memory_space<vmem>>, %arg2: memref<256x256xf32, #tpu.memory_space<vmem>>, %arg3: memref<16x16xf32, #tpu.memory_space<vmem>>, %arg4: memref<4x16x256xf32, #tpu.memory_space<vmem>>) attributes {dimension_semantics = [#tpu.dimension_semantics<parallel>], iteration_bounds = array<i64: 2>, scalar_prefetch = 0 : i64, scratch_operands = 0 : i64, tpu.core_type = #tpu.core_type<tc>, window_params = [{transform_indices = @transform_0, window_bounds = array<i64: 4, 16, 256>}, {pipeline_mode = #tpu.pipeline_mode<synchronous>, transform_indices = @transform_1, window_bounds = array<i64: 256, 256>}, {pipeline_mode = #tpu.pipeline_mode<synchronous>, transform_indices = @transform_2, window_bounds = array<i64: 16, 16>}, {transform_indices = @transform_3, window_bounds = array<i64: 4, 16, 256>}]} {
    %c0 = arith.constant 0 : index
    %c0_0 = arith.constant 0 : index
    %c0_1 = arith.constant 0 : index
    %0 = vector.load %arg1[%c0, %c0_0, %c0_1] : memref<4x16x256xf32, #tpu.memory_space<vmem>>, vector<4x16x256xf32>
    %1 = vector.shape_cast %0 : vector<4x16x256xf32> to vector<64x256xf32>
    %c0_2 = arith.constant 0 : index
    %c0_3 = arith.constant 0 : index
    %2 = vector.load %arg2[%c0_2, %c0_3] : memref<256x256xf32, #tpu.memory_space<vmem>>, vector<256x256xf32>
    %cst = arith.constant dense<0.000000e+00> : vector<64x256xf32>
    %3 = tpu.matmul %1, %2, %cst {dimension_numbers = #tpu.dot_dimension_numbers<[1], [0], [0], [1], [0, 0, 1, 1], [], []>, precision = #tpu.contract_precision<fp32>} : vector<64x256xf32>, vector<256x256xf32>, vector<64x256xf32> -> vector<64x256xf32>
    %4 = vector.shape_cast %3 : vector<64x256xf32> to vector<4x16x256xf32>
    %c0_4 = arith.constant 0 : index
    %c0_5 = arith.constant 0 : index
    %5 = vector.load %arg3[%c0_4, %c0_5] : memref<16x16xf32, #tpu.memory_space<vmem>>, vector<16x16xf32>
    %6 = vector.extract_strided_slice %4 {offsets = [0, 0, 0], sizes = [1, 16, 256], strides = [1, 1, 1]} : vector<4x16x256xf32> to vector<1x16x256xf32>
    %7 = vector.shape_cast %6 : vector<1x16x256xf32> to vector<16x256xf32>
    %cst_6 = arith.constant dense<0.000000e+00> : vector<16x256xf32>
    %8 = tpu.matmul %5, %7, %cst_6 {dimension_numbers = #tpu.dot_dimension_numbers<[1], [0], [0], [1], [0, 0, 1, 1], [], []>, precision = #tpu.contract_precision<fp32>} : vector<16x16xf32>, vector<16x256xf32>, vector<16x256xf32> -> vector<16x256xf32>
    %c0_7 = arith.constant 0 : index
    %c0_8 = arith.constant 0 : index
    %c0_9 = arith.constant 0 : index
    %9 = vector.load %arg4[%c0_7, %c0_8, %c0_9] : memref<4x16x256xf32, #tpu.memory_space<vmem>>, vector<1x16x256xf32>
    %10 = vector.shape_cast %9 : vector<1x16x256xf32> to vector<16x256xf32>
    %11 = vector.shape_cast %8 : vector<16x256xf32> to vector<1x16x256xf32>
    tpu.vector_store %arg4[%c0_7, %c0_8, %c0_9], %11 {strides = array<i32>} : memref<4x16x256xf32, #tpu.memory_space<vmem>>, vector<1x16x256xf32>,
    %12 = vector.extract_strided_slice %4 {offsets = [1, 0, 0], sizes = [1, 16, 256], strides = [1, 1, 1]} : vector<4x16x256xf32> to vector<1x16x256xf32>
    %13 = vector.shape_cast %12 : vector<1x16x256xf32> to vector<16x256xf32>
    %cst_10 = arith.constant dense<0.000000e+00> : vector<16x256xf32>
    %14 = tpu.matmul %5, %13, %cst_10 {dimension_numbers = #tpu.dot_dimension_numbers<[1], [0], [0], [1], [0, 0, 1, 1], [], []>, precision = #tpu.contract_precision<fp32>} : vector<16x16xf32>, vector<16x256xf32>, vector<16x256xf32> -> vector<16x256xf32>
    %c1 = arith.constant 1 : index
    %c0_11 = arith.constant 0 : index
    %c0_12 = arith.constant 0 : index
    %15 = vector.load %arg4[%c1, %c0_11, %c0_12] : memref<4x16x256xf32, #tpu.memory_space<vmem>>, vector<1x16x256xf32>
    %16 = vector.shape_cast %15 : vector<1x16x256xf32> to vector<16x256xf32>
    %17 = vector.shape_cast %14 : vector<16x256xf32> to vector<1x16x256xf32>
    tpu.vector_store %arg4[%c1, %c0_11, %c0_12], %17 {strides = array<i32>} : memref<4x16x256xf32, #tpu.memory_space<vmem>>, vector<1x16x256xf32>,
    %18 = vector.extract_strided_slice %4 {offsets = [2, 0, 0], sizes = [1, 16, 256], strides = [1, 1, 1]} : vector<4x16x256xf32> to vector<1x16x256xf32>
    %19 = vector.shape_cast %18 : vector<1x16x256xf32> to vector<16x256xf32>
    %cst_13 = arith.constant dense<0.000000e+00> : vector<16x256xf32>
    %20 = tpu.matmul %5, %19, %cst_13 {dimension_numbers = #tpu.dot_dimension_numbers<[1], [0], [0], [1], [0, 0, 1, 1], [], []>, precision = #tpu.contract_precision<fp32>} : vector<16x16xf32>, vector<16x256xf32>, vector<16x256xf32> -> vector<16x256xf32>
    %c2 = arith.constant 2 : index
    %c0_14 = arith.constant 0 : index
    %c0_15 = arith.constant 0 : index
    %21 = vector.load %arg4[%c2, %c0_14, %c0_15] : memref<4x16x256xf32, #tpu.memory_space<vmem>>, vector<1x16x256xf32>
    %22 = vector.shape_cast %21 : vector<1x16x256xf32> to vector<16x256xf32>
    %23 = vector.shape_cast %20 : vector<16x256xf32> to vector<1x16x256xf32>
    tpu.vector_store %arg4[%c2, %c0_14, %c0_15], %23 {strides = array<i32>} : memref<4x16x256xf32, #tpu.memory_space<vmem>>, vector<1x16x256xf32>,
    %24 = vector.extract_strided_slice %4 {offsets = [3, 0, 0], sizes = [1, 16, 256], strides = [1, 1, 1]} : vector<4x16x256xf32> to vector<1x16x256xf32>
    %25 = vector.shape_cast %24 : vector<1x16x256xf32> to vector<16x256xf32>
    %cst_16 = arith.constant dense<0.000000e+00> : vector<16x256xf32>
    %26 = tpu.matmul %5, %25, %cst_16 {dimension_numbers = #tpu.dot_dimension_numbers<[1], [0], [0], [1], [0, 0, 1, 1], [], []>, precision = #tpu.contract_precision<fp32>} : vector<16x16xf32>, vector<16x256xf32>, vector<16x256xf32> -> vector<16x256xf32>
    %c3 = arith.constant 3 : index
    %c0_17 = arith.constant 0 : index
    %c0_18 = arith.constant 0 : index
    %27 = vector.load %arg4[%c3, %c0_17, %c0_18] : memref<4x16x256xf32, #tpu.memory_space<vmem>>, vector<1x16x256xf32>
    %28 = vector.shape_cast %27 : vector<1x16x256xf32> to vector<16x256xf32>
    %29 = vector.shape_cast %26 : vector<16x256xf32> to vector<1x16x256xf32>
    tpu.vector_store %arg4[%c3, %c0_17, %c0_18], %29 {strides = array<i32>} : memref<4x16x256xf32, #tpu.memory_space<vmem>>, vector<1x16x256xf32>,
    return
  }
  func.func @transform_0(%arg0: i32) -> (i32, i32, i32) {
    %c0_i32 = arith.constant 0 : i32
    %c0_i32_0 = arith.constant 0 : i32
    %c0_i32_1 = arith.constant 0 : i32
    return %arg0, %c0_i32, %c0_i32_0 : i32, i32, i32
  }
  func.func @transform_1(%arg0: i32) -> (i32, i32) {
    %c0_i32 = arith.constant 0 : i32
    %c0_i32_0 = arith.constant 0 : i32
    %c0_i32_1 = arith.constant 0 : i32
    return %c0_i32, %c0_i32_0 : i32, i32
  }
  func.func @transform_2(%arg0: i32) -> (i32, i32) {
    %c0_i32 = arith.constant 0 : i32
    %c0_i32_0 = arith.constant 0 : i32
    %c0_i32_1 = arith.constant 0 : i32
    return %c0_i32, %c0_i32_0 : i32, i32
  }
  func.func @transform_3(%arg0: i32) -> (i32, i32, i32) {
    %c0_i32 = arith.constant 0 : i32
    %c0_i32_0 = arith.constant 0 : i32
    %c0_i32_1 = arith.constant 0 : i32
    return %arg0, %c0_i32, %c0_i32_0 : i32, i32, i32
  }
}

</mosaic_0001>

<bundles_post_ra>
// kernel: tpu_custom_call.1
= control target key start
LH: loop header
LB: loop body
LE: loop exit
PB: predicated region body
PF: predicated region fallthrough
CT: control target
= control target key end

     0   :  { %8 = vsyncpa [#allocation3], 0  ;;  %s6634_s0 = inlined_call_operand.hbm [shape: f32[8,16,256], index: 0, kind: input, shape index: {}]   ;;  %s6635_s1 = inlined_call_operand.hbm [shape: f32[256,256], index: 1, kind: input, shape index: {}]   ;;  %s6636_s2 = inlined_call_operand.hbm [shape: f32[16,16], index: 2, kind: input, shape index: {}]   ;;  %s6637_s3 = inlined_call_operand.hbm [shape: f32[8,16,256], index: 3, kind: output, shape index: {}]  }
   0x1   :  { %10 = vsyncpa [#allocation3 + $0x1], 0 }
   0x2   :  { %11 = vsyncpa [#allocation6], 0 }
   0x3   :  { %12 = vsyncpa [#allocation4], 0 }
   0x4   :  { %14 = vsyncpa [#allocation4 + $0x1], 0  ;;  %s4605_s12 = smov 0   ;;  %s4607_s13 = smov 0  }
   0x5   :  { %s4609_s14 = smov 0   ;;  %s4611_s15 = smov 0  }
   0x6 LB: > { %s4626_s16 = sadd.s32 4294967295, %s4572_s15   ;;  %s4314_s17 = sadd.s32 4294967294, %s4572_s15   ;;  %s4572_s15 = sphi %s4611_s15, %s7334_s15   ;;  %s4568_s14 = sphi %s4609_s14, %s7333_s14   ;;  %s4564_s13 = sphi %s4607_s13, %s7332_s13   ;;  %s4560_s12 = sphi %s4605_s12, %s7331_s12  }
   0x7   : > { %p40_p0 = scmp.ne.s32.totalorder %s4564_s13, %s4560_s12  ;;  %p6638_p1 = scmp.eq.s32.totalorder %s4626_s16, 0 }
   0x8   : > { %p106_p2 = scmp.eq.s32.totalorder %s4626_s16, 1  ;;  %p112_p3 = scmp.eq.s32.totalorder %s4314_s17, 1 }
   0x9   : > { %p4635_p4 = por %p6638_p1, %p40_p0  ;;  %p4315_p5 = scmp.ge.s32.totalorder %s4572_s15, 1 }
   0xa   : > { %p4640_p6 = por %p112_p3, %p40_p0  ;;  %p119_p7 = scmp.lt.s32.totalorder %s4572_s15, 3 }
   0xb   : > { %s6896_s18 = scalar_select %p4635_p4, 1, 0 }
   0xc   : > { %s6897_s19 = scalar_select %p4640_p6, 1, 0 }
   0xd   : > { %p4645_p8 = pnand %p4315_p5, %p119_p7  ;;  %s4574_s21 = smov [#allocation5]  }
   0xe   : > { %s131_s22 = sshll.u32 %s4574_s21, 4  ;;  %s4575_s24 = smov [#allocation7]   ;;  %s132_s22 = int_to_ptr.vmem [resolvable:$true] %s131_s22 }
   0xf   : > { %s6898_s20 = scalar_select %p4645_p8, 1, 0 }
  0x10   : > { %p4362_p9 = pneg %p4645_p8  ;;  %s144_s25 = sshll.u32 %s4575_s24, 4  ;;  %s145_s25 = int_to_ptr.vmem [resolvable:$true] %s144_s25 }
  0x11   : > { %s4435_s26 = scalar_lea.vmem %s132_s22, 8192  ;;  %p4443_p5 = scmp.lt.s32.totalorder %s132_s22, %s132_s22 }
  0x12   : > { %p4654_p11 = pnand %p4362_p9, %p6638_p1  ;;  %p4436_p13 = scmp.ne.s32.totalorder %s132_s22, %s4435_s26 }
  0x13   : > { %p4444_p7 = scmp.lt.s32.totalorder %s4435_s26, %s4435_s26 }
  0x14   : > { %p4426_p12 = pneg %p4654_p11 }
  0x15   : > { %p4445_p10 = por %p4444_p7, %p4443_p5 }
  0x16   : > { %p4438_p0 = pnand %p4436_p13, %p4426_p12 }
  0x18   : > { %p4439_p3 = pneg %p4438_p0 }
  0x1a   : > { %p4446_p9 = pnand %p4445_p10, %p4439_p3 }
  0x1c   : > { %4449 = shalt.err (!%p4446_p9)
}
  0x1d   : > { %s4576_s27 = smov 256   ;;  %s4577_s28 = smov 16  }
  0x1e   : > { %4365 = dma.hbm_to_vmem [thread:$0]  (!%p4654_p11), %s6635_s1, 8192, %s132_s22, [#allocation6], %s4576_s27, %s4576_s27, %s4577_s28  }
  0x1f   : > { %s4461_s4 = scalar_lea.vmem %s145_s25, 256  ;;  %p4469_p10 = scmp.lt.s32.totalorder %s145_s25, %s145_s25 }
  0x20   : > { %p4462_p13 = scmp.ne.s32.totalorder %s145_s25, %s4461_s4  ;;  %p4470_p3 = scmp.lt.s32.totalorder %s4461_s4, %s4461_s4 }
  0x22   : > { %p4464_p0 = pnand %p4462_p13, %p4426_p12  ;;  %p4471_p7 = por %p4470_p3, %p4469_p10 }
  0x24   : > { %p4465_p5 = pneg %p4464_p0 }
  0x26   : > { %p4472_p9 = pnand %p4471_p7, %p4465_p5 }
  0x28   : > { %4475 = shalt.err (!%p4472_p9)
}
  0x29   : > { %s4578_s5 = smov 128   ;;  %s4579_s6 = smov 8  }
  0x2a   : > { %4368 = dma.hbm_to_vmem [thread:$0]  (!%p4654_p11), %s6636_s2, 256, %s145_s25, [#allocation6], %s4578_s5, %s4578_s5, %s4579_s6  }
  0x2b   : > { %s4680_s9 = sadd.s32 1, %s4572_s15   ;;  %s27_s11 = sadd.s32 1, %s4568_s14 }
  0x2c   : > { %s24_s10 = ssub.s32 %s4572_s15, %s4680_s9  ;;  %p34_p13 = scmp.ne.s32.totalorder %s4568_s14, %s4564_s13 }
  0x2d   : > { %p25_p12 = scmp.eq.s32.totalorder %s24_s10, 0  ;;  %p35_p0 = scmp.eq.s32.totalorder %s4572_s15, 0 }
  0x2e   : > { %p4693_p10 = por %p106_p2, %p34_p13  ;;  %p4379_p3 = scmp.lt.s32.totalorder %s4572_s15, 2 }
  0x2f   : > { %s4689_s17 = scalar_select %p25_p12, %s4568_s14, %s27_s11  }
  0x30   : > { %p36_p5 = por %p35_p0, %p34_p13  ;;  %s158_s22 = sand.u32 1, %s4568_s14  }
  0x31   : > { %s6900_s21 = scalar_select %p4693_p10, 1, 0 }
  0x32   : > { %s4319_s23 = sshll.u32 %s158_s22, 7  ;;  %s4347_s24 = sshll.u32 %s4572_s15, 11 }
  0x33   : > { %s4703_s29 = scalar_lea.hbm %s6634_s0, %s4347_s24  ;;  %s162_s30 = scalar_lea.vmem [#allocation2], %s4319_s23 }
  0x34   : > { %s170_s4 = sshll.u32 %s162_s30, 4  ;;  %p4707_p2 = pnand %p4379_p3, %p36_p5  ;;  %s4705_s4 = int_to_ptr.vmem [resolvable:$true] %s170_s4 }
  0x35   : > { %s4711_s6 = scalar_lea.sflag [#allocation3], %s158_s22  ;;  %s4476_s7 = scalar_lea.hbm %s4703_s29, 2048 }
  0x36   : > { %p4477_p11 = scmp.ne.s32.totalorder %s4703_s29, %s4476_s7  ;;  %p4478_p7 = pneg %p4707_p2 }
  0x37   : > { %s4481_s11 = scalar_lea.hbm %s6634_s0, 4096  ;;  %p4482_p13 = scmp.lt.s32.totalorder %s4703_s29, %s6634_s0 }
  0x38   : > { %p4479_p9 = pnand %p4478_p7, %p4477_p11  ;;  %p4483_p0 = scmp.lt.s32.totalorder %s4481_s11, %s4476_s7 }
  0x3a   : > { %p4480_p12 = pneg %p4479_p9  ;;  %p4484_p5 = por %p4483_p0, %p4482_p13 }
  0x3c   : > { %p4485_p3 = pnand %p4484_p5, %p4480_p12 }
  0x3e   : > { %4488 = shalt.err (!%p4485_p3)
}
  0x3f   : > { %s4489_s22 = scalar_lea.vmem %s4705_s4, 2048  ;;  %s4580_s25 = smov [#allocation2]  }
  0x40   : > { %p4490_p1 = scmp.ne.s32.totalorder %s4705_s4, %s4489_s22  ;;  %s4494_s26 = sshll.u32 %s4580_s25, 4  ;;  %s4495_s26 = int_to_ptr.vmem [resolvable:$false] %s4494_s26 }
  0x41   : > { %s4496_s30 = scalar_lea.vmem %s4495_s26, 4096  ;;  %p4497_p9 = scmp.lt.s32.totalorder %s4705_s4, %s4495_s26 }
  0x42   : > { %p4492_p6 = pnand %p4490_p1, %p4478_p7  ;;  %p4498_p10 = scmp.lt.s32.totalorder %s4496_s30, %s4489_s22 }
  0x44   : > { %p4493_p11 = pneg %p4492_p6  ;;  %p4499_p4 = por %p4498_p10, %p4497_p9 }
  0x46   : > { %p4500_p8 = pnand %p4499_p4, %p4493_p11 }
  0x48   : > { %4503 = shalt.err (!%p4500_p8)
}
  0x49   : > { %4372 = dma.hbm_to_vmem [thread:$0]  (!%p4707_p2), %s4703_s29, 2048, %s4705_s4, %s4711_s6, %s4576_s27, %s4576_s27, %s4577_s28  }
  0x4a   : > { %p6902_p1 = scmp.ne.s32.totalorder %s6898_s20, 0 }
  0x4c   : > { %182 = sbr.rel (%p6902_p1) target bundleno = 879 (0x36f), region = 32 }
  0x51   : > { %s4738_s7 = sand.u32 1, %s4564_s13   ;;  %p6903_p4 = scmp.ne.s32.totalorder %s6896_s18, 0 }
  0x52   : > { %s4324_s8 = sshll.u32 %s4738_s7, 7  ;;  %s185_s10 = scalar_lea.sflag [#allocation3], %s4738_s7 }
  0x53   : > { %s4744_s5 = scalar_lea.vmem [#allocation2], %s4324_s8 }
  0x54   : > { %4547 = dma.done.wait (%p6903_p4), %s185_s10, 2048  }
  0x55   : > { %4549 = vsyncadd (%p6903_p4), %s185_s10, 4294965248  ;;  %p6904_p6 = scmp.eq.s32.totalorder %s4626_s16, 0 }
  0x57   : > { %4551 = dma.done.wait (%p6904_p6), [#allocation6], 8448   ;;  %p6905_p8 = pmov %p6904_p6 }
  0x58   : > { %v268_v0 = vld [vmem:[#allocation5 + $0xf8] sm:$0xff]  ;;  %v267_v1 = vld [vmem:[#allocation5 + $0xf0] sm:$0xff]  ;;  %v266_v2 = vld [vmem:[#allocation5 + $0xe8] sm:$0xff]  ;;  %vm2021_vm0 = vcmask 130048   ;;  %s6566_s18 = scalar_lea.vmem [#allocation8], %s4324_s8  ;;  %s4349_s20 = sshll.u32 %s4626_s16, 11 }
  0x59   : > { %4553 = vsyncadd (%p6905_p8), [#allocation6], 4294958848  ;;  %v4754_v3 = vand.u32 4294901760, %v268_v0  ;;  %v4756_v4 = vand.u32 4294901760, %v267_v1  ;;  %v4758_v5 = vand.u32 4294901760, %v266_v2  ;;  %v265_v6 = vld [vmem:[#allocation5 + $0xe0] sm:$0xff]  ;;  %s6587_s4 = scalar_lea.hbm %s6637_s3, %s4349_s20 }
  0x5a   : > { %v264_v7 = vld [vmem:[#allocation5 + $0xd8] sm:$0xff]  ;;  %v263_v8 = vld [vmem:[#allocation5 + $0xd0] sm:$0xff]  ;;  %v4760_v9 = vand.u32 4294901760, %v265_v6  ;;  %v262_v12 = vld [vmem:[#allocation5 + $0xc8] sm:$0xff]  ;;  %s4222_s27 = sshll.u32 %s6566_s18, 4  ;;  %s4208_s16 = scalar_lea.sflag [#allocation4], %s4738_s7  ;;  %s6589_s27 = int_to_ptr.vmem [resolvable:$true] %s4222_s27 }
  0x5b   : > { %v4762_v10 = vand.u32 4294901760, %v264_v7  ;;  %v4764_v11 = vand.u32 4294901760, %v263_v8  ;;  %v261_v13 = vld [vmem:[#allocation5 + $0xc0] sm:$0xff]  ;;  %v260_v14 = vld [vmem:[#allocation5 + $0xb8] sm:$0xff]  ;;  %302 = vmatprep.subr.mxu0 %v4754_v3  ;;  %v4767_v15 = vand.u32 4294901760, %v262_v12  ;;  %v4774_v18 = vsub.f32 %v268_v0, %v4754_v3  ;;  %v4776_v19 = vld [vmem:[#allocation5 + $0xb0] sm:$0xff] }
  0x5c   : > { %6906 = vst [vmem:[#allocation12_spill] sm:$0xff] %v4760_v9  ;;  %v4769_v16 = vand.u32 4294901760, %v261_v13  ;;  %v4771_v17 = vand.u32 4294901760, %v260_v14  ;;  %v4778_v20 = vld [vmem:[#allocation5 + $0xa8] sm:$0xff]  ;;  %v4780_v21 = vld [vmem:[#allocation5 + $0xa0] sm:$0xff]  ;;  %304 = vmatpush1.msra.mxu0 %v4756_v4  ;;  %v4784_v22 = vand.u32 4294901760, %v4776_v19  ;;  %v4787_v23 = vsub.f32 %v267_v1, %v4756_v4 }
  0x5d   : > { %6907 = vst [vmem:[#allocation13_spill] sm:$0xff] %v4762_v10  ;;  %6908 = vst [vmem:[#allocation14_spill] sm:$0xff] %v4764_v11  ;;  %v4790_v24 = vand.u32 4294901760, %v4778_v20  ;;  %v4793_v25 = vsub.f32 %v266_v2, %v4758_v5  ;;  %v4795_v26 = vld [vmem:[#allocation5 + $0x98] sm:$0xff]  ;;  %v4797_v27 = vld [vmem:[#allocation5 + $0x90] sm:$0xff]  ;;  %306 = vmatprep.subr.mxu0 %v4758_v5  ;;  %v6655_v29 = vand.u32 4294901760, %v4774_v18  ;;  %v4807_v31 = vsub.f32 %v265_v6, %v4760_v9 }
  0x5e   : > { %6909 = vst [vmem:[#allocation15_spill] sm:$0xff] %v4767_v15  ;;  %6910 = vst [vmem:[#allocation16_spill] sm:$0xff] %v4769_v16  ;;  %v4799_v28 = vld [vmem:[#allocation5 + $0x88] sm:$0xff]  ;;  %v4804_v30 = vand.u32 4294901760, %v4780_v21  ;;  %v4810_v32 = vand.u32 4294901760, %v4795_v26  ;;  %308 = vmatpush1.msra.mxu0 %v4760_v9  ;;  %v6653_v33 = vand.u32 4294901760, %v4787_v23  ;;  %v4816_v35 = vsub.f32 %v264_v7, %v4762_v10 }
  0x5f   : > { %6911 = vst [vmem:[#allocation17_spill] sm:$0xff] %v4771_v17  ;;  %6912 = vst [vmem:[#allocation18_spill] sm:$0xff] %v4784_v22  ;;  %v6652_v34 = vand.u32 4294901760, %v4793_v25  ;;  %v4819_v36 = vand.u32 4294901760, %v4797_v27  ;;  %v4821_v37 = vld [vmem:[#allocation5 + $0x80] sm:$0xff]  ;;  %310 = vmatprep.subr.mxu0 %v4762_v10  ;;  %v561_v38 = vsub.f32 %v4774_v18, %v6655_v29  ;;  %v6650_v39 = vand.u32 4294901760, %v4807_v31 }
  0x60   : > { %6913 = vst [vmem:[#allocation19_spill] sm:$0xff] %v4790_v24  ;;  %6914 = vst [vmem:[#allocation20_spill] sm:$0xff] %v4804_v30  ;;  %v4829_v40 = vsub.f32 %v263_v8, %v4764_v11  ;;  %v4832_v41 = vand.u32 4294901760, %v4799_v28  ;;  %312 = vmatpush1.msra.mxu0 %v4764_v11  ;;  %v567_v42 = vsub.f32 %v4787_v23, %v6653_v33  ;;  %v6648_v44 = vand.u32 4294901760, %v4816_v35  ;;  %v4845_v46 = vld [vmem:[#allocation5 + $0x78] sm:$0xff]  ;;  %v4855_v51 = vld [vmem:[#allocation5 + $0x70] sm:$0xff] }
  0x61   : > { %6915 = vst [vmem:[#allocation21_spill] sm:$0xff] %v4810_v32  ;;  %6916 = vst [vmem:[#allocation22_spill] sm:$0xff] %v4819_v36  ;;  %v573_v43 = vsub.f32 %v4793_v25, %v6652_v34  ;;  %v4843_v45 = vsub.f32 %v262_v12, %v4767_v15  ;;  %314 = vmatprep.subr.mxu0 %v4767_v15  ;;  %v562_v47 = vand.u32 4294901760, %v561_v38  ;;  %v4853_v50 = vand.u32 4294901760, %v4821_v37  ;;  %v4862_v56 = vld [vmem:[#allocation5 + $0x68] sm:$0xff]  ;;  %v4874_v61 = vld [vmem:[#allocation5 + $0x60] sm:$0xff] }
  0x62   : > { %6917 = vst [vmem:[#allocation23_spill] sm:$0xff] %v4832_v41  ;;  %v579_v48 = vsub.f32 %v4807_v31, %v6650_v39  ;;  %v6647_v49 = vand.u32 4294901760, %v4829_v40  ;;  %316 = vmatpush1.msra.mxu0 %v4769_v16  ;;  %v568_v52 = vand.u32 4294901760, %v567_v42  ;;  %v585_v54 = vsub.f32 %v4816_v35, %v6648_v44  ;;  %v4886_v2 = vld [vmem:[#allocation5 + $0x58] sm:$0xff]  ;;  %v4977_v39 = vld [vmem:[#allocation5 + $0x28] sm:$0xff]  ;;  %v4987_v34 = vld [vmem:[#allocation5 + $0x20] sm:$0xff] }
  0x63   : > { %6918 = vst [vmem:[#allocation24_spill] sm:$0xff] %v4853_v50  ;;  %v574_v53 = vand.u32 4294901760, %v573_v43  ;;  %v6645_v55 = vand.u32 4294901760, %v4843_v45  ;;  %318 = vmatprep.subr.mxu0 %v4771_v17  ;;  %563 = vmatprep.subr.mxu1 %v562_v47  ;;  %v4869_v59 = vsub.f32 %v261_v13, %v4769_v16  ;;  %v4872_v60 = vand.u32 4294901760, %v4845_v46  ;;  %v4897_v13 = vld [vmem:[#allocation5 + $0x50] sm:$0xff]  ;;  %s4504_s6 = scalar_lea.vmem %s6589_s27, 2048 }
  0x64   : > { %v580_v57 = vand.u32 4294901760, %v579_v48  ;;  %v591_v58 = vsub.f32 %v4829_v40, %v6647_v49  ;;  %320 = vmatpush1.msra.mxu0 %v4784_v22  ;;  %569 = vmatpush1.msra.mxu1 %v568_v52  ;;  %v586_v62 = vand.u32 4294901760, %v585_v54  ;;  %v4881_v0 = vsub.f32 %v260_v14, %v4771_v17  ;;  %v4964_v49 = vld [vmem:[#allocation5 + $0x30] sm:$0xff]  ;;  %p4505_p10 = scmp.ne.s32.totalorder %s6589_s27, %s4504_s6  ;;  %p7328_p2 = scmp.ne.s32.totalorder %s6900_s21, 0 }
  0x65   : > { %6919 = vst [vmem:[#allocation25_spill] sm:$0xff] %v4872_v60  ;;  %v597_v63 = vsub.f32 %v4843_v45, %v6645_v55  ;;  %v4884_v1 = vand.u32 4294901760, %v4855_v51  ;;  %322 = vmatprep.subr.mxu0 %v4790_v24  ;;  %575 = vmatprep.subr.mxu1 %v574_v53  ;;  %v6643_v7 = vand.u32 4294901760, %v4869_v59  ;;  %v4892_v8 = vsub.f32 %v4776_v19, %v4784_v22  ;;  %s4582_s11 = smov [#allocation8]  }
  0x66   : > { %v592_v6 = vand.u32 4294901760, %v591_v58  ;;  %v4895_v12 = vand.u32 4294901760, %v4862_v56  ;;  %324 = vmatpush1.msra.mxu0 %v4804_v30  ;;  %581 = vmatpush1.msra.mxu1 %v580_v57  ;;  %v6642_v38 = vand.u32 4294901760, %v4881_v0  ;;  %v4903_v42 = vsub.f32 %v4778_v20, %v4790_v24  ;;  %v4920_v20 = vld [vmem:[#allocation5 + $0x48] sm:$0xff]  ;;  %p4506_p7 = pnand %p4505_p10, %p7328_p2  ;;  %s4508_s23 = sshll.u32 %s4582_s11, 4  ;;  %s4509_s23 = int_to_ptr.vmem [resolvable:$false] %s4508_s23 }
  0x67   : > { %6920 = vst [vmem:[#allocation26_spill] sm:$0xff] %v4884_v1  ;;  %v598_v14 = vand.u32 4294901760, %v597_v63  ;;  %v4906_v43 = vand.u32 4294901760, %v4874_v61  ;;  %326 = vmatprep.subr.mxu0 %v4810_v32  ;;  %587 = vmatprep.subr.mxu1 %v586_v62  ;;  %v603_v19 = vsub.f32 %v4869_v59, %v6643_v7  ;;  %v6644_v47 = vand.u32 4294901760, %v4892_v8  ;;  %s4510_s24 = scalar_lea.vmem %s4509_s23, 4096  ;;  %p4511_p13 = scmp.lt.s32.totalorder %s6589_s27, %s4509_s23 }
  0x68   : > { %6921 = vst [vmem:[#allocation27_spill] sm:$0xff] %v4895_v12  ;;  %v4915_v48 = vsub.f32 %v4780_v21, %v4804_v30  ;;  %v4918_v52 = vand.u32 4294901760, %v4886_v2  ;;  %328 = vmatpush1.msra.mxu0 %v4819_v36  ;;  %593 = vmatpush1.msra.mxu1 %v592_v6  ;;  %v609_v53 = vsub.f32 %v4881_v0, %v6642_v38  ;;  %v6646_v54 = vand.u32 4294901760, %v4903_v42  ;;  %v4943_v38 = vld [vmem:[#allocation5 + $0x40] sm:$0xff]  ;;  %p4507_p12 = pneg %p4506_p7  ;;  %p4512_p0 = scmp.lt.s32.totalorder %s4510_s24, %s4504_s6 }
  0x69   : > { %6922 = vst [vmem:[#allocation28_spill] sm:$0xff] %v4906_v43  ;;  %v4929_v57 = vsub.f32 %v4795_v26, %v4810_v32  ;;  %v4932_v21 = vand.u32 4294901760, %v4897_v13  ;;  %330 = vmatprep.subr.mxu0 %v4832_v41  ;;  %599 = vmatprep.subr.mxu1 %v598_v14  ;;  %v604_v58 = vand.u32 4294901760, %v603_v19  ;;  %v615_v62 = vsub.f32 %v4892_v8, %v6644_v47  ;;  %v4953_v47 = vld [vmem:[#allocation5 + $0x38] sm:$0xff] }
  0x6a   : > { %6923 = vst [vmem:[#allocation29_spill] sm:$0xff] %v4915_v48  ;;  %6924 = vst [vmem:[#allocation30_spill] sm:$0xff] %v4918_v52  ;;  %v6649_v63 = vand.u32 4294901760, %v4915_v48  ;;  %v4941_v6 = vsub.f32 %v4797_v27, %v4819_v36  ;;  %332 = vmatpush1.msra.mxu0 %v4853_v50  ;;  %v610_v26 = vand.u32 4294901760, %v609_v53  ;;  %v621_v14 = vsub.f32 %v4903_v42, %v6646_v54  ;;  %v5067_v36 = vld [vmem:[#allocation5 + $0x1f8] sm:$0xff]  ;;  %p4513_p5 = por %p4512_p0, %p4511_p13 }
  0x6b   : > { %6925 = vst [vmem:[#allocation31_spill] sm:$0xff] %v4929_v57  ;;  %6926 = vst [vmem:[#allocation32_spill] sm:$0xff] %v4932_v21  ;;  %v6651_v19 = vand.u32 4294901760, %v4929_v57  ;;  %v4951_v7 = vand.u32 4294901760, %v4920_v20  ;;  %605 = vmatpush1.msra.mxu1 %v604_v58  ;;  %334 = vmatprep.subr.mxu0 %v4872_v60  ;;  %v616_v27 = vand.u32 4294901760, %v615_v62  ;;  %v4962_v54 = vsub.f32 %v4799_v28, %v4832_v41 }
  0x6c   : > { %6927 = vst [vmem:[#allocation33_spill] sm:$0xff] %v4941_v6  ;;  %v627_v55 = vsub.f32 %v4915_v48, %v6649_v63  ;;  %v6654_v53 = vand.u32 4294901760, %v4941_v6  ;;  %611 = vmatprep.subr.mxu1 %v610_v26  ;;  %336 = vmatpush1.msra.mxu0 %v4884_v1  ;;  %v622_v44 = vand.u32 4294901760, %v621_v14  ;;  %v4971_v62 = vand.u32 4294901760, %v4943_v38  ;;  %p4514_p3 = pnand %p4513_p5, %p4507_p12 }
  0x6d   : > { %6928 = vst [vmem:[#allocation34_spill] sm:$0xff] %v4951_v7  ;;  %6929 = vst [vmem:[#allocation35_spill] sm:$0xff] %v4962_v54  ;;  %v633_v58 = vsub.f32 %v4929_v57, %v6651_v19  ;;  %v4975_v63 = vsub.f32 %v4821_v37, %v4853_v50  ;;  %617 = vmatpush1.msra.mxu1 %v616_v27  ;;  %338 = vmatprep.subr.mxu0 %v4895_v12  ;;  %v6658_v14 = vand.u32 4294901760, %v4962_v54 }
  0x6e   : > { %6930 = vst [vmem:[#allocation36_spill] sm:$0xff] %v4971_v62  ;;  %v628_v28 = vand.u32 4294901760, %v627_v55  ;;  %v639_v26 = vsub.f32 %v4941_v6, %v6654_v53  ;;  %v4985_v19 = vand.u32 4294901760, %v4953_v47  ;;  %623 = vmatprep.subr.mxu1 %v622_v44  ;;  %340 = vmatpush1.msra.mxu0 %v4906_v43  ;;  %v4993_v55 = vsub.f32 %v4845_v46, %v4872_v60  ;;  %v4998_v53 = vld [vmem:[#allocation5 + $0x18] sm:$0xff] }
  0x6f   : > { %6931 = vst [vmem:[#allocation37_spill] sm:$0xff] %v4975_v63  ;;  %v634_v37 = vand.u32 4294901760, %v633_v58  ;;  %v6661_v27 = vand.u32 4294901760, %v4975_v63  ;;  %v4996_v33 = vand.u32 4294901760, %v4964_v49  ;;  %342 = vmatprep.subr.mxu0 %v4918_v52  ;;  %v645_v44 = vsub.f32 %v4962_v54, %v6658_v14 }
  0x70   : > { %6932 = vst [vmem:[#allocation38_spill] sm:$0xff] %v4985_v19  ;;  %6933 = vst [vmem:[#allocation39_spill] sm:$0xff] %v4993_v55  ;;  %629 = vmatpush1.msra.mxu1 %v628_v28  ;;  %v640_v29 = vand.u32 4294901760, %v639_v26  ;;  %v5006_v58 = vsub.f32 %v4855_v51, %v4884_v1  ;;  %v5009_v46 = vand.u32 4294901760, %v4977_v39  ;;  %344 = vmatpush1.msra.mxu0 %v4932_v21  ;;  %v5021_v14 = vand.u32 4294901760, %v4987_v34  ;;  %v5023_v51 = vld [vmem:[#allocation5 + $0x10] sm:$0xff] }
  0x71   : > { %6934 = vst [vmem:[#allocation40_spill] sm:$0xff] %v4996_v33  ;;  %635 = vmatprep.subr.mxu1 %v634_v37  ;;  %v651_v28 = vsub.f32 %v4975_v63, %v6661_v27  ;;  %v5018_v60 = vsub.f32 %v4862_v56, %v4895_v12  ;;  %346 = vmatprep.subr.mxu0 %v4951_v7  ;;  %v646_v37 = vand.u32 4294901760, %v645_v44  ;;  %v5032_v26 = vand.u32 4294901760, %v4998_v53  ;;  %v5034_v56 = vld [vmem:[#allocation5 + $0x8] sm:$0xff]  ;;  %v5057_v44 = vld [vmem:[#allocation5] sm:$0xff] }
  0x72   : > { %6935 = vst [vmem:[#allocation41_spill] sm:$0xff] %v5006_v58  ;;  %6936 = vst [vmem:[#allocation42_spill] sm:$0xff] %v5009_v46  ;;  %641 = vmatpush1.msra.mxu1 %v640_v29  ;;  %v5029_v27 = vsub.f32 %v4874_v61, %v4906_v43  ;;  %348 = vmatpush1.msra.mxu0 %v4971_v62  ;;  %v6941_v50 = vand.u32 4294901760, %v4993_v55  ;;  %v5043_v1 = vsub.f32 %v4886_v2, %v4918_v52 }
  0x73   : > { %6937 = vst [vmem:[#allocation43_spill] sm:$0xff] %v5018_v60  ;;  %6938 = vst [vmem:[#allocation44_spill] sm:$0xff] %v5021_v14  ;;  %v652_v12 = vand.u32 4294901760, %v651_v28  ;;  %647 = vmatprep.subr.mxu1 %v646_v37  ;;  %350 = vmatprep.subr.mxu0 %v4985_v19  ;;  %v6943_v61 = vand.u32 4294901760, %v5006_v58  ;;  %v5051_v28 = vand.u32 4294901760, %v5023_v51  ;;  %v6946_v37 = vand.u32 4294901760, %v5018_v60 }
  0x74   : > { %6939 = vst [vmem:[#allocation45_spill] sm:$0xff] %v5029_v27  ;;  %6940 = vst [vmem:[#allocation46_spill] sm:$0xff] %v5032_v26  ;;  %v657_v29 = vsub.f32 %v4993_v55, %v6941_v50  ;;  %v5055_v50 = vsub.f32 %v4897_v13, %v4932_v21  ;;  %352 = vmatpush1.msra.mxu0 %v4996_v33  ;;  %v5065_v41 = vand.u32 4294901760, %v5034_v56  ;;  %v6948_v13 = vand.u32 4294901760, %v5029_v27 }
  0x75   : > { %6942 = vst [vmem:[#allocation47_spill] sm:$0xff] %v5043_v1  ;;  %v663_v43 = vsub.f32 %v5006_v58, %v6943_v61  ;;  %6944 = vst [vmem:[#allocation48_spill] sm:$0xff] %v5051_v28  ;;  %653 = vmatpush1.msra.mxu1 %v652_v12  ;;  %v669_v52 = vsub.f32 %v5018_v60, %v6946_v37  ;;  %354 = vmatprep.subr.mxu0 %v5009_v46  ;;  %v5078_v37 = vld [vmem:[#allocation5 + $0x1f0] sm:$0xff]  ;;  %v5085_v24 = vand.u32 4294901760, %v5057_v44 }
  0x76   : > { %6945 = vst [vmem:[#allocation49_spill] sm:$0xff] %v5055_v50  ;;  %v658_v2 = vand.u32 4294901760, %v657_v29  ;;  %6947 = vst [vmem:[#allocation50_spill] sm:$0xff] %v5065_v41  ;;  %v675_v12 = vsub.f32 %v5029_v27, %v6948_v13  ;;  %v5076_v21 = vsub.f32 %v4920_v20, %v4951_v7  ;;  %356 = vmatpush1.msra.mxu0 %v5021_v14  ;;  %v5091_v29 = vld [vmem:[#allocation5 + $0x1e8] sm:$0xff] }
  0x77   : > { %v664_v32 = vand.u32 4294901760, %v663_v43  ;;  %v670_v61 = vand.u32 4294901760, %v669_v52  ;;  %v6950_v43 = vand.u32 4294901760, %v5043_v1  ;;  %6951 = vst [vmem:[#allocation52_spill] sm:$0xff] %v5085_v24  ;;  %v5089_v13 = vsub.f32 %v4943_v38, %v4971_v62  ;;  %358 = vmatprep.subr.mxu0 %v5032_v26 }
  0x78   : > { %6949 = vst [vmem:[#allocation51_spill] sm:$0xff] %v5076_v21  ;;  %659 = vmatprep.subr.mxu1 %v658_v2  ;;  %v676_v20 = vand.u32 4294901760, %v675_v12  ;;  %v6953_v52 = vand.u32 4294901760, %v5055_v50  ;;  %360 = vmatpush1.msra.mxu0 %v5051_v28  ;;  %v5107_v12 = vsub.f32 %v4953_v47, %v4985_v19  ;;  %v5110_v62 = vand.u32 4294901760, %v5078_v37 }
  0x79   : > { %v681_v30 = vsub.f32 %v5043_v1, %v6950_v43  ;;  %6952 = vst [vmem:[#allocation53_spill] sm:$0xff] %v5089_v13  ;;  %665 = vmatpush1.msra.mxu1 %v664_v32  ;;  %v5099_v43 = vand.u32 4294901760, %v5067_v36  ;;  %v5101_v1 = vld [vmem:[#allocation5 + $0x1e0] sm:$0xff]  ;;  %362 = vmatprep.subr.mxu0 %v5065_v41  ;;  %v5120_v32 = vsub.f32 %v4964_v49, %v4996_v33  ;;  %v5123_v47 = vand.u32 4294901760, %v5091_v29  ;;  %v5137_v49 = vld [vmem:[#allocation5 + $0x1d0] sm:$0xff] }
  0x7a   : > { %v687_v2 = vsub.f32 %v5055_v50, %v6953_v52  ;;  %671 = vmatprep.subr.mxu1 %v670_v61  ;;  %6955 = vst [vmem:[#allocation55_spill] sm:$0xff] %v5107_v12  ;;  %6956 = vst [vmem:[#allocation56_spill] sm:$0xff] %v5110_v62  ;;  %v5112_v52 = vld [vmem:[#allocation5 + $0x1d8] sm:$0xff]  ;;  %v6957_v61 = vand.u32 4294901760, %v5076_v21  ;;  %364 = vmatpush1.msra.mxu0 %v5085_v24  ;;  %v6960_v19 = vand.u32 4294901760, %v5089_v13 }
  0x7b   : > { %6954 = vst [vmem:[#allocation54_spill] sm:$0xff] %v5099_v43  ;;  %v682_v38 = vand.u32 4294901760, %v681_v30  ;;  %677 = vmatpush1.msra.mxu1 %v676_v20  ;;  %6958 = vst [vmem:[#allocation57_spill] sm:$0xff] %v5120_v32  ;;  %v5132_v50 = vsub.f32 %v4977_v39, %v5009_v46  ;;  %366 = vmatprep.subr.mxu0 %v5099_v43  ;;  %v5148_v39 = vld [vmem:[#allocation5 + $0x1c8] sm:$0xff] }
  0x7c   : > { %v688_v7 = vand.u32 4294901760, %v687_v2  ;;  %v693_v30 = vsub.f32 %v5076_v21, %v6957_v61  ;;  %6959 = vst [vmem:[#allocation58_spill] sm:$0xff] %v5123_v47  ;;  %v699_v20 = vsub.f32 %v5089_v13, %v6960_v19  ;;  %v5135_v61 = vand.u32 4294901760, %v5101_v1  ;;  %368 = vmatpush2.msra.mxu0 %v5110_v62 }
  0x7d   : > { %683 = vmatprep.subr.mxu1 %v682_v38  ;;  %6961 = vst [vmem:[#allocation59_spill] sm:$0xff] %v5132_v50  ;;  %v6704_v38 = vand.u32 4294901760, %v5120_v32  ;;  %v5143_v19 = vsub.f32 %v4987_v34, %v5021_v14  ;;  %v5146_v2 = vand.u32 4294901760, %v5112_v52  ;;  %v6965_v13 = vand.u32 4294901760, %v5107_v12  ;;  %370 = vmatprep.subr.mxu0 %v5123_v47 }
  0x7e   : > { %6962 = vst [vmem:[#allocation60_spill] sm:$0xff] %v5135_v61  ;;  %689 = vmatpush1.msra.mxu1 %v688_v7  ;;  %v694_v33 = vand.u32 4294901760, %v693_v30  ;;  %v700_v46 = vand.u32 4294901760, %v699_v20  ;;  %v5157_v30 = vsub.f32 %v4998_v53, %v5032_v26  ;;  %v5165_v14 = vand.u32 4294901760, %v5137_v49  ;;  %v5171_v7 = vld [vmem:[#allocation5 + $0x1c0] sm:$0xff]  ;;  %372 = vmatpush2.msra.mxu0 %v5135_v61 }
  0x7f   : > { %6963 = vst [vmem:[#allocation61_spill] sm:$0xff] %v5143_v19  ;;  %6964 = vst [vmem:[#allocation62_spill] sm:$0xff] %v5146_v2  ;;  %v705_v21 = vsub.f32 %v5107_v12, %v6965_v13  ;;  %v711_v34 = vsub.f32 %v5120_v32, %v6704_v38  ;;  %v5169_v13 = vsub.f32 %v5023_v51, %v5051_v28  ;;  %v5179_v20 = vand.u32 4294901760, %v5148_v39  ;;  %v5181_v32 = vld [vmem:[#allocation5 + $0x1b8] sm:$0xff] }
  0x80   : > { %6966 = vst [vmem:[#allocation63_spill] sm:$0xff] %v5157_v30  ;;  %695 = vmatprep.subr.mxu1 %v694_v33  ;;  %6967 = vst [vmem:[#allocation64_spill] sm:$0xff] %v5165_v14  ;;  %v6969_v33 = vand.u32 4294901760, %v5132_v50  ;;  %v6971_v51 = vand.u32 4294901760, %v5143_v19  ;;  %374 = vmatprep.subr.mxu0 %v5146_v2 }
  0x81   : > { %6968 = vst [vmem:[#allocation65_spill] sm:$0xff] %v5169_v13  ;;  %701 = vmatpush1.msra.mxu1 %v700_v46  ;;  %v706_v53 = vand.u32 4294901760, %v705_v21  ;;  %6970 = vst [vmem:[#allocation66_spill] sm:$0xff] %v5179_v20  ;;  %v712_v12 = vand.u32 4294901760, %v711_v34  ;;  %v5190_v46 = vsub.f32 %v5034_v56, %v5065_v41  ;;  %376 = vmatpush2.msra.mxu0 %v5165_v14  ;;  %v5213_v41 = vand.u32 4294901760, %v5181_v32 }
  0x82   : > { %v717_v26 = vsub.f32 %v5132_v50, %v6969_v33  ;;  %v723_v28 = vsub.f32 %v5143_v19, %v6971_v51  ;;  %v5192_v33 = vld [vmem:[#allocation5 + $0x1b0] sm:$0xff]  ;;  %v6973_v50 = vand.u32 4294901760, %v5157_v30  ;;  %v5199_v51 = vand.u32 4294901760, %v5171_v7  ;;  %v5205_v19 = vld [vmem:[#allocation5 + $0x1a8] sm:$0xff]  ;;  %378 = vmatprep.subr.mxu0 %v5179_v20 }
  0x83   : > { %6972 = vst [vmem:[#allocation67_spill] sm:$0xff] %v5190_v46  ;;  %707 = vmatprep.subr.mxu1 %v706_v53  ;;  %v5203_v21 = vsub.f32 %v5057_v44, %v5085_v24  ;;  %v6976_v53 = vand.u32 4294901760, %v5169_v13  ;;  %6977 = vst [vmem:[#allocation70_spill] sm:$0xff] %v5213_v41  ;;  %v5226_v24 = vld [vmem:[#allocation5 + $0x198] sm:$0xff] }
  0x84   : > { %v718_v38 = vand.u32 4294901760, %v717_v26  ;;  %v729_v34 = vsub.f32 %v5157_v30, %v6973_v50  ;;  %6974 = vst [vmem:[#allocation68_spill] sm:$0xff] %v5199_v51  ;;  %713 = vmatpush1.msra.mxu1 %v712_v12  ;;  %v724_v56 = vand.u32 4294901760, %v723_v28  ;;  %v5215_v30 = vld [vmem:[#allocation5 + $0x1a0] sm:$0xff]  ;;  %380 = vmatpush2.msra.mxu0 %v5199_v51  ;;  %v5221_v28 = vsub.f32 %v5067_v36, %v5099_v43 }
  0x85   : > { %6975 = vst [vmem:[#allocation69_spill] sm:$0xff] %v5203_v21  ;;  %v735_v26 = vsub.f32 %v5169_v13, %v6976_v53  ;;  %v6727_v12 = vand.u32 4294901760, %v5203_v21  ;;  %v5224_v53 = vand.u32 4294901760, %v5192_v33  ;;  %v6980_v13 = vand.u32 4294901760, %v5190_v46  ;;  %382 = vmatprep.subr.mxu0 %v5213_v41 }
  0x86   : > { %719 = vmatprep.subr.mxu1 %v718_v38  ;;  %v730_v44 = vand.u32 4294901760, %v729_v34  ;;  %6978 = vst [vmem:[#allocation71_spill] sm:$0xff] %v5221_v28  ;;  %v5234_v34 = vsub.f32 %v5078_v37, %v5110_v62  ;;  %v5237_v36 = vand.u32 4294901760, %v5205_v19  ;;  %v5251_v37 = vld [vmem:[#allocation5 + $0x190] sm:$0xff] }
  0x87   : > { %6979 = vst [vmem:[#allocation72_spill] sm:$0xff] %v5224_v53  ;;  %725 = vmatpush1.msra.mxu1 %v724_v56  ;;  %v736_v50 = vand.u32 4294901760, %v735_v26  ;;  %v741_v38 = vsub.f32 %v5190_v46, %v6980_v13  ;;  %v747_v43 = vsub.f32 %v5203_v21, %v6727_v12  ;;  %384 = vmatpush2.msra.mxu0 %v5224_v53  ;;  %v5249_v26 = vand.u32 4294901760, %v5215_v30 }
  0x88   : > { %6981 = vst [vmem:[#allocation73_spill] sm:$0xff] %v5234_v34  ;;  %6982 = vst [vmem:[#allocation74_spill] sm:$0xff] %v5237_v36  ;;  %731 = vmatprep.subr.mxu1 %v730_v44  ;;  %v5246_v13 = vsub.f32 %v5091_v29, %v5123_v47  ;;  %v6738_v44 = vand.u32 4294901760, %v5234_v34  ;;  %386 = vmatprep.subr.mxu0 %v5237_v36  ;;  %v5257_v12 = vsub.f32 %v5101_v1, %v5135_v61  ;;  %v5262_v29 = vld [vmem:[#allocation5 + $0x188] sm:$0xff] }
  0x89   : > { %6984 = vst [vmem:[#allocation76_spill] sm:$0xff] %v5249_v26  ;;  %737 = vmatpush1.msra.mxu1 %v736_v50  ;;  %v742_v62 = vand.u32 4294901760, %v741_v38  ;;  %v5260_v56 = vand.u32 4294901760, %v5226_v24  ;;  %v748_v47 = vand.u32 4294901760, %v747_v43  ;;  %v6987_v21 = vand.u32 4294901760, %v5221_v28  ;;  %388 = vmatpush2.msra.mxu0 %v5249_v26  ;;  %v5285_v50 = vld [vmem:[#allocation5 + $0x180] sm:$0xff] }
  0x8a   : > { %6983 = vst [vmem:[#allocation75_spill] sm:$0xff] %v5246_v13  ;;  %6985 = vst [vmem:[#allocation77_spill] sm:$0xff] %v5257_v12  ;;  %v5271_v38 = vsub.f32 %v5112_v52, %v5146_v2  ;;  %v759_v1 = vsub.f32 %v5234_v34, %v6738_v44  ;;  %v5279_v43 = vand.u32 4294901760, %v5251_v37  ;;  %v5292_v61 = vand.u32 4294901760, %v5262_v29  ;;  %v5294_v34 = vld [vmem:[#allocation5 + $0x178] sm:$0xff] }
  0x8b   : > { %6986 = vst [vmem:[#allocation78_spill] sm:$0xff] %v5260_v56  ;;  %v753_v46 = vsub.f32 %v5221_v28, %v6987_v21  ;;  %743 = vmatprep.subr.mxu1 %v742_v62  ;;  %390 = vmatprep.subr.mxu0 %v5260_v56  ;;  %v5283_v21 = vsub.f32 %v5137_v49, %v5165_v14  ;;  %v6991_v62 = vand.u32 4294901760, %v5246_v13  ;;  %v6993_v27 = vand.u32 4294901760, %v5257_v12 }
  0x8c   : > { %6988 = vst [vmem:[#allocation79_spill] sm:$0xff] %v5271_v38  ;;  %6989 = vst [vmem:[#allocation80_spill] sm:$0xff] %v5279_v43  ;;  %749 = vmatpush1.msra.mxu1 %v748_v47  ;;  %v760_v28 = vand.u32 4294901760, %v759_v1  ;;  %392 = vmatpush2.msra.mxu0 %v5279_v43  ;;  %v6995_v14 = vand.u32 4294901760, %v5271_v38  ;;  %v5316_v47 = vsub.f32 %v5171_v7, %v5199_v51 }
  0x8d   : > { %6990 = vst [vmem:[#allocation81_spill] sm:$0xff] %v5283_v21  ;;  %v754_v52 = vand.u32 4294901760, %v753_v46  ;;  %v765_v2 = vsub.f32 %v5246_v13, %v6991_v62  ;;  %6992 = vst [vmem:[#allocation82_spill] sm:$0xff] %v5292_v61  ;;  %v771_v49 = vsub.f32 %v5257_v12, %v6993_v27  ;;  %v5303_v46 = vsub.f32 %v5148_v39, %v5179_v20  ;;  %v5305_v62 = vld [vmem:[#allocation5 + $0x170] sm:$0xff]  ;;  %v5318_v12 = vld [vmem:[#allocation5 + $0x168] sm:$0xff] }
  0x8e   : > { %v777_v1 = vsub.f32 %v5271_v38, %v6995_v14  ;;  %394 = vmatprep.subr.mxu0 %v5292_v61  ;;  %v5312_v27 = vand.u32 4294901760, %v5285_v50  ;;  %6997 = vst [vmem:[#allocation85_spill] sm:$0xff] %v5316_v47  ;;  %v5325_v14 = vand.u32 4294901760, %v5294_v34  ;;  %v5327_v38 = vld [vmem:[#allocation5 + $0x160] sm:$0xff]  ;;  %v6761_v7 = vand.u32 4294901760, %v5316_v47 }
  0x8f   : > { %6994 = vst [vmem:[#allocation83_spill] sm:$0xff] %v5303_v46  ;;  %755 = vmatprep.subr.mxu1 %v754_v52  ;;  %v766_v44 = vand.u32 4294901760, %v765_v2  ;;  %v772_v39 = vand.u32 4294901760, %v771_v49  ;;  %v6998_v52 = vand.u32 4294901760, %v5283_v21  ;;  %v5336_v49 = vand.u32 4294901760, %v5305_v62 }
  0x90   : > { %6996 = vst [vmem:[#allocation84_spill] sm:$0xff] %v5312_v27  ;;  %761 = vmatpush2.msra.mxu1 %v760_v28  ;;  %6999 = vst [vmem:[#allocation86_spill] sm:$0xff] %v5325_v14  ;;  %v778_v13 = vand.u32 4294901760, %v777_v1  ;;  %396 = vmatpush2.msra.mxu0 %v5312_v27  ;;  %v5333_v28 = vsub.f32 %v5181_v32, %v5213_v41  ;;  %v7002_v51 = vand.u32 4294901760, %v5303_v46  ;;  %v5349_v32 = vand.u32 4294901760, %v5318_v12 }
  0x91   : > { %v783_v2 = vsub.f32 %v5283_v21, %v6998_v52  ;;  %767 = vmatprep.subr.mxu1 %v766_v44  ;;  %7001 = vst [vmem:[#allocation88_spill] sm:$0xff] %v5336_v49  ;;  %v5338_v52 = vld [vmem:[#allocation5 + $0x158] sm:$0xff]  ;;  %398 = vmatprep.subr.mxu0 %v5325_v14  ;;  %v5346_v1 = vsub.f32 %v5192_v33, %v5224_v53  ;;  %v5363_v33 = vld [vmem:[#allocation5 + $0x150] sm:$0xff] }
  0x92   : > { %7000 = vst [vmem:[#allocation87_spill] sm:$0xff] %v5333_v28  ;;  %773 = vmatpush2.msra.mxu1 %v772_v39  ;;  %v789_v44 = vsub.f32 %v5303_v46, %v7002_v51  ;;  %7004 = vst [vmem:[#allocation90_spill] sm:$0xff] %v5349_v32  ;;  %v795_v41 = vsub.f32 %v5316_v47, %v6761_v7  ;;  %400 = vmatpush2.msra.mxu0 %v5336_v49  ;;  %v5372_v39 = vand.u32 4294901760, %v5338_v52 }
  0x93   : > { %v784_v20 = vand.u32 4294901760, %v783_v2  ;;  %7003 = vst [vmem:[#allocation89_spill] sm:$0xff] %v5346_v1  ;;  %779 = vmatprep.subr.mxu1 %v778_v13  ;;  %v5358_v51 = vsub.f32 %v5205_v19, %v5237_v36  ;;  %v5361_v2 = vand.u32 4294901760, %v5327_v38  ;;  %v6772_v13 = vand.u32 4294901760, %v5346_v1  ;;  %402 = vmatprep.subr.mxu0 %v5349_v32  ;;  %v5374_v19 = vld [vmem:[#allocation5 + $0x148] sm:$0xff] }
  0x94   : > { %v790_v53 = vand.u32 4294901760, %v789_v44  ;;  %v5369_v7 = vsub.f32 %v5215_v30, %v5249_v26  ;;  %7008 = vst [vmem:[#allocation94_spill] sm:$0xff] %v5372_v39  ;;  %v796_v36 = vand.u32 4294901760, %v795_v41  ;;  %v7009_v47 = vand.u32 4294901760, %v5333_v28 }
  0x95   : > { %7005 = vst [vmem:[#allocation91_spill] sm:$0xff] %v5358_v51  ;;  %7006 = vst [vmem:[#allocation92_spill] sm:$0xff] %v5361_v2  ;;  %785 = vmatpush2.msra.mxu1 %v784_v20  ;;  %404 = vmatpush2.msra.mxu0 %v5361_v2  ;;  %v5383_v44 = vsub.f32 %v5226_v24, %v5260_v56  ;;  %v807_v30 = vsub.f32 %v5346_v1, %v6772_v13  ;;  %v5391_v41 = vand.u32 4294901760, %v5363_v33  ;;  %v5397_v20 = vld [vmem:[#allocation5 + $0x140] sm:$0xff]  ;;  %v5406_v1 = vld [vmem:[#allocation5 + $0x138] sm:$0xff] }
  0x96   : > { %7007 = vst [vmem:[#allocation93_spill] sm:$0xff] %v5369_v7  ;;  %v801_v46 = vsub.f32 %v5333_v28, %v7009_v47  ;;  %791 = vmatprep.subr.mxu1 %v790_v53  ;;  %406 = vmatprep.subr.mxu0 %v5372_v39  ;;  %v5395_v47 = vsub.f32 %v5251_v37, %v5279_v43  ;;  %v7013_v53 = vand.u32 4294901760, %v5358_v51  ;;  %v5404_v26 = vand.u32 4294901760, %v5374_v19 }
  0x97   : > { %7010 = vst [vmem:[#allocation95_spill] sm:$0xff] %v5383_v44  ;;  %7011 = vst [vmem:[#allocation96_spill] sm:$0xff] %v5391_v41  ;;  %797 = vmatpush2.msra.mxu1 %v796_v36  ;;  %v808_v28 = vand.u32 4294901760, %v807_v30  ;;  %v7015_v21 = vand.u32 4294901760, %v5369_v7  ;;  %408 = vmatpush2.msra.mxu0 %v5391_v41  ;;  %v7017_v43 = vand.u32 4294901760, %v5383_v44  ;;  %v5428_v36 = vsub.f32 %v5285_v50, %v5312_v27 }
  0x98   : > { %7012 = vst [vmem:[#allocation97_spill] sm:$0xff] %v5395_v47  ;;  %v802_v24 = vand.u32 4294901760, %v801_v46  ;;  %v813_v56 = vsub.f32 %v5358_v51, %v7013_v53  ;;  %7014 = vst [vmem:[#allocation98_spill] sm:$0xff] %v5404_v26  ;;  %v5415_v46 = vsub.f32 %v5262_v29, %v5292_v61  ;;  %v5417_v53 = vld [vmem:[#allocation5 + $0x130] sm:$0xff]  ;;  %410 = vmatprep.subr.mxu0 %v5404_v26 }
  0x99   : > { %v819_v37 = vsub.f32 %v5369_v7, %v7015_v21  ;;  %v825_v30 = vsub.f32 %v5383_v44, %v7017_v43  ;;  %v5424_v21 = vand.u32 4294901760, %v5397_v20  ;;  %7019 = vst [vmem:[#allocation101_spill] sm:$0xff] %v5428_v36  ;;  %v5430_v7 = vld [vmem:[#allocation5 + $0x128] sm:$0xff]  ;;  %v5437_v43 = vand.u32 4294901760, %v5406_v1  ;;  %v5439_v44 = vld [vmem:[#allocation5 + $0x120] sm:$0xff] }
  0x9a   : > { %7016 = vst [vmem:[#allocation99_spill] sm:$0xff] %v5415_v46  ;;  %803 = vmatprep.subr.mxu1 %v802_v24  ;;  %v814_v13 = vand.u32 4294901760, %v813_v56  ;;  %v7020_v24 = vand.u32 4294901760, %v5395_v47  ;;  %v6795_v50 = vand.u32 4294901760, %v5428_v36  ;;  %v7023_v27 = vand.u32 4294901760, %v5415_v46 }
  0x9b   : > { %7018 = vst [vmem:[#allocation100_spill] sm:$0xff] %v5424_v21  ;;  %809 = vmatpush2.msra.mxu1 %v808_v28  ;;  %v820_v29 = vand.u32 4294901760, %v819_v37  ;;  %7021 = vst [vmem:[#allocation102_spill] sm:$0xff] %v5437_v43  ;;  %v826_v51 = vand.u32 4294901760, %v825_v30  ;;  %412 = vmatpush2.msra.mxu0 %v5424_v21  ;;  %v5445_v28 = vsub.f32 %v5294_v34, %v5325_v14  ;;  %v5448_v37 = vand.u32 4294901760, %v5417_v53 }
  0x9c   : > { %v831_v56 = vsub.f32 %v5395_v47, %v7020_v24  ;;  %815 = vmatprep.subr.mxu1 %v814_v13  ;;  %v5450_v24 = vld [vmem:[#allocation5 + $0x118] sm:$0xff]  ;;  %v837_v13 = vsub.f32 %v5415_v46, %v7023_v27  ;;  %414 = vmatprep.subr.mxu0 %v5437_v43  ;;  %v5458_v30 = vsub.f32 %v5305_v62, %v5336_v49  ;;  %v5461_v34 = vand.u32 4294901760, %v5430_v7  ;;  %v5475_v62 = vld [vmem:[#allocation5 + $0x110] sm:$0xff] }
  0x9d   : > { %7022 = vst [vmem:[#allocation103_spill] sm:$0xff] %v5445_v28  ;;  %821 = vmatpush2.msra.mxu1 %v820_v29  ;;  %v843_v14 = vsub.f32 %v5428_v36, %v6795_v50  ;;  %416 = vmatpush2.msra.mxu0 %v5448_v37  ;;  %v5470_v27 = vsub.f32 %v5318_v12, %v5349_v32  ;;  %v5484_v29 = vand.u32 4294901760, %v5450_v24  ;;  %v5486_v12 = vld [vmem:[#allocation5 + $0x108] sm:$0xff]  ;;  %v7029_v36 = vand.u32 4294901760, %v5445_v28 }
  0x9e   : > { %v832_v61 = vand.u32 4294901760, %v831_v56  ;;  %7024 = vst [vmem:[#allocation104_spill] sm:$0xff] %v5458_v30  ;;  %7025 = vst [vmem:[#allocation105_spill] sm:$0xff] %v5461_v34  ;;  %827 = vmatprep.subr.mxu1 %v826_v51  ;;  %v5473_v56 = vand.u32 4294901760, %v5439_v44  ;;  %v838_v49 = vand.u32 4294901760, %v837_v13  ;;  %v6804_v51 = vand.u32 4294901760, %v5458_v30  ;;  %418 = vmatprep.subr.mxu0 %v5461_v34 }
  0x9f   : > { %7026 = vst [vmem:[#allocation106_spill] sm:$0xff] %v5470_v27  ;;  %v5481_v50 = vsub.f32 %v5327_v38, %v5361_v2  ;;  %7028 = vst [vmem:[#allocation108_spill] sm:$0xff] %v5484_v29  ;;  %v844_v32 = vand.u32 4294901760, %v843_v14  ;;  %v849_v46 = vsub.f32 %v5445_v28, %v7029_v36  ;;  %v5495_v13 = vsub.f32 %v5338_v52, %v5372_v39  ;;  %v5509_v2 = vld [vmem:[#allocation5 + $0x100] sm:$0xff] }
  0xa0   : > { %7027 = vst [vmem:[#allocation107_spill] sm:$0xff] %v5473_v56  ;;  %833 = vmatpush2.msra.mxu1 %v832_v61  ;;  %420 = vmatpush2.msra.mxu0 %v5473_v56  ;;  %v855_v38 = vsub.f32 %v5458_v30, %v6804_v51  ;;  %v5503_v36 = vand.u32 4294901760, %v5475_v62  ;;  %v5507_v61 = vsub.f32 %v5363_v33, %v5391_v41  ;;  %v7031_v52 = vand.u32 4294901760, %v5470_v27  ;;  %v222_v30 = vld [vmem:[%s4744_s5 + $0x8] sm:$0xff] }
  0xa1   : > { %7030 = vst [vmem:[#allocation109_spill] sm:$0xff] %v5495_v13  ;;  %839 = vmatprep.subr.mxu1 %v838_v49  ;;  %422 = vmatprep.subr.mxu0 %v5484_v29  ;;  %v850_v49 = vand.u32 4294901760, %v849_v46  ;;  %v5516_v39 = vand.u32 4294901760, %v5486_v12  ;;  %v7032_v47 = vand.u32 4294901760, %v5481_v50  ;;  %v5526_v46 = vsub.f32 %v5374_v19, %v5404_v26 }
  0xa2   : > { %845 = vmatpush2.msra.mxu1 %v844_v32  ;;  %v861_v51 = vsub.f32 %v5470_v27, %v7031_v52  ;;  %v856_v28 = vand.u32 4294901760, %v855_v38  ;;  %424 = vmatpush2.msra.mxu0 %v5503_v36  ;;  %v221_v52 = vld [vmem:[%s4744_s5] sm:$0xff]  ;;  %v7033_v41 = vand.u32 4294901760, %v5495_v13  ;;  %v5534_v38 = vand.u32 4294901760, %v5509_v2 }
  0xa3   : > { %v867_v33 = vsub.f32 %v5481_v50, %v7032_v47  ;;  %851 = vmatprep.subr.mxu1 %v850_v49  ;;  %426 = vmatprep.subr.mxu0 %v5516_v39  ;;  %v5538_v47 = vsub.f32 %v5397_v20, %v5424_v21  ;;  %v7034_v19 = vand.u32 4294901760, %v5507_v61  ;;  %v5544_v26 = vand.u32 4294901760, %v222_v30 }
  0xa4   : > { %v862_v14 = vand.u32 4294901760, %v861_v51  ;;  %v873_v27 = vsub.f32 %v5495_v13, %v7033_v41  ;;  %857 = vmatpush2.msra.mxu1 %v856_v28  ;;  %v6824_v51 = vand.u32 4294901760, %v5526_v46  ;;  %428 = vmatpush2.msra.mxu0 %v5534_v38  ;;  %v5550_v20 = vsub.f32 %v5406_v1, %v5437_v43 }
  0xa5   : > { %v868_v32 = vand.u32 4294901760, %v867_v33  ;;  %v879_v49 = vsub.f32 %v5507_v61, %v7034_v19  ;;  %7035 = vst [vmem:[#allocation110_spill] sm:$0xff] %v5544_v26  ;;  %v6823_v13 = vand.u32 4294901760, %v5538_v47  ;;  %v5552_v28 = vand.u32 4294901760, %v221_v52  ;;  %1009 = vmatprep.subr.mxu0 %v4774_v18  ;;  %943 = vmatprep.mubr.f32.mxu1 %v5544_v26 }
  0xa6   : > { %863 = vmatprep.subr.mxu1 %v862_v14  ;;  %v874_v41 = vand.u32 4294901760, %v873_v27  ;;  %v885_v19 = vsub.f32 %v5526_v46, %v6824_v51  ;;  %v5558_v21 = vsub.f32 %v222_v30, %v5544_v26  ;;  %v5563_v27 = vsub.f32 %v5417_v53, %v5448_v37 }
  0xa7   : > { %7036 = vst [vmem:[#allocation111_spill] sm:$0xff] %v5552_v28  ;;  %869 = vmatpush2.msra.mxu1 %v868_v32  ;;  %v880_v33 = vand.u32 4294901760, %v879_v49  ;;  %v891_v1 = vsub.f32 %v5538_v47, %v6823_v13  ;;  %v6827_v14 = vand.u32 4294901760, %v5550_v20  ;;  %v5570_v32 = vsub.f32 %v221_v52, %v5552_v28 }
  0xa8   : > { %875 = vmatprep.subr.mxu1 %v874_v41  ;;  %v5574_v30 = vsub.f32 %v5430_v7, %v5461_v34  ;;  %v886_v49 = vand.u32 4294901760, %v885_v19  ;;  %v6828_v53 = vand.u32 4294901760, %v5558_v21  ;;  %v6831_v41 = vand.u32 4294901760, %v5563_v27 }
  0xa9   : > { %881 = vmatpush2.msra.mxu1 %v880_v33  ;;  %v5581_v13 = vsub.f32 %v5439_v44, %v5473_v56  ;;  %v892_v51 = vand.u32 4294901760, %v891_v1  ;;  %v897_v52 = vsub.f32 %v5550_v20, %v6827_v14  ;;  %v6836_v7 = vand.u32 4294901760, %v5570_v32 }
  0xaa   : > { %v6837_v34 = vand.u32 4294901760, %v5574_v30  ;;  %887 = vmatprep.subr.mxu1 %v886_v49  ;;  %v432_v33 = vsub.f32 %v5558_v21, %v6828_v53  ;;  %v903_v19 = vsub.f32 %v5563_v27, %v6831_v41  ;;  %v5597_v1 = vsub.f32 %v5450_v24, %v5484_v29 }
  0xab   : > { %893 = vmatpush2.msra.mxu1 %v892_v51  ;;  %v898_v14 = vand.u32 4294901760, %v897_v52  ;;  %v438_v49 = vsub.f32 %v5570_v32, %v6836_v7  ;;  %v5607_v26 = vsub.f32 %v5475_v62, %v5503_v36  ;;  %v7037_v56 = vand.u32 4294901760, %v5581_v13 }
  0xac   : > { %v909_v53 = vsub.f32 %v5574_v30, %v6837_v34  ;;  %v433_v41 = vand.u32 4294901760, %v432_v33  ;;  %v904_v44 = vand.u32 4294901760, %v903_v19  ;;  %v6841_v51 = vand.u32 4294901760, %v5597_v1 }
  0xad   : > { %v915_v24 = vsub.f32 %v5581_v13, %v7037_v56  ;;  %899 = vmatprep.subr.mxu1 %v898_v14  ;;  %v439_v52 = vand.u32 4294901760, %v438_v49  ;;  %v6840_v7 = vand.u32 4294901760, %v5607_v26  ;;  %v5616_v34 = vsub.f32 %v5486_v12, %v5516_v39 }
  0xae   : > { %v910_v29 = vand.u32 4294901760, %v909_v53  ;;  %434 = vmatprep.mubr.f32.mxu0 %v433_v41  ;;  %905 = vmatpush2.msra.mxu1 %v904_v44  ;;  %v921_v33 = vsub.f32 %v5597_v1, %v6841_v51  ;;  %v5623_v56 = vsub.f32 %v5509_v2, %v5534_v38 }
  0xaf   : > { %v916_v62 = vand.u32 4294901760, %v915_v24  ;;  %440 = vmatmul.mubr.f32.vlgmr.msra.gmra.mxu0 %v439_v52  ;;  %v927_v14 = vsub.f32 %v5607_v26, %v6840_v7  ;;  %v6839_v12 = vand.u32 4294901760, %v5616_v34  ;;  %v224_v24 = vld [vmem:[%s4744_s5 + $0x18] sm:$0xff]  ;;  %v223_v52 = vld [vmem:[%s4744_s5 + $0x10] sm:$0xff] }
  0xb0   : > { %911 = vmatprep.subr.mxu1 %v910_v29  ;;  %1012 = vmatpush1.msra.mxu0 %v4787_v23  ;;  %v922_v53 = vand.u32 4294901760, %v921_v33  ;;  %v6838_v41 = vand.u32 4294901760, %v5623_v56  ;;  %v5667_v33 = vand.u32 4294901760, %v223_v52  ;;  %v7046_v7 = vld [vmem:[#allocation49_spill] sm:$0xff] }
  0xb1   : > { %917 = vmatpush2.msra.mxu1 %v916_v62  ;;  %1015 = vmatprep.subr.mxu0 %v4793_v25  ;;  %v928_v19 = vand.u32 4294901760, %v927_v14  ;;  %v933_v2 = vsub.f32 %v5616_v34, %v6839_v12  ;;  %v5661_v62 = vand.u32 4294901760, %v224_v24  ;;  %v226_v14 = vld [vmem:[%s4744_s5 + $0x28] sm:$0xff]  ;;  %v7045_v12 = vld [vmem:[#allocation21_spill] sm:$0xff] }
  0xb2   : > { %1018 = vmatpush1.msra.mxu0 %v4807_v31  ;;  %923 = vmatprep.subr.mxu1 %v922_v53  ;;  %v939_v29 = vsub.f32 %v5623_v56, %v6838_v41  ;;  %7039 = vst [vmem:[#allocation113_spill] sm:$0xff] %v5667_v33  ;;  %v7040_v53 = vld [vmem:[#allocation19_spill] sm:$0xff]  ;;  %v5680_v41 = vand.u32 4294901760, %v226_v14  ;;  %v5685_v51 = vsub.f32 %v223_v52, %v5667_v33 }
  0xb3   : > { %1021 = vmatprep.subr.mxu0 %v4816_v35  ;;  %929 = vmatpush2.msra.mxu1 %v928_v19  ;;  %v934_v44 = vand.u32 4294901760, %v933_v2  ;;  %7038 = vst [vmem:[#allocation112_spill] sm:$0xff] %v5661_v62  ;;  %v7041_v19 = vld [vmem:[#allocation45_spill] sm:$0xff]  ;;  %v5675_v2 = vsub.f32 %v224_v24, %v5661_v62 }
  0xb4   : > { %1024 = vmatpush1.msra.mxu0 %v4829_v40  ;;  %v940_v49 = vand.u32 4294901760, %v939_v29  ;;  %v225_v29 = vld [vmem:[%s4744_s5 + $0x20] sm:$0xff]  ;;  %7044 = vst [vmem:[#allocation114_spill] sm:$0xff] %v5680_v41  ;;  %v5698_v52 = vsub.f32 %v226_v14, %v5680_v41  ;;  %v7060_v14 = vld [vmem:[#allocation61_spill] sm:$0xff] }
  0xb5   : > { %935 = vmatprep.subr.mxu1 %v934_v44  ;;  %1027 = vmatprep.subr.mxu0 %v4843_v45  ;;  %v7042_v44 = vld [vmem:[#allocation20_spill] sm:$0xff]  ;;  %v5689_v24 = vand.u32 4294901760, %v225_v29 }
  0xb6   : > { %941 = vmatpush2.msra.mxu1 %v940_v49  ;;  %1030 = vmatpush1.msra.mxu0 %v4869_v59  ;;  %v7043_v49 = vld [vmem:[#allocation47_spill] sm:$0xff] }
  0xb7   : > { %945 = vmatmul.mubr.f32.vlgmr.msra.gmra.mxu1 %v5552_v28  ;;  %1033 = vmatprep.subr.mxu0 %v4881_v0  ;;  %v7047_v28 = vld [vmem:[#allocation22_spill] sm:$0xff]  ;;  %7049 = vst [vmem:[#allocation115_spill] sm:$0xff] %v5689_v24 }
  0xb8   : > { %1281 = vmatprep.subr.mxu1 %v4754_v3  ;;  %1036 = vmatpush1.msra.mxu0 %v4892_v8 }
  0xb9   : > { %1283 = vmatpush1.msra.mxu1 %v4756_v4  ;;  %1039 = vmatprep.subr.mxu0 %v4903_v42 }
  0xba   : > { %1285 = vmatprep.subr.mxu1 %v4758_v5  ;;  %1042 = vmatpush1.msra.mxu0 %v4915_v48  ;;  %v7100_v48 = vld [vmem:[#allocation52_spill] sm:$0xff] }
  0xbb   : > { %1287 = vmatpush1.msra.mxu1 %v4760_v9  ;;  %1045 = vmatprep.subr.mxu0 %v4929_v57  ;;  %v7085_v57 = vld [vmem:[#allocation77_spill] sm:$0xff]  ;;  %v7089_v9 = vld [vmem:[#allocation46_spill] sm:$0xff] }
  0xbc   : > { %1289 = vmatprep.subr.mxu1 %v4762_v10  ;;  %1048 = vmatpush1.msra.mxu0 %v4941_v6  ;;  %v7084_v10 = vld [vmem:[#allocation42_spill] sm:$0xff] }
  0xbd   : > { %1291 = vmatpush1.msra.mxu1 %v4764_v11  ;;  %1051 = vmatprep.subr.mxu0 %v4962_v54  ;;  %v7073_v54 = vld [vmem:[#allocation36_spill] sm:$0xff]  ;;  %v7078_v11 = vld [vmem:[#allocation38_spill] sm:$0xff] }
  0xbe   : > { %1293 = vmatprep.subr.mxu1 %v4767_v15  ;;  %1054 = vmatpush1.msra.mxu0 %v4975_v63  ;;  %v7068_v63 = vld [vmem:[#allocation32_spill] sm:$0xff]  ;;  %v7072_v15 = vld [vmem:[#allocation69_spill] sm:$0xff] }
  0xbf   : > { %1295 = vmatpush1.msra.mxu1 %v4769_v16  ;;  %1057 = vmatprep.subr.mxu0 %v4993_v55  ;;  %v7066_v55 = vld [vmem:[#allocation65_spill] sm:$0xff]  ;;  %v230_v16 = vld [vmem:[%s4744_s5 + $0x48] sm:$0xff] }
  0xc0   : > { %1297 = vmatprep.subr.mxu1 %v4771_v17  ;;  %1060 = vmatpush1.msra.mxu0 %v5006_v58  ;;  %v7056_v58 = vld [vmem:[#allocation26_spill] sm:$0xff]  ;;  %v7063_v17 = vld [vmem:[#allocation63_spill] sm:$0xff] }
  0xc1   : > { %1299 = vmatpush1.msra.mxu1 %v4784_v22  ;;  %1063 = vmatprep.subr.mxu0 %v5018_v60  ;;  %v228_v60 = vld [vmem:[%s4744_s5 + $0x38] sm:$0xff]  ;;  %v7053_v22 = vld [vmem:[#allocation55_spill] sm:$0xff] }
  0xc2   : > { %1301 = vmatprep.subr.mxu1 %v7040_v53  ;;  %1066 = vmatpush1.msra.mxu0 %v7041_v19  ;;  %v7048_v19 = vld [vmem:[#allocation51_spill] sm:$0xff] }
  0xc3   : > { %1303 = vmatpush1.msra.mxu1 %v7042_v44  ;;  %1069 = vmatprep.subr.mxu0 %v7043_v49  ;;  %v7050_v53 = vld [vmem:[#allocation23_spill] sm:$0xff]  ;;  %v7051_v44 = vld [vmem:[#allocation53_spill] sm:$0xff]  ;;  %v5707_v49 = vsub.f32 %v225_v29, %v5689_v24  ;;  %v7065_v29 = vld [vmem:[#allocation30_spill] sm:$0xff] }
  0xc4   : > { %1305 = vmatprep.subr.mxu1 %v7045_v12  ;;  %1072 = vmatpush1.msra.mxu0 %v7046_v7  ;;  %v7052_v12 = vld [vmem:[#allocation24_spill] sm:$0xff]  ;;  %v7054_v7 = vld [vmem:[#allocation25_spill] sm:$0xff] }
  0xc5   : > { %1307 = vmatpush1.msra.mxu1 %v7047_v28  ;;  %1075 = vmatprep.subr.mxu0 %v7048_v19  ;;  %v7055_v28 = vld [vmem:[#allocation57_spill] sm:$0xff]  ;;  %v7062_v19 = vld [vmem:[#allocation28_spill] sm:$0xff] }
  0xc6   : > { %1309 = vmatprep.subr.mxu1 %v7050_v53  ;;  %1078 = vmatpush1.msra.mxu0 %v7051_v44  ;;  %v227_v53 = vld [vmem:[%s4744_s5 + $0x30] sm:$0xff]  ;;  %v7057_v44 = vld [vmem:[#allocation59_spill] sm:$0xff] }
  0xc7   : > { %1311 = vmatpush1.msra.mxu1 %v7052_v12  ;;  %1081 = vmatprep.subr.mxu0 %v7053_v22  ;;  %v5709_v12 = vand.u32 4294901760, %v228_v60  ;;  %v7059_v22 = vld [vmem:[#allocation27_spill] sm:$0xff] }
  0xc8   : > { %1313 = vmatprep.subr.mxu1 %v7054_v7  ;;  %1084 = vmatpush1.msra.mxu0 %v7055_v28  ;;  %v7061_v7 = vand.u32 4294901760, %v5675_v2 }
  0xc9   : > { %1315 = vmatpush1.msra.mxu1 %v7056_v58  ;;  %1087 = vmatprep.subr.mxu0 %v7057_v44  ;;  %7058 = vst [vmem:[#allocation116_spill] sm:$0xff] %v5709_v12  ;;  %v5719_v58 = vand.u32 4294901760, %v227_v53  ;;  %v7071_v44 = vld [vmem:[#allocation34_spill] sm:$0xff] }
  0xca   : > { %1317 = vmatprep.subr.mxu1 %v7059_v22  ;;  %1090 = vmatpush1.msra.mxu0 %v7060_v14  ;;  %v448_v28 = vsub.f32 %v5675_v2, %v7061_v7  ;;  %v7067_v22 = vand.u32 4294901760, %v5685_v51  ;;  %v7069_v7 = vld [vmem:[#allocation67_spill] sm:$0xff] }
  0xcb   : > { %1319 = vmatpush1.msra.mxu1 %v7062_v19  ;;  %1093 = vmatprep.subr.mxu0 %v7063_v17  ;;  %7064 = vst [vmem:[#allocation117_spill] sm:$0xff] %v5719_v58  ;;  %v5731_v17 = vsub.f32 %v228_v60, %v5709_v12  ;;  %v5742_v19 = vsub.f32 %v227_v53, %v5719_v58  ;;  %v5744_v60 = vand.u32 4294901760, %v230_v16 }
  0xcc   : > { %1321 = vmatprep.subr.mxu1 %v7065_v29  ;;  %1096 = vmatpush1.msra.mxu0 %v7066_v55  ;;  %v454_v14 = vsub.f32 %v5685_v51, %v7067_v22  ;;  %v449_v29 = vand.u32 4294901760, %v448_v28  ;;  %v229_v55 = vld [vmem:[%s4744_s5 + $0x40] sm:$0xff]  ;;  %v7074_v22 = vld [vmem:[#allocation71_spill] sm:$0xff] }
  0xcd   : > { %1323 = vmatpush1.msra.mxu1 %v7068_v63  ;;  %1099 = vmatprep.subr.mxu0 %v7069_v7  ;;  %7070 = vst [vmem:[#allocation118_spill] sm:$0xff] %v5731_v17  ;;  %v7075_v63 = vand.u32 4294901760, %v5698_v52  ;;  %7076 = vst [vmem:[#allocation119_spill] sm:$0xff] %v5742_v19  ;;  %v5754_v53 = vand.u32 4294901760, %v229_v55 }
  0xce   : > { %1325 = vmatprep.subr.mxu1 %v7071_v44  ;;  %1102 = vmatpush1.msra.mxu0 %v7072_v15  ;;  %7077 = vst [vmem:[#allocation120_spill] sm:$0xff] %v5744_v60  ;;  %v7079_v44 = vld [vmem:[#allocation73_spill] sm:$0xff]  ;;  %v455_v28 = vand.u32 4294901760, %v454_v14  ;;  %v7080_v15 = vld [vmem:[#allocation40_spill] sm:$0xff] }
  0xcf   : > { %1327 = vmatpush1.msra.mxu1 %v7073_v54  ;;  %1105 = vmatprep.subr.mxu0 %v7074_v22  ;;  %v464_v7 = vsub.f32 %v5698_v52, %v7075_v63  ;;  %v7081_v54 = vld [vmem:[#allocation75_spill] sm:$0xff]  ;;  %v7082_v22 = vand.u32 4294901760, %v5707_v49  ;;  %7083 = vst [vmem:[#allocation121_spill] sm:$0xff] %v5754_v53  ;;  %v7086_v14 = vld [vmem:[#allocation44_spill] sm:$0xff] }
  0xd0   : > { %1329 = vmatprep.subr.mxu1 %v7078_v11  ;;  %1108 = vmatpush2.msra.mxu0 %v7079_v44  ;;  %v232_v11 = vld [vmem:[%s4744_s5 + $0x58] sm:$0xff]  ;;  %v231_v63 = vld [vmem:[%s4744_s5 + $0x50] sm:$0xff] }
  0xd1   : > { %1331 = vmatpush1.msra.mxu1 %v7080_v15  ;;  %1111 = vmatprep.subr.mxu0 %v7081_v54  ;;  %v470_v6 = vsub.f32 %v5707_v49, %v7082_v22  ;;  %v465_v44 = vand.u32 4294901760, %v464_v7  ;;  %v5762_v54 = vsub.f32 %v230_v16, %v5744_v60  ;;  %v7088_v22 = vld [vmem:[#allocation79_spill] sm:$0xff]  ;;  %v5772_v7 = vsub.f32 %v229_v55, %v5754_v53  ;;  %v7094_v16 = vld [vmem:[#allocation48_spill] sm:$0xff]  ;;  %v7099_v55 = vld [vmem:[#allocation85_spill] sm:$0xff] }
  0xd2   : > { %1333 = vmatprep.subr.mxu1 %v7084_v10  ;;  %450 = vmatprep.mubr.f32.mxu0 %v449_v29  ;;  %v7090_v10 = vld [vmem:[#allocation81_spill] sm:$0xff]  ;;  %v5774_v15 = vand.u32 4294901760, %v232_v11 }
  0xd3   : > { %1114 = vmatpush2.msra.mxu0 %v7085_v57  ;;  %1335 = vmatpush1.msra.mxu1 %v7086_v14  ;;  %7087 = vst [vmem:[#allocation122_spill] sm:$0xff] %v5762_v54  ;;  %v471_v29 = vand.u32 4294901760, %v470_v6  ;;  %v7091_v57 = vand.u32 4294901760, %v5731_v17  ;;  %7092 = vst [vmem:[#allocation123_spill] sm:$0xff] %v5772_v7 }
  0xd4   : > { %456 = vmatmul.mubr.f32.gmra.mxu0 %v455_v28  ;;  %1117 = vmatprep.subr.mxu0 %v7088_v22  ;;  %7093 = vst [vmem:[#allocation124_spill] sm:$0xff] %v5774_v15  ;;  %v7095_v28 = vld [vmem:[#allocation83_spill] sm:$0xff]  ;;  %v7096_v22 = vld [vmem:[#allocation50_spill] sm:$0xff] }
  0xd5   : > { %1337 = vmatprep.subr.mxu1 %v7089_v9  ;;  %1120 = vmatpush2.msra.mxu0 %v7090_v10  ;;  %v480_v14 = vsub.f32 %v5731_v17, %v7091_v57  ;;  %v7097_v10 = vand.u32 4294901760, %v5742_v19  ;;  %v5783_v57 = vand.u32 4294901760, %v231_v63  ;;  %v234_v17 = vld [vmem:[%s4744_s5 + $0x68] sm:$0xff]  ;;  %v233_v9 = vld [vmem:[%s4744_s5 + $0x60] sm:$0xff] }
  0xd6   : > { %1339 = vmatpush1.msra.mxu1 %v7094_v16  ;;  %1123 = vmatprep.subr.mxu0 %v7095_v28  ;;  %v7101_v16 = vld [vmem:[#allocation87_spill] sm:$0xff] }
  0xd7   : > { %1341 = vmatprep.subr.mxu1 %v7096_v22  ;;  %466 = vmatprep.mubr.f32.mxu0 %v465_v44  ;;  %v486_v6 = vsub.f32 %v5742_v19, %v7097_v10  ;;  %7098 = vst [vmem:[#allocation125_spill] sm:$0xff] %v5783_v57  ;;  %v481_v28 = vand.u32 4294901760, %v480_v14  ;;  %v5791_v44 = vsub.f32 %v232_v11, %v5774_v15  ;;  %v7102_v10 = vld [vmem:[#allocation54_spill] sm:$0xff]  ;;  %v5804_v11 = vand.u32 4294901760, %v234_v17  ;;  %v236_v19 = vld [vmem:[%s4744_s5 + $0x78] sm:$0xff] }
  0xd8   : > { %1126 = vmatpush2.msra.mxu0 %v7099_v55  ;;  %1343 = vmatpush1.msra.mxu1 %v7100_v48  ;;  %v7103_v55 = vld [vmem:[#allocation89_spill] sm:$0xff]  ;;  %v5802_v22 = vsub.f32 %v231_v63, %v5783_v57 }
  0xd9   : > { %472 = vmatmul.mubr.f32.gmra.mxu0 %v471_v29  ;;  %951 = vmatprep.mubr.f32.mxu1 %v5661_v62  ;;  %v487_v48 = vand.u32 4294901760, %v486_v6  ;;  %v7104_v29 = vand.u32 4294901760, %v5762_v54  ;;  %7105 = vst [vmem:[#allocation126_spill] sm:$0xff] %v5804_v11  ;;  %v7106_v62 = vld [vmem:[#allocation56_spill] sm:$0xff]  ;;  %v7111_v63 = vld [vmem:[#allocation93_spill] sm:$0xff] }
  0xda   : > { %1129 = vmatprep.subr.mxu0 %v7101_v16  ;;  %1345 = vmatprep.subr.mxu1 %v7102_v10  ;;  %v7107_v16 = vld [vmem:[#allocation91_spill] sm:$0xff]  ;;  %v7108_v10 = vld [vmem:[#allocation58_spill] sm:$0xff] }
  0xdb   : > { %953 = vmatmul.mubr.f32.gmra.mxu1 %v5667_v33  ;;  %1132 = vmatpush2.msra.mxu0 %v7103_v55  ;;  %v496_v14 = vsub.f32 %v5762_v54, %v7104_v29  ;;  %v7109_v33 = vand.u32 4294901760, %v5772_v7  ;;  %v5813_v29 = vand.u32 4294901760, %v233_v9  ;;  %v7112_v54 = vld [vmem:[#allocation60_spill] sm:$0xff] }
  0xdc   : > { %1347 = vmatpush2.msra.mxu1 %v7106_v62  ;;  %1135 = vmatprep.subr.mxu0 %v7107_v16  ;;  %v7113_v62 = vld [vmem:[#allocation95_spill] sm:$0xff]  ;;  %v235_v55 = vld [vmem:[%s4744_s5 + $0x70] sm:$0xff] }
  0xdd   : > { %1349 = vmatprep.subr.mxu1 %v7108_v10  ;;  %482 = vmatprep.mubr.f32.mxu0 %v481_v28  ;;  %v502_v6 = vsub.f32 %v5772_v7, %v7109_v33  ;;  %7110 = vst [vmem:[#allocation127_spill] sm:$0xff] %v5813_v29  ;;  %v497_v16 = vand.u32 4294901760, %v496_v14  ;;  %v5821_v28 = vsub.f32 %v234_v17, %v5804_v11  ;;  %v7114_v33 = vld [vmem:[#allocation62_spill] sm:$0xff]  ;;  %v5834_v10 = vand.u32 4294901760, %v236_v19  ;;  %v7118_v17 = vld [vmem:[#allocation64_spill] sm:$0xff] }
  0xde   : > { %1138 = vmatpush2.msra.mxu0 %v7111_v63  ;;  %1351 = vmatpush2.msra.mxu1 %v7112_v54  ;;  %v7115_v63 = vld [vmem:[#allocation97_spill] sm:$0xff]  ;;  %v5832_v14 = vsub.f32 %v233_v9, %v5813_v29  ;;  %v5843_v7 = vand.u32 4294901760, %v235_v55  ;;  %v7123_v9 = vld [vmem:[#allocation68_spill] sm:$0xff] }
  0xdf   : > { %488 = vmatmul.mubr.f32.gmra.mxu0 %v487_v48  ;;  %959 = vmatprep.mubr.f32.mxu1 %v5680_v41  ;;  %v503_v54 = vand.u32 4294901760, %v502_v6  ;;  %v7116_v48 = vand.u32 4294901760, %v5791_v44  ;;  %7117 = vst [vmem:[#allocation128_spill] sm:$0xff] %v5834_v10 }
  0xe0   : > { %1141 = vmatprep.subr.mxu0 %v7113_v62  ;;  %1353 = vmatprep.subr.mxu1 %v7114_v33  ;;  %v7119_v62 = vld [vmem:[#allocation99_spill] sm:$0xff]  ;;  %v7120_v33 = vld [vmem:[#allocation66_spill] sm:$0xff] }
  0xe1   : > { %961 = vmatmul.mubr.f32.gmra.mxu1 %v5689_v24  ;;  %1144 = vmatpush2.msra.mxu0 %v7115_v63  ;;  %v512_v41 = vsub.f32 %v5791_v44, %v7116_v48  ;;  %v7121_v24 = vand.u32 4294901760, %v5802_v22  ;;  %v7122_v48 = vld [vmem:[#allocation101_spill] sm:$0xff]  ;;  %v7126_v63 = vld [vmem:[#allocation104_spill] sm:$0xff] }
  0xe2   : > { %1355 = vmatpush2.msra.mxu1 %v7118_v17  ;;  %1147 = vmatprep.subr.mxu0 %v7119_v62  ;;  %v7128_v62 = vld [vmem:[#allocation72_spill] sm:$0xff] }
  0xe3   : > { %1357 = vmatprep.subr.mxu1 %v7120_v33  ;;  %498 = vmatprep.mubr.f32.mxu0 %v497_v16  ;;  %v518_v6 = vsub.f32 %v5802_v22, %v7121_v24  ;;  %v513_v17 = vand.u32 4294901760, %v512_v41  ;;  %v5850_v16 = vsub.f32 %v236_v19, %v5834_v10  ;;  %v7124_v33 = vld [vmem:[#allocation103_spill] sm:$0xff]  ;;  %v7125_v24 = vld [vmem:[#allocation70_spill] sm:$0xff]  ;;  %v5860_v41 = vsub.f32 %v235_v55, %v5843_v7 }
  0xe4   : > { %1150 = vmatpush2.msra.mxu0 %v7122_v48  ;;  %1359 = vmatpush2.msra.mxu1 %v7123_v9  ;;  %v7127_v9 = vand.u32 4294901760, %v5821_v28  ;;  %v7129_v19 = vld [vmem:[#allocation106_spill] sm:$0xff] }
  0xe5   : > { %504 = vmatmul.mubr.f32.gmra.mxu0 %v503_v54  ;;  %967 = vmatprep.mubr.f32.mxu1 %v5709_v12  ;;  %v519_v48 = vand.u32 4294901760, %v518_v6  ;;  %v7130_v12 = vld [vmem:[#allocation74_spill] sm:$0xff]  ;;  %v6881_v6 = vand.u32 4294901760, %v5850_v16 }
  0xe6   : > { %1153 = vmatprep.subr.mxu0 %v7124_v33  ;;  %1361 = vmatprep.subr.mxu1 %v7125_v24  ;;  %v528_v54 = vsub.f32 %v5821_v28, %v7127_v9  ;;  %v7131_v24 = vand.u32 4294901760, %v5832_v14  ;;  %v6884_v9 = vand.u32 4294901760, %v5860_v41 }
  0xe7   : > { %969 = vmatmul.mubr.f32.gmra.mxu1 %v5719_v58  ;;  %1156 = vmatpush2.msra.mxu0 %v7126_v63  ;;  %v7132_v63 = vld [vmem:[#allocation76_spill] sm:$0xff] }
  0xe8   : > { %1363 = vmatpush2.msra.mxu1 %v7128_v62  ;;  %1159 = vmatprep.subr.mxu0 %v7129_v19  ;;  %v534_v58 = vsub.f32 %v5832_v14, %v7131_v24  ;;  %v529_v55 = vand.u32 4294901760, %v528_v54  ;;  %v7133_v19 = vld [vmem:[#allocation109_spill] sm:$0xff]  ;;  %v544_v24 = vsub.f32 %v5850_v16, %v6881_v6  ;;  %v550_v54 = vsub.f32 %v5860_v41, %v6884_v9  ;;  %v7138_v6 = vld [vmem:[#allocation86_spill] sm:$0xff] }
  0xe9   : > { %1365 = vmatprep.subr.mxu1 %v7130_v12  ;;  %514 = vmatprep.mubr.f32.mxu0 %v513_v17  ;;  %v7134_v12 = vld [vmem:[#allocation78_spill] sm:$0xff] }
  0xea   : > { %1162 = vmatpush2.msra.mxu0 %v5481_v50  ;;  %1367 = vmatpush2.msra.mxu1 %v7132_v63  ;;  %v535_v17 = vand.u32 4294901760, %v534_v58  ;;  %v7135_v63 = vld [vmem:[#allocation80_spill] sm:$0xff]  ;;  %v545_v58 = vand.u32 4294901760, %v544_v24  ;;  %v7140_v9 = vld [vmem:[#allocation90_spill] sm:$0xff] }
  0xeb   : > { %520 = vmatmul.mubr.f32.gmra.mxu0 %v519_v48  ;;  %975 = vmatprep.mubr.f32.mxu1 %v5744_v60  ;;  %v7136_v48 = vld [vmem:[#allocation82_spill] sm:$0xff]  ;;  %v7139_v60 = vld [vmem:[#allocation88_spill] sm:$0xff] }
  0xec   : > { %1165 = vmatprep.subr.mxu0 %v7133_v19  ;;  %1369 = vmatprep.subr.mxu1 %v7134_v12  ;;  %v7142_v24 = vld [vmem:[#allocation94_spill] sm:$0xff] }
  0xed   : > { %977 = vmatmul.mubr.f32.gmra.mxu1 %v5754_v53  ;;  %1168 = vmatpush2.msra.mxu0 %v5507_v61  ;;  %v7137_v53 = vld [vmem:[#allocation84_spill] sm:$0xff] }
  0xee   : > { %1371 = vmatpush2.msra.mxu1 %v7135_v63  ;;  %1171 = vmatprep.subr.mxu0 %v5526_v46 }
  0xef   : > { %1373 = vmatprep.subr.mxu1 %v7136_v48  ;;  %530 = vmatprep.mubr.f32.mxu0 %v529_v55  ;;  %v551_v55 = vand.u32 4294901760, %v550_v54  ;;  %v7143_v54 = vld [vmem:[#allocation96_spill] sm:$0xff] }
  0xf0   : > { %1174 = vmatpush2.msra.mxu0 %v5538_v47  ;;  %1375 = vmatpush2.msra.mxu1 %v7137_v53 }
  0xf1   : > { %536 = vmatmul.mubr.f32.gmra.mxu0 %v535_v17  ;;  %983 = vmatprep.mubr.f32.mxu1 %v5774_v15  ;;  %v7141_v17 = vld [vmem:[#allocation92_spill] sm:$0xff]  ;;  %v7149_v15 = vld [vmem:[#allocation105_spill] sm:$0xff] }
  0xf2   : > { %1177 = vmatprep.subr.mxu0 %v5550_v20  ;;  %1377 = vmatprep.subr.mxu1 %v7138_v6 }
  0xf3   : > { %985 = vmatmul.mubr.f32.gmra.mxu1 %v5783_v57  ;;  %1180 = vmatpush2.msra.mxu0 %v5563_v27  ;;  %v7148_v57 = vand.u32 4294901760, %v4793_v25  ;;  %v7154_v25 = vand.u32 4294901760, %v4829_v40  ;;  %v7159_v40 = vand.u32 4294901760, %v4881_v0 }
  0xf4   : > { %1379 = vmatpush2.msra.mxu1 %v7139_v60  ;;  %1183 = vmatprep.subr.mxu0 %v5574_v30 }
  0xf5   : > { %1381 = vmatprep.subr.mxu1 %v7140_v9  ;;  %546 = vmatprep.mubr.f32.mxu0 %v545_v58  ;;  %v7144_v58 = vld [vmem:[#allocation98_spill] sm:$0xff] }
  0xf6   : > { %1186 = vmatpush2.msra.mxu0 %v5581_v13  ;;  %1383 = vmatpush2.msra.mxu1 %v7141_v17 }
  0xf7   : > { %552 = vmatmul.mubr.f32.gmra.mxu0 %v551_v55  ;;  %991 = vmatprep.mubr.f32.mxu1 %v5804_v11  ;;  %v7145_v55 = vld [vmem:[#allocation100_spill] sm:$0xff]  ;;  %v7147_v11 = vand.u32 4294901760, %v4787_v23  ;;  %v7153_v23 = vand.u32 4294901760, %v4816_v35  ;;  %v7157_v35 = vand.u32 4294901760, %v4869_v59  ;;  %v7162_v59 = vld [vmem:[#allocation118_spill] sm:$0xff] }
  0xf8   : > { %1189 = vmatprep.subr.mxu0 %v5597_v1  ;;  %1385 = vmatprep.subr.mxu1 %v7142_v24 }
  0xf9   : > { %993 = vmatmul.mubr.f32.gmra.mxu1 %v5813_v29  ;;  %1192 = vmatpush2.msra.mxu0 %v5607_v26  ;;  %v7146_v29 = vand.u32 4294901760, %v4774_v18  ;;  %v7152_v18 = vld [vmem:[#allocation108_spill] sm:$0xff] }
  0xfa   : > { %1387 = vmatpush2.msra.mxu1 %v7143_v54  ;;  %1195 = vmatprep.subr.mxu0 %v5616_v34 }
  0xfb   : > { %1389 = vmatprep.subr.mxu1 %v7144_v58  ;;  %1198 = vmatpush2.msra.mxu0 %v5623_v56 }
  0xfc   : > { %1201 = vmatprep.mubr.f32.mxu0 %v5558_v21  ;;  %1391 = vmatpush2.msra.mxu1 %v7145_v55 }
  0xfd   : > { %999 = vmatprep.mubr.f32.mxu1 %v5834_v10  ;;  %1204 = vmatmul.mubr.f32.vlgmr.msra.gmra.mxu0 %v5570_v32  ;;  %v7150_v10 = vld [vmem:[#allocation107_spill] sm:$0xff] }
  0xfe   : > { %1393 = vmatprep.subr.mxu1 %v5437_v43  ;;  %1508 = vmatprep.subr.mxu0 %v7146_v29  ;;  %v7151_v43 = vand.u32 4294901760, %v4807_v31  ;;  %v7156_v31 = vand.u32 4294901760, %v5558_v21  ;;  %v7161_v21 = vand.u32 4294901760, %v4903_v42  ;;  %v7166_v29 = vld [vmem:[#allocation12_spill] sm:$0xff] }
  0xff   : > { %1001 = vmatmul.mubr.f32.gmra.mxu1 %v5843_v7  ;;  %1512 = vmatpush1.msra.mxu0 %v7147_v11  ;;  %v7164_v11 = vld [vmem:[#allocation29_spill] sm:$0xff] }
 0x100   : > { %1395 = vmatpush2.msra.mxu1 %v5448_v37  ;;  %1516 = vmatprep.subr.mxu0 %v7148_v57  ;;  %v7155_v57 = vand.u32 4294901760, %v4843_v45  ;;  %v7160_v45 = vand.u32 4294901760, %v4892_v8  ;;  %v7165_v0 = vand.u32 4294901760, %v7164_v11  ;;  %v7168_v8 = vand.u32 4294901760, %v5685_v51 }
 0x101   : > { %1397 = vmatprep.subr.mxu1 %v7149_v15  ;;  %1211 = vmatprep.mubr.f32.mxu0 %v5675_v2  ;;  %v7184_v11 = vand.u32 4294901760, %v5707_v49 }
 0x102   : > { %1399 = vmatpush2.msra.mxu1 %v7150_v10  ;;  %1520 = vmatpush1.msra.mxu0 %v7151_v43  ;;  %v7158_v43 = vand.u32 4294901760, %v5570_v32  ;;  %v7163_v32 = vand.u32 4294901760, %v5675_v2  ;;  %v7174_v2 = vld [vmem:[#allocation14_spill] sm:$0xff] }
 0x103   : > { %1214 = vmatmul.mubr.f32.gmra.mxu0 %v5685_v51  ;;  %1401 = vmatprep.subr.mxu1 %v7152_v18  ;;  %v7179_v51 = vand.u32 4294901760, %v5698_v52 }
 0x104   : > { %1524 = vmatprep.subr.mxu0 %v7153_v23  ;;  %1403 = vmatpush2.msra.mxu1 %v5503_v36  ;;  %v7171_v23 = vld [vmem:[#allocation13_spill] sm:$0xff] }
 0x105   : > { %1528 = vmatpush1.msra.mxu0 %v7154_v25  ;;  %1405 = vmatprep.subr.mxu1 %v5516_v39 }
 0x106   : > { %1532 = vmatprep.subr.mxu0 %v7155_v57  ;;  %1221 = vmatprep.mubr.f32.mxu0 %v5698_v52  ;;  %v7175_v57 = vld [vmem:[#allocation35_spill] sm:$0xff]  ;;  %v7190_v52 = vld [vmem:[#allocation18_spill] sm:$0xff] }
 0x107   : > { %1407 = vmatpush2.msra.mxu1 %v5534_v38  ;;  %1411 = vmatprep.mubr.f32.mxu1 %v7156_v31  ;;  %v7176_v31 = vand.u32 4294901760, %v7175_v57 }
 0x108   : > { %1536 = vmatpush1.msra.mxu0 %v7157_v35  ;;  %1415 = vmatmul.mubr.f32.vlgmr.msra.gmra.mxu1 %v7158_v43  ;;  %v7177_v35 = vld [vmem:[#allocation15_spill] sm:$0xff]  ;;  %v7178_v43 = vld [vmem:[#allocation122_spill] sm:$0xff] }
 0x109   : > { %1224 = vmatmul.mubr.f32.gmra.mxu0 %v5707_v49  ;;  %1540 = vmatprep.subr.mxu0 %v7159_v40  ;;  %v7180_v40 = vld [vmem:[#allocation37_spill] sm:$0xff]  ;;  %v7194_v49 = vand.u32 4294901760, %v7162_v59 }
 0x10a   : > { %1827 = vmatprep.subr.mxu1 %v4754_v3  ;;  %1544 = vmatpush1.msra.mxu0 %v7160_v45  ;;  %v7167_v3 = vld [vmem:[#allocation119_spill] sm:$0xff]  ;;  %v7181_v45 = vand.u32 4294901760, %v7180_v40 }
 0x10b   : > { %1829 = vmatpush1.msra.mxu1 %v4756_v4  ;;  %1548 = vmatprep.subr.mxu0 %v7161_v21  ;;  %v7169_v4 = vld [vmem:[#allocation31_spill] sm:$0xff]  ;;  %v7182_v21 = vld [vmem:[#allocation16_spill] sm:$0xff] }
 0x10c   : > { %1831 = vmatprep.subr.mxu1 %v4758_v5  ;;  %1231 = vmatprep.mubr.f32.mxu0 %v7162_v59  ;;  %v7170_v42 = vand.u32 4294901760, %v7169_v4  ;;  %v7172_v5 = vld [vmem:[#allocation33_spill] sm:$0xff]  ;;  %v7204_v59 = vld [vmem:[#allocation22_spill] sm:$0xff] }
 0x10d   : > { %1423 = vmatprep.mubr.f32.mxu1 %v7163_v32  ;;  %1552 = vmatpush1.msra.mxu0 %v7165_v0  ;;  %v7173_v25 = vand.u32 4294901760, %v7172_v5  ;;  %v7183_v32 = vld [vmem:[#allocation123_spill] sm:$0xff]  ;;  %v7188_v4 = vld [vmem:[#allocation41_spill] sm:$0xff] }
 0x10e   : > { %1833 = vmatpush1.msra.mxu1 %v7166_v29  ;;  %1234 = vmatmul.mubr.f32.gmra.mxu0 %v7167_v3  ;;  %v7185_v0 = vld [vmem:[#allocation39_spill] sm:$0xff] }
 0x10f   : > { %1427 = vmatmul.mubr.f32.gmra.mxu1 %v7168_v8  ;;  %1556 = vmatprep.subr.mxu0 %v7170_v42  ;;  %v7186_v29 = vand.u32 4294901760, %v7185_v0  ;;  %v7187_v8 = vld [vmem:[#allocation17_spill] sm:$0xff]  ;;  %v7189_v42 = vand.u32 4294901760, %v7188_v4  ;;  %v7205_v0 = vld [vmem:[#allocation51_spill] sm:$0xff] }
 0x110   : > { %1835 = vmatprep.subr.mxu1 %v7171_v23  ;;  %1560 = vmatpush1.msra.mxu0 %v7173_v25  ;;  %v7191_v23 = vld [vmem:[#allocation43_spill] sm:$0xff]  ;;  %v7209_v4 = vld [vmem:[#allocation53_spill] sm:$0xff] }
 0x111   : > { %1837 = vmatpush1.msra.mxu1 %v7174_v2  ;;  %1564 = vmatprep.subr.mxu0 %v7176_v31  ;;  %v7192_v5 = vand.u32 4294901760, %v7191_v23  ;;  %v7193_v25 = vld [vmem:[#allocation19_spill] sm:$0xff]  ;;  %v7195_v2 = vld [vmem:[#allocation45_spill] sm:$0xff]  ;;  %v7197_v31 = vld [vmem:[#allocation20_spill] sm:$0xff]  ;;  %v7212_v23 = vand.u32 4294901760, %v7183_v32 }
 0x112   : > { %1839 = vmatprep.subr.mxu1 %v7177_v35  ;;  %1241 = vmatprep.mubr.f32.mxu0 %v7178_v43  ;;  %v7196_v57 = vand.u32 4294901760, %v7195_v2  ;;  %v7198_v35 = vand.u32 4294901760, %v7167_v3  ;;  %v7208_v3 = vand.u32 4294901760, %v7178_v43  ;;  %v7216_v2 = vld [vmem:[#allocation57_spill] sm:$0xff]  ;;  %v7218_v43 = vld [vmem:[#allocation26_spill] sm:$0xff] }
 0x113   : > { %1435 = vmatprep.mubr.f32.mxu1 %v7179_v51  ;;  %1568 = vmatpush1.msra.mxu0 %v7181_v45  ;;  %v7199_v51 = vld [vmem:[#allocation47_spill] sm:$0xff]  ;;  %v7201_v45 = vld [vmem:[#allocation21_spill] sm:$0xff] }
 0x114   : > { %1841 = vmatpush1.msra.mxu1 %v7182_v21  ;;  %1244 = vmatmul.mubr.f32.gmra.mxu0 %v7183_v32  ;;  %v7200_v40 = vand.u32 4294901760, %v7199_v51  ;;  %v7202_v21 = vld [vmem:[#allocation49_spill] sm:$0xff]  ;;  %v7221_v51 = vld [vmem:[#allocation27_spill] sm:$0xff]  ;;  %v7222_v32 = vand.u32 4294901760, %v5791_v44 }
 0x115   : > { %1439 = vmatmul.mubr.f32.gmra.mxu1 %v7184_v11  ;;  %1572 = vmatprep.subr.mxu0 %v7186_v29  ;;  %v7203_v11 = vand.u32 4294901760, %v7202_v21  ;;  %v7206_v29 = vand.u32 4294901760, %v7205_v0  ;;  %v7225_v21 = vld [vmem:[#allocation28_spill] sm:$0xff] }
 0x116   : > { %1843 = vmatprep.subr.mxu1 %v7187_v8  ;;  %1576 = vmatpush1.msra.mxu0 %v7189_v42  ;;  %v7207_v8 = vld [vmem:[#allocation23_spill] sm:$0xff]  ;;  %v7210_v42 = vand.u32 4294901760, %v7209_v4 }
 0x117   : > { %1845 = vmatpush1.msra.mxu1 %v7190_v52  ;;  %1580 = vmatprep.subr.mxu0 %v7192_v5  ;;  %v7211_v52 = vld [vmem:[#allocation24_spill] sm:$0xff]  ;;  %v7213_v5 = vld [vmem:[#allocation55_spill] sm:$0xff] }
 0x118   : > { %1847 = vmatprep.subr.mxu1 %v7193_v25  ;;  %1251 = vmatprep.mubr.f32.mxu0 %v5791_v44  ;;  %v7214_v25 = vand.u32 4294901760, %v7213_v5  ;;  %v7232_v44 = vld [vmem:[#allocation32_spill] sm:$0xff]  ;;  %v7233_v4 = vld [vmem:[#allocation67_spill] sm:$0xff] }
 0x119   : > { %1447 = vmatprep.mubr.f32.mxu1 %v7194_v49  ;;  %1584 = vmatpush1.msra.mxu0 %v7196_v57  ;;  %v7215_v49 = vld [vmem:[#allocation25_spill] sm:$0xff]  ;;  %v7217_v57 = vand.u32 4294901760, %v7216_v2  ;;  %v7241_v2 = vld [vmem:[#allocation71_spill] sm:$0xff] }
 0x11a   : > { %1849 = vmatpush1.msra.mxu1 %v7197_v31  ;;  %1254 = vmatmul.mubr.f32.gmra.mxu0 %v5802_v22  ;;  %v7219_v31 = vld [vmem:[#allocation59_spill] sm:$0xff] }
 0x11b   : > { %1451 = vmatmul.mubr.f32.gmra.mxu1 %v7198_v35  ;;  %1588 = vmatprep.subr.mxu0 %v7200_v40  ;;  %v7220_v35 = vand.u32 4294901760, %v7219_v31  ;;  %v7223_v40 = vld [vmem:[#allocation61_spill] sm:$0xff] }
 0x11c   : > { %1851 = vmatprep.subr.mxu1 %v7201_v45  ;;  %1592 = vmatpush1.msra.mxu0 %v7203_v11  ;;  %v7224_v45 = vand.u32 4294901760, %v7223_v40  ;;  %v7226_v11 = vand.u32 4294901760, %v5802_v22  ;;  %v7237_v22 = vld [vmem:[#allocation69_spill] sm:$0xff]  ;;  %v7249_v40 = vld [vmem:[#allocation42_spill] sm:$0xff] }
 0x11d   : > { %1853 = vmatpush1.msra.mxu1 %v7204_v59  ;;  %1596 = vmatprep.subr.mxu0 %v7206_v29  ;;  %v7227_v59 = vld [vmem:[#allocation63_spill] sm:$0xff]  ;;  %v7229_v29 = vld [vmem:[#allocation30_spill] sm:$0xff]  ;;  %v7238_v5 = vand.u32 4294901760, %v7237_v22  ;;  %v7244_v31 = vld [vmem:[#allocation73_spill] sm:$0xff] }
 0x11e   : > { %1855 = vmatprep.subr.mxu1 %v7207_v8  ;;  %1261 = vmatprep.mubr.f32.mxu0 %v5821_v28  ;;  %v7228_v0 = vand.u32 4294901760, %v7227_v59  ;;  %v7230_v8 = vld [vmem:[#allocation65_spill] sm:$0xff]  ;;  %v7254_v59 = vand.u32 4294901760, %v5860_v41 }
 0x11f   : > { %1459 = vmatprep.mubr.f32.mxu1 %v7208_v3  ;;  %1600 = vmatpush1.msra.mxu0 %v7210_v42  ;;  %v7231_v3 = vand.u32 4294901760, %v7230_v8  ;;  %v7234_v42 = vand.u32 4294901760, %v7233_v4  ;;  %v7257_v8 = vld [vmem:[#allocation46_spill] sm:$0xff]  ;;  %v7260_v4 = vld [vmem:[#allocation48_spill] sm:$0xff] }
 0x120   : > { %1857 = vmatpush1.msra.mxu1 %v7211_v52  ;;  %1264 = vmatmul.mubr.f32.gmra.mxu0 %v5832_v14  ;;  %v7235_v52 = vld [vmem:[#allocation34_spill] sm:$0xff] }
 0x121   : > { %1463 = vmatmul.mubr.f32.gmra.mxu1 %v7212_v23  ;;  %1604 = vmatprep.subr.mxu0 %v7214_v25  ;;  %v7236_v23 = vand.u32 4294901760, %v5821_v28  ;;  %v7239_v25 = vld [vmem:[#allocation36_spill] sm:$0xff]  ;;  %v7247_v28 = vld [vmem:[#allocation75_spill] sm:$0xff] }
 0x122   : > { %1859 = vmatprep.subr.mxu1 %v7215_v49  ;;  %1608 = vmatpush1.msra.mxu0 %v7217_v57  ;;  %v7240_v49 = vand.u32 4294901760, %v5832_v14  ;;  %v7242_v57 = vand.u32 4294901760, %v7241_v2  ;;  %v7251_v14 = vld [vmem:[#allocation77_spill] sm:$0xff] }
 0x123   : > { %1861 = vmatpush1.msra.mxu1 %v7218_v43  ;;  %1612 = vmatprep.subr.mxu0 %v7220_v35  ;;  %v7243_v43 = vld [vmem:[#allocation38_spill] sm:$0xff]  ;;  %v7245_v35 = vand.u32 4294901760, %v7244_v31  ;;  %v7270_v2 = vld [vmem:[#allocation89_spill] sm:$0xff]  ;;  %v7273_v31 = vld [vmem:[#allocation91_spill] sm:$0xff] }
 0x124   : > { %1863 = vmatprep.subr.mxu1 %v7221_v51  ;;  %1271 = vmatprep.mubr.f32.mxu0 %v5850_v16  ;;  %v7246_v51 = vld [vmem:[#allocation40_spill] sm:$0xff] }
 0x125   : > { %1471 = vmatprep.mubr.f32.mxu1 %v7222_v32  ;;  %1616 = vmatpush1.msra.mxu0 %v7224_v45  ;;  %v7248_v32 = vand.u32 4294901760, %v7247_v28  ;;  %v7250_v45 = vand.u32 4294901760, %v5850_v16  ;;  %v7261_v16 = vld [vmem:[#allocation83_spill] sm:$0xff]  ;;  %v7276_v28 = vld [vmem:[#allocation93_spill] sm:$0xff] }
 0x126   : > { %1865 = vmatpush1.msra.mxu1 %v7225_v21  ;;  %1274 = vmatmul.mubr.f32.gmra.mxu0 %v5860_v41  ;;  %v7252_v21 = vand.u32 4294901760, %v7251_v14  ;;  %v7266_v41 = vld [vmem:[#allocation52_spill] sm:$0xff] }
 0x127   : > { %1475 = vmatmul.mubr.f32.gmra.mxu1 %v7226_v11  ;;  %1620 = vmatprep.subr.mxu0 %v7228_v0  ;;  %v7253_v11 = vld [vmem:[#allocation44_spill] sm:$0xff]  ;;  %v7255_v0 = vld [vmem:[#allocation79_spill] sm:$0xff] }
 0x128   : > { %1867 = vmatprep.subr.mxu1 %v7229_v29  ;;  %1624 = vmatpush1.msra.mxu0 %v7231_v3  ;;  %v7256_v29 = vand.u32 4294901760, %v7255_v0  ;;  %v7258_v3 = vld [vmem:[#allocation81_spill] sm:$0xff]  ;;  %v7284_v0 = vld [vmem:[#allocation64_spill] sm:$0xff] }
 0x129   : > { %1869 = vmatpush1.msra.mxu1 %v7232_v44  ;;  %1628 = vmatprep.subr.mxu0 %v7234_v42  ;;  %v7259_v44 = vand.u32 4294901760, %v7258_v3  ;;  %v7262_v42 = vand.u32 4294901760, %v7261_v16  ;;  %v7287_v3 = vld [vmem:[#allocation66_spill] sm:$0xff]  ;;  %v7290_v16 = vld [vmem:[#allocation68_spill] sm:$0xff] }
 0x12a   : > { %1871 = vmatprep.subr.mxu1 %v7235_v52  ;;  %1483 = vmatprep.mubr.f32.mxu1 %v7236_v23  ;;  %v7263_v52 = vld [vmem:[#allocation50_spill] sm:$0xff]  ;;  %v7264_v23 = vld [vmem:[#allocation85_spill] sm:$0xff] }
 0x12b   : > { %1632 = vmatpush1.msra.mxu0 %v7238_v5  ;;  %1873 = vmatpush1.msra.mxu1 %v7239_v25  ;;  %v7265_v22 = vand.u32 4294901760, %v7264_v23  ;;  %v7267_v5 = vld [vmem:[#allocation87_spill] sm:$0xff]  ;;  %v7293_v23 = vld [vmem:[#allocation104_spill] sm:$0xff] }
 0x12c   : > { %1487 = vmatmul.mubr.f32.gmra.mxu1 %v7240_v49  ;;  %1636 = vmatprep.subr.mxu0 %v7242_v57  ;;  %v7268_v25 = vand.u32 4294901760, %v7267_v5  ;;  %v7269_v49 = vld [vmem:[#allocation54_spill] sm:$0xff]  ;;  %v7271_v57 = vand.u32 4294901760, %v7270_v2  ;;  %v7299_v2 = vld [vmem:[#allocation76_spill] sm:$0xff] }
 0x12d   : > { %1875 = vmatprep.subr.mxu1 %v7243_v43  ;;  %1640 = vmatpush2.msra.mxu0 %v7245_v35  ;;  %v7272_v43 = vld [vmem:[#allocation56_spill] sm:$0xff]  ;;  %v7274_v35 = vand.u32 4294901760, %v7273_v31 }
 0x12e   : > { %1877 = vmatpush1.msra.mxu1 %v7246_v51  ;;  %1644 = vmatprep.subr.mxu0 %v7248_v32  ;;  %v7275_v51 = vld [vmem:[#allocation58_spill] sm:$0xff]  ;;  %v7277_v32 = vand.u32 4294901760, %v7276_v28 }
 0x12f   : > { %1879 = vmatprep.subr.mxu1 %v7249_v40  ;;  %1495 = vmatprep.mubr.f32.mxu1 %v7250_v45  ;;  %v7278_v40 = vld [vmem:[#allocation60_spill] sm:$0xff]  ;;  %v7279_v45 = vld [vmem:[#allocation95_spill] sm:$0xff] }
 0x130   : > { %1648 = vmatpush2.msra.mxu0 %v7252_v21  ;;  %1881 = vmatpush1.msra.mxu1 %v7253_v11  ;;  %v7280_v14 = vand.u32 4294901760, %v7279_v45  ;;  %v7281_v21 = vld [vmem:[#allocation62_spill] sm:$0xff]  ;;  %v7282_v11 = vld [vmem:[#allocation97_spill] sm:$0xff] }
 0x131   : > { %1499 = vmatmul.mubr.f32.gmra.mxu1 %v7254_v59  ;;  %1652 = vmatprep.subr.mxu0 %v7256_v29  ;;  %v7283_v59 = vand.u32 4294901760, %v7282_v11  ;;  %v7285_v29 = vld [vmem:[#allocation99_spill] sm:$0xff]  ;;  %v4581_v11 = vmov 0.0  }
 0x132   : > { %1883 = vmatprep.subr.mxu1 %v7257_v8  ;;  %1656 = vmatpush2.msra.mxu0 %v7259_v44  ;;  %v7286_v8 = vand.u32 4294901760, %v7285_v29  ;;  %v7288_v44 = vld [vmem:[#allocation101_spill] sm:$0xff] }
 0x133   : > { %1885 = vmatpush1.msra.mxu1 %v7260_v4  ;;  %1660 = vmatprep.subr.mxu0 %v7262_v42  ;;  %v7289_v4 = vand.u32 4294901760, %v7288_v44  ;;  %v7291_v42 = vand.u32 4294901760, %v7124_v33  ;;  %v7300_v33 = vand.u32 4294901760, %v7133_v19  ;;  %v7304_v19 = vand.u32 4294901760, %v5550_v20 }
 0x134   : > { %1887 = vmatprep.subr.mxu1 %v7263_v52  ;;  %1664 = vmatpush2.msra.mxu0 %v7265_v22  ;;  %v7292_v52 = vld [vmem:[#allocation70_spill] sm:$0xff]  ;;  %v7294_v22 = vand.u32 4294901760, %v7293_v23  ;;  %v7308_v20 = vand.u32 4294901760, %v5597_v1  ;;  %v7313_v1 = vld [vmem:[#allocation111_spill] sm:$0xff] }
 0x135   : > { %1889 = vmatpush1.msra.mxu1 %v7266_v41  ;;  %1668 = vmatprep.subr.mxu0 %v7268_v25  ;;  %v7295_v41 = vld [vmem:[#allocation106_spill] sm:$0xff] }
 0x136   : > { %1891 = vmatprep.subr.mxu1 %v7269_v49  ;;  %1672 = vmatpush2.msra.mxu0 %v7271_v57  ;;  %v7296_v5 = vand.u32 4294901760, %v7295_v41  ;;  %v7297_v25 = vld [vmem:[#allocation74_spill] sm:$0xff]  ;;  %v7298_v49 = vand.u32 4294901760, %v5481_v50  ;;  %v7301_v57 = vand.u32 4294901760, %v5507_v61  ;;  %v7303_v50 = vand.u32 4294901760, %v5538_v47 }
 0x137   : > { %1893 = vmatpush2.msra.mxu1 %v7272_v43  ;;  %1676 = vmatprep.subr.mxu0 %v7274_v35  ;;  %v7305_v61 = vand.u32 4294901760, %v5563_v27  ;;  %v7307_v47 = vand.u32 4294901760, %v5581_v13  ;;  %v7309_v27 = vand.u32 4294901760, %v5607_v26  ;;  %v7311_v13 = vand.u32 4294901760, %v5623_v56  ;;  %v7315_v26 = vld [vmem:[#allocation112_spill] sm:$0xff]  ;;  %v7317_v56 = vld [vmem:[#allocation114_spill] sm:$0xff] }
 0x138   : > { %1895 = vmatprep.subr.mxu1 %v7275_v51  ;;  %1680 = vmatpush2.msra.mxu0 %v7277_v32 }
 0x139   : > { %1897 = vmatpush2.msra.mxu1 %v7278_v40  ;;  %1684 = vmatprep.subr.mxu0 %v7280_v14 }
 0x13a   : > { %1899 = vmatprep.subr.mxu1 %v7281_v21  ;;  %1688 = vmatpush2.msra.mxu0 %v7283_v59 }
 0x13b   : > { %1901 = vmatpush2.msra.mxu1 %v7284_v0  ;;  %1692 = vmatprep.subr.mxu0 %v7286_v8 }
 0x13c   : > { %1903 = vmatprep.subr.mxu1 %v7287_v3  ;;  %1696 = vmatpush2.msra.mxu0 %v7289_v4 }
 0x13d   : > { %1905 = vmatpush2.msra.mxu1 %v7290_v16  ;;  %1700 = vmatprep.subr.mxu0 %v7291_v42 }
 0x13e   : > { %1907 = vmatprep.subr.mxu1 %v7292_v52  ;;  %1704 = vmatpush2.msra.mxu0 %v7294_v22 }
 0x13f   : > { %1909 = vmatpush2.msra.mxu1 %v7128_v62  ;;  %1708 = vmatprep.subr.mxu0 %v7296_v5  ;;  %v7302_v62 = vand.u32 4294901760, %v5526_v46  ;;  %v7306_v46 = vand.u32 4294901760, %v5574_v30  ;;  %v7310_v30 = vand.u32 4294901760, %v5616_v34  ;;  %v7316_v34 = vld [vmem:[#allocation113_spill] sm:$0xff] }
 0x140   : > { %1911 = vmatprep.subr.mxu1 %v7297_v25  ;;  %1712 = vmatpush2.msra.mxu0 %v7298_v49 }
 0x141   : > { %1913 = vmatpush2.msra.mxu1 %v7299_v2  ;;  %1716 = vmatprep.subr.mxu0 %v7300_v33 }
 0x142   : > { %1915 = vmatprep.subr.mxu1 %v7134_v12  ;;  %1720 = vmatpush2.msra.mxu0 %v7301_v57  ;;  %v7312_v12 = vld [vmem:[#allocation110_spill] sm:$0xff] }
 0x143   : > { %1917 = vmatpush2.msra.mxu1 %v7135_v63  ;;  %1724 = vmatprep.subr.mxu0 %v7302_v62  ;;  %v7325_v63 = vld [vmem:[#allocation126_spill] sm:$0xff] }
 0x144   : > { %1919 = vmatprep.subr.mxu1 %v7136_v48  ;;  %1728 = vmatpush2.msra.mxu0 %v7303_v50 }
 0x145   : > { %1921 = vmatpush2.msra.mxu1 %v7137_v53  ;;  %1732 = vmatprep.subr.mxu0 %v7304_v19  ;;  %v7320_v53 = vld [vmem:[#allocation117_spill] sm:$0xff] }
 0x146   : > { %1923 = vmatprep.subr.mxu1 %v7138_v6  ;;  %1736 = vmatpush2.msra.mxu0 %v7305_v61  ;;  %v7326_v6 = vld [vmem:[#allocation127_spill] sm:$0xff] }
 0x147   : > { %1925 = vmatpush2.msra.mxu1 %v7139_v60  ;;  %1740 = vmatprep.subr.mxu0 %v7306_v46  ;;  %v7314_v60 = vld [vmem:[#allocation102_spill] sm:$0xff] }
 0x148   : > { %1927 = vmatprep.subr.mxu1 %v7140_v9  ;;  %1744 = vmatpush2.msra.mxu0 %v7307_v47  ;;  %v7327_v9 = vld [vmem:[#allocation128_spill] sm:$0xff] }
 0x149   : > { %1929 = vmatpush2.msra.mxu1 %v7141_v17  ;;  %1748 = vmatprep.subr.mxu0 %v7308_v20 }
 0x14a   : > { %1931 = vmatprep.subr.mxu1 %v7142_v24  ;;  %1752 = vmatpush2.msra.mxu0 %v7309_v27 }
 0x14b   : > { %1933 = vmatpush2.msra.mxu1 %v7143_v54  ;;  %1756 = vmatprep.subr.mxu0 %v7310_v30 }
 0x14c   : > { %1935 = vmatprep.subr.mxu1 %v7144_v58  ;;  %1760 = vmatpush2.msra.mxu0 %v7311_v13 }
 0x14d   : > { %1762 = vmatprep.mubr.f32.mxu0 %v7312_v12  ;;  %1937 = vmatpush2.msra.mxu1 %v7145_v55 }
 0x14e   : > { %1764 = vmatmul.mubr.f32.vlgmr.msra.gmra.mxu0 %v7313_v1  ;;  %1939 = vmatprep.subr.mxu1 %v7314_v60 }
 0x14f   : > { %1941 = vmatpush2.msra.mxu1 %v5448_v37  ;;  %1770 = vmatprep.mubr.f32.mxu0 %v7315_v26  ;;  %v7318_v37 = vld [vmem:[#allocation115_spill] sm:$0xff] }
 0x150   : > { %1943 = vmatprep.subr.mxu1 %v7149_v15  ;;  %1955 = vmatprep.mubr.f32.mxu1 %v7312_v12  ;;  %v7319_v15 = vld [vmem:[#allocation116_spill] sm:$0xff] }
 0x151   : > { %1945 = vmatpush2.msra.mxu1 %v7150_v10  ;;  %v7321_v10 = vld [vmem:[#allocation120_spill] sm:$0xff] }
 0x152   : > { %1772 = vmatmul.mubr.f32.gmra.mxu0 %v7316_v34  ;;  %1947 = vmatprep.subr.mxu1 %v7152_v18 }
 0x153   : > { %1949 = vmatpush2.msra.mxu1 %v5503_v36  ;;  %1778 = vmatprep.mubr.f32.mxu0 %v7317_v56  ;;  %v7322_v36 = vld [vmem:[#allocation121_spill] sm:$0xff] }
 0x154   : > { %1951 = vmatprep.subr.mxu1 %v5516_v39  ;;  %v7323_v39 = vld [vmem:[#allocation124_spill] sm:$0xff] }
 0x155   : > { %1953 = vmatpush2.msra.mxu1 %v5534_v38  ;;  %v7324_v38 = vld [vmem:[#allocation125_spill] sm:$0xff] }
 0x156   : > { %1780 = vmatmul.mubr.f32.gmra.mxu0 %v7318_v37  ;;  %1957 = vmatmul.mubr.f32.vlgmr.msra.gmra.mxu1 %v7313_v1 }
 0x157   : > { %1786 = vmatprep.mubr.f32.mxu0 %v7319_v15  ;;  %1963 = vmatprep.mubr.f32.mxu1 %v7315_v26 }
 0x15a   : > { %1788 = vmatmul.mubr.f32.gmra.mxu0 %v7320_v53  ;;  %1965 = vmatmul.mubr.f32.gmra.mxu1 %v7316_v34 }
 0x15b   : > { %1794 = vmatprep.mubr.f32.mxu0 %v7321_v10  ;;  %1971 = vmatprep.mubr.f32.mxu1 %v7317_v56 }
 0x15e   : > { %1796 = vmatmul.mubr.f32.gmra.mxu0 %v7322_v36  ;;  %1973 = vmatmul.mubr.f32.gmra.mxu1 %v7318_v37 }
 0x15f   : > { %1802 = vmatprep.mubr.f32.mxu0 %v7323_v39  ;;  %1979 = vmatprep.mubr.f32.mxu1 %v7319_v15 }
 0x162   : > { %1804 = vmatmul.mubr.f32.gmra.mxu0 %v7324_v38  ;;  %1981 = vmatmul.mubr.f32.gmra.mxu1 %v7320_v53 }
 0x163   : > { %1810 = vmatprep.mubr.f32.mxu0 %v7325_v63  ;;  %1987 = vmatprep.mubr.f32.mxu1 %v7321_v10 }
 0x166   : > { %1812 = vmatmul.mubr.f32.gmra.mxu0 %v7326_v6  ;;  %1989 = vmatmul.mubr.f32.gmra.mxu1 %v7322_v36 }
 0x167   : > { %1818 = vmatprep.mubr.f32.mxu0 %v7327_v9  ;;  %1995 = vmatprep.mubr.f32.mxu1 %v7323_v39 }
 0x16a   : > { %1820 = vmatmul.mubr.f32.gmra.mxu0 %v5843_v7  ;;  %1997 = vmatmul.mubr.f32.gmra.mxu1 %v7324_v38 }
 0x16b   : > { %2003 = vmatprep.mubr.f32.mxu1 %v7325_v63  ;;  %2096 = vmatprep.mubr.f32.mxu0 %v4581_v11 }
 0x16e   : > { %2005 = vmatmul.mubr.f32.gmra.mxu1 %v7326_v6 }
 0x16f   : > { %2011 = vmatprep.mubr.f32.mxu1 %v7327_v9  ;;  %v441_v48 = vpop.f32.mrf.mxu0 }
 0x171   : > { %v6192_v54 = vpop.f32.mrf.mxu0 }
 0x172   : > { %2013 = vmatmul.mubr.f32.gmra.mxu1 %v5843_v7 }
 0x173   : > { %2203 = vmatprep.mubr.f32.mxu1 %v4581_v11 }
 0x177   : > { %v946_v17 = vpop.f32.mrf.mxu1 }
 0x178   : > { %v6190_v24 = vadd.f32 %v946_v17, %v441_v48 }
 0x179   : > { %v6198_v18 = vpop.f32.mrf.mxu1 }
 0x194   : > { %v6194_v58 = vpop.f32.mrf.mxu0 }
 0x196   : > { %v6196_v55 = vpop.f32.mrf.mxu0 }
 0x199   : > { %v473_v43 = vpop.f32.mrf.mxu0 }
 0x19b   : > { %v6200_v31 = vpop.f32.mrf.mxu1  ;;  %v475_v35 = vpop.f32.mrf.mxu0 }
 0x19d   : > { %v6202_v51 = vpop.f32.mrf.mxu1 }
 0x19f   : > { %v489_v28 = vpop.f32.mrf.mxu0 }
 0x1a1   : > { %v962_v7 = vpop.f32.mrf.mxu1  ;;  %v491_v32 = vpop.f32.mrf.mxu0 }
 0x1a2   : > { %v6204_v40 = vadd.f32 %v962_v7, %v473_v43 }
 0x1a3   : > { %v964_v45 = vpop.f32.mrf.mxu1 }
 0x1a4   : > { %v6206_v14 = vadd.f32 %v964_v45, %v475_v35 }
 0x1a5   : > { %v505_v21 = vpop.f32.mrf.mxu0 }
 0x1a7   : > { %v970_v59 = vpop.f32.mrf.mxu1  ;;  %v507_v0 = vpop.f32.mrf.mxu0 }
 0x1a8   : > { %v6210_v29 = vadd.f32 %v970_v59, %v489_v28 }
 0x1a9   : > { %v972_v8 = vpop.f32.mrf.mxu1 }
 0x1aa   : > { %v6212_v3 = vadd.f32 %v972_v8, %v491_v32 }
 0x1ab   : > { %v521_v44 = vpop.f32.mrf.mxu0 }
 0x1ad   : > { %v978_v4 = vpop.f32.mrf.mxu1  ;;  %v523_v16 = vpop.f32.mrf.mxu0 }
 0x1ae   : > { %v979_v42 = vadd.f32 %v978_v4, %v505_v21 }
 0x1af   : > { %v980_v52 = vpop.f32.mrf.mxu1 }
 0x1b0   : > { %v981_v23 = vadd.f32 %v980_v52, %v507_v0 }
 0x1b1   : > { %v537_v22 = vpop.f32.mrf.mxu0 }
 0x1b3   : > { %v986_v41 = vpop.f32.mrf.mxu1  ;;  %v539_v5 = vpop.f32.mrf.mxu0 }
 0x1b4   : > { %v987_v25 = vadd.f32 %v986_v41, %v521_v44 }
 0x1b5   : > { %v988_v49 = vpop.f32.mrf.mxu1 }
 0x1b6   : > { %v6214_v2 = vadd.f32 %v988_v49, %v523_v16 }
 0x1b7   : > { %v553_v33 = vpop.f32.mrf.mxu0 }
 0x1b9   : > { %v994_v57 = vpop.f32.mrf.mxu1  ;;  %v555_v62 = vpop.f32.mrf.mxu0 }
 0x1ba   : > { %v995_v50 = vadd.f32 %v994_v57, %v537_v22 }
 0x1bb   : > { %v996_v19 = vpop.f32.mrf.mxu1 }
 0x1bc   : > { %v997_v61 = vadd.f32 %v996_v19, %v539_v5 }
 0x1bd   : > { %v1205_v46 = vpop.f32.mrf.mxu0 }
 0x1bf   : > { %v1002_v47 = vpop.f32.mrf.mxu1  ;;  %v1207_v20 = vpop.f32.mrf.mxu0 }
 0x1c0   : > { %v1003_v27 = vadd.f32 %v1002_v47, %v553_v33 }
 0x1c1   : > { %v1004_v30 = vpop.f32.mrf.mxu1 }
 0x1c2   : > { %v1005_v13 = vadd.f32 %v1004_v30, %v555_v62 }
 0x1c3   : > { %v1215_v12 = vpop.f32.mrf.mxu0 }
 0x1c5   : > { %v6216_v1 = vpop.f32.mrf.mxu0 }
 0x1c8   : > { %v1416_v60 = vpop.f32.mrf.mxu1 }
 0x1c9   : > { %v6218_v26 = vpop.f32.mrf.mxu0 }
 0x1ca   : > { %v1418_v56 = vpop.f32.mrf.mxu1 }
 0x1cb   : > { %v6220_v34 = vpop.f32.mrf.mxu0 }
 0x1ce   : > { %v6222_v37 = vpop.f32.mrf.mxu0 }
 0x1cf   : > { %v1428_v15 = vpop.f32.mrf.mxu1 }
 0x1d0   : > { %v6224_v53 = vpop.f32.mrf.mxu0 }
 0x1d1   : > { %v6226_v10 = vpop.f32.mrf.mxu1 }
 0x1d4   : > { %v1245_v36 = vpop.f32.mrf.mxu0 }
 0x1d5   : > { %v1246_v39 = vadd.f32 %v1245_v36, %v979_v42  ;;  %v6228_v38 = vpop.f32.mrf.mxu1  ;;  %v949_v36 = vadd.f32 %v6198_v18, %v6192_v54 }
 0x1d6   : > { %v1247_v63 = vpop.f32.mrf.mxu0 }
 0x1d7   : > { %v1248_v6 = vadd.f32 %v1247_v63, %v981_v23  ;;  %v6230_v9 = vpop.f32.mrf.mxu1 }
 0x1da   : > { %v1255_v48 = vpop.f32.mrf.mxu0 }
 0x1db   : > { %v1256_v17 = vadd.f32 %v1255_v48, %v987_v25  ;;  %v6232_v43 = vpop.f32.mrf.mxu1  ;;  %v955_v48 = vadd.f32 %v6200_v31, %v6194_v58 }
 0x1dc   : > { %v6234_v35 = vpop.f32.mrf.mxu0 }
 0x1dd   : > { %v6236_v28 = vpop.f32.mrf.mxu1 }
 0x1e0   : > { %v1265_v7 = vpop.f32.mrf.mxu0 }
 0x1e1   : > { %v1266_v32 = vadd.f32 %v1265_v7, %v995_v50  ;;  %v1464_v45 = vpop.f32.mrf.mxu1 }
 0x1e2   : > { %v6238_v21 = vadd.f32 %v1464_v45, %v1246_v39  ;;  %v1267_v59 = vpop.f32.mrf.mxu0  ;;  %v1206_v39 = vadd.f32 %v1205_v46, %v6190_v24 }
 0x1e3   : > { %v1268_v0 = vadd.f32 %v1267_v59, %v997_v61  ;;  %v1466_v8 = vpop.f32.mrf.mxu1  ;;  %v2019_v61 = vld [vmem:[#allocation7] sm:$0xff]  ;;  %v1216_v59 = vadd.f32 %v1215_v12, %v955_v48 }
 0x1e4   : > { %v6240_v44 = vadd.f32 %v1466_v8, %v1248_v6  ;;  %v1417_v7 = vadd.f32 %v1416_v60, %v1206_v39 }
 0x1e5   : > { %v1429_v46 = vadd.f32 %v1428_v15, %v1216_v59 }
 0x1e6   : > { %v1275_v4 = vpop.f32.mrf.mxu0 }
 0x1e7   : > { %v1276_v16 = vadd.f32 %v1275_v4, %v1003_v27  ;;  %v1476_v42 = vpop.f32.mrf.mxu1  ;;  %v2023_v27 = vsel %vm2021_vm0, %v2019_v61, 0  ;;  %v957_v4 = vadd.f32 %v6202_v51, %v6196_v55 }
 0x1e8   : > { %v6242_v52 = vadd.f32 %v1476_v42, %v1256_v17  ;;  %v1277_v23 = vpop.f32.mrf.mxu0  ;;  %v6257_v6 = vand.u32 4294901760, %v2023_v27  ;;  %v1208_v17 = vadd.f32 %v1207_v20, %v949_v36 }
 0x1e9   : > { %v1278_v22 = vadd.f32 %v1277_v23, %v1005_v13  ;;  %v6244_v41 = vpop.f32.mrf.mxu1  ;;  %v2020_v13 = vld [vmem:[#allocation7 + $0x8] sm:$0xff]  ;;  %v1218_v20 = vadd.f32 %v6216_v1, %v957_v4 }
 0x1ea   : > { %v6266_v24 = vsub.f32 %v2023_v27, %v6257_v6 }
 0x1eb   : > { %v1431_v42 = vadd.f32 %v6226_v10, %v1218_v20 }
 0x1ec   : > { %v1488_v5 = vpop.f32.mrf.mxu1  ;;  %v6275_v51 = vand.u32 4294901760, %v6266_v24 }
 0x1ed   : > { %v6246_v25 = vadd.f32 %v1488_v5, %v1266_v32  ;;  %v2026_v32 = vsel %vm2021_vm0, %v2020_v13, 0 }
 0x1ee   : > { %v1490_v49 = vpop.f32.mrf.mxu1  ;;  %v6268_v18 = vand.u32 4294901760, %v2026_v32 }
 0x1ef   : > { %v6248_v33 = vadd.f32 %v1490_v49, %v1268_v0  ;;  %v1419_v0 = vadd.f32 %v1418_v56, %v1208_v17  ;;  %v1238_v17 = vadd.f32 %v6224_v53, %v6212_v3 }
 0x1f1   : > { %v1500_v57 = vpop.f32.mrf.mxu1 }
 0x1f2   : > { %v6250_v62 = vadd.f32 %v1500_v57, %v1276_v16 }
 0x1f3   : > { %v1502_v50 = vpop.f32.mrf.mxu1 }
 0x1f4   : > { %v6252_v19 = vadd.f32 %v1502_v50, %v1278_v22  ;;  %v6278_v22 = vsub.f32 %v2026_v32, %v6268_v18 }
 0x1f6   : > { %v6292_v13 = vand.u32 4294901760, %v6278_v22 }
 0x20e   : > { %v1765_v47 = vpop.f32.mrf.mxu0 }
 0x20f   : > { %v1766_v8 = vadd.f32 %v1765_v47, %v1417_v7 }
 0x210   : > { %v1767_v30 = vpop.f32.mrf.mxu0 }
 0x211   : > { %v1768_v58 = vadd.f32 %v1767_v30, %v1419_v0  ;;  %v2100_v30 = vsub.f32 %v6266_v24, %v6275_v51 }
 0x212   : > { %v1773_v63 = vpop.f32.mrf.mxu0 }
 0x213   : > { %v1774_v12 = vadd.f32 %v1773_v63, %v1429_v46  ;;  %v6304_v0 = vand.u32 4294901760, %v2100_v30 }
 0x214   : > { %v1775_v45 = vpop.f32.mrf.mxu0 }
 0x215   : > { %v1776_v1 = vadd.f32 %v1775_v45, %v1431_v42 }
 0x216   : > { %v6263_v16 = vpop.f32.mrf.mxu0  ;;  %v1958_v54 = vpop.f32.mrf.mxu1 }
 0x217   : > { %v1959_v31 = vadd.f32 %v1958_v54, %v1766_v8  ;;  %v2111_v8 = vsub.f32 %v6278_v22, %v6292_v13  ;;  %v1455_v54 = vadd.f32 %v6236_v28, %v1238_v17 }
 0x218   : > { %v1960_v60 = vpop.f32.mrf.mxu1  ;;  %v6272_v23 = vpop.f32.mrf.mxu0 }
 0x219   : > { %v1961_v56 = vadd.f32 %v1960_v60, %v1768_v58  ;;  %v6280_v5 = vand.u32 4294901760, %v1959_v31  ;;  %v6315_v20 = vand.u32 4294901760, %v2111_v8 }
 0x21a   : > { %v1966_v55 = vpop.f32.mrf.mxu1  ;;  %v1789_v61 = vpop.f32.mrf.mxu0 }
 0x21b   : > { %v6282_v15 = vand.u32 4294901760, %v1961_v56  ;;  %v1967_v49 = vadd.f32 %v1966_v55, %v1774_v12  ;;  %v6295_v36 = vsub.f32 %v1959_v31, %v6280_v5  ;;  %v1236_v12 = vadd.f32 %v6222_v37, %v6210_v29 }
 0x21c   : > { %v1968_v57 = vpop.f32.mrf.mxu1  ;;  %v1791_v32 = vpop.f32.mrf.mxu0  ;;  %v1228_v55 = vadd.f32 %v6220_v34, %v6206_v14 }
 0x21d   : > { %v6284_v50 = vand.u32 4294901760, %v1967_v49  ;;  %v6287_v10 = vsub.f32 %v1961_v56, %v6282_v15  ;;  %v1969_v47 = vadd.f32 %v1968_v57, %v1776_v1  ;;  %v2167_v46 = vand.u32 4294901760, %v6295_v36 }
 0x21e   : > { %v1974_v27 = vpop.f32.mrf.mxu1  ;;  %v1792_v31 = vadd.f32 %v1791_v32, %v1455_v54  ;;  %v1226_v1 = vadd.f32 %v6218_v26, %v6204_v40  ;;  %v1453_v57 = vadd.f32 %v6232_v43, %v1236_v12  ;;  %v1443_v37 = vadd.f32 %v6230_v9, %v1228_v55 }
 0x21f   : > { %v2154_v39 = vsub.f32 %v1967_v49, %v6284_v50  ;;  %v6298_v63 = vand.u32 4294901760, %v1969_v47  ;;  %v2161_v4 = vand.u32 4294901760, %v6287_v10  ;;  %v2168_v56 = vsub.f32 %v6295_v36, %v2167_v46 }
 0x220   : > { %v1976_v48 = vpop.f32.mrf.mxu1  ;;  %v1441_v30 = vadd.f32 %v6228_v38, %v1226_v1  ;;  %v1790_v14 = vadd.f32 %v1789_v61, %v1453_v57  ;;  %v1784_v40 = vadd.f32 %v6272_v23, %v1443_v37 }
 0x221   : > { %v2155_v7 = vand.u32 4294901760, %v2154_v39  ;;  %v2148_v45 = vsub.f32 %v1969_v47, %v6298_v63  ;;  %2057 = vmatprep.subr.mxu0 %v6298_v63  ;;  %v2162_v28 = vsub.f32 %v6287_v10, %v2161_v4 }
 0x222   : > { %v1982_v59 = vpop.f32.mrf.mxu1  ;;  %2059 = vmatpush1.msra.mxu0 %v6284_v50  ;;  %v1782_v26 = vadd.f32 %v6263_v16, %v1441_v30  ;;  %v1977_v43 = vadd.f32 %v1976_v48, %v1784_v40 }
 0x223   : > { %2061 = vmatprep.subr.mxu0 %v6282_v15  ;;  %v2149_v53 = vand.u32 4294901760, %v2148_v45  ;;  %v2156_v58 = vsub.f32 %v2154_v39, %v2155_v7  ;;  %v2163_v47 = vand.u32 4294901760, %v2162_v28  ;;  %v1983_v9 = vadd.f32 %v1982_v59, %v1790_v14 }
 0x224   : > { %v1984_v3 = vpop.f32.mrf.mxu1  ;;  %2063 = vmatpush1.msra.mxu0 %v6280_v5  ;;  %v1975_v38 = vadd.f32 %v1974_v27, %v1782_v26  ;;  %v6347_v16 = vand.u32 4294901760, %v1977_v43 }
 0x225   : > { %2102 = vmatmul.mubr.f32.vlgmr.msra.gmra.mxu0 %v6304_v0  ;;  %2248 = vmatprep.subr.mxu0 %v2148_v45  ;;  %v2150_v60 = vsub.f32 %v2148_v45, %v2149_v53  ;;  %v1985_v42 = vadd.f32 %v1984_v3, %v1792_v31  ;;  %v2157_v29 = vand.u32 4294901760, %v2156_v58  ;;  %v6344_v23 = vand.u32 4294901760, %v1983_v9 }
 0x226   : > { %2251 = vmatpush1.msra.mxu0 %v2154_v39  ;;  %2107 = vmatprep.mubr.f32.mxu0 %v4581_v11  ;;  %v6351_v27 = vand.u32 4294901760, %v1975_v38  ;;  %v6356_v39 = vpop.f32.mrf.mxu0  ;;  %v6366_v17 = vsub.f32 %v1977_v43, %v6347_v16 }
 0x227   : > { %2254 = vmatprep.subr.mxu0 %v6287_v10  ;;  %v2151_v49 = vand.u32 4294901760, %v2150_v60  ;;  %v6332_v34 = vand.u32 4294901760, %v1985_v42  ;;  %v2169_v10 = vand.u32 4294901760, %v2168_v56  ;;  %v6361_v48 = vsub.f32 %v1983_v9, %v6344_v23 }
 0x228   : > { %2257 = vmatpush1.msra.mxu0 %v6295_v36  ;;  %v6372_v32 = vsub.f32 %v1975_v38, %v6351_v27  ;;  %v1799_v59 = vpop.f32.mrf.mxu0  ;;  %v1798_v1 = vadd.f32 %v6356_v39, %v6238_v21 }
 0x229   : > { %2113 = vmatmul.mubr.f32.gmra.mxu0 %v6315_v20  ;;  %2152 = vmatprep.subr.mxu1 %v2151_v49  ;;  %v6340_v61 = vsub.f32 %v1985_v42, %v6332_v34  ;;  %v1800_v49 = vadd.f32 %v1799_v59, %v6240_v44 }
 0x22a   : > { %2425 = vmatprep.subr.mxu0 %v2149_v53  ;;  %2158 = vmatpush1.msra.mxu1 %v2157_v29  ;;  %v2711_v54 = vand.u32 4294901760, %v6372_v32  ;;  %v1805_v3 = vpop.f32.mrf.mxu0  ;;  %v1258_v53 = vadd.f32 %v6234_v35, %v6214_v2 }
 0x22b   : > { %2164 = vmatprep.subr.mxu1 %v2163_v47  ;;  %2290 = vmatprep.mubr.f32.mxu0 %v4581_v11  ;;  %v2693_v36 = vand.u32 4294901760, %v6340_v61 }
 0x22c   : > { %2170 = vmatpush1.msra.mxu1 %v2169_v10  ;;  %v2712_v58 = vsub.f32 %v6372_v32, %v2711_v54  ;;  %v1807_v31 = vpop.f32.mrf.mxu0  ;;  %v1479_v60 = vadd.f32 %v6244_v41, %v1258_v53  ;;  %v1806_v41 = vadd.f32 %v1805_v3, %v6242_v52 }
 0x22d   : > { %2205 = vmatmul.mubr.f32.vlgmr.msra.gmra.mxu1 %v6257_v6  ;;  %2293 = vmatmul.mubr.f32.vlgmr.msra.gmra.mxu0 %v6266_v24  ;;  %v2694_v45 = vsub.f32 %v6340_v61, %v2693_v36 }
 0x22e   : > { %2336 = vmatprep.subr.mxu1 %v6298_v63  ;;  %2429 = vmatpush1.msra.mxu0 %v2155_v7  ;;  %v6368_v7 = vpop.f32.mrf.mxu1  ;;  %v1808_v42 = vadd.f32 %v1807_v31, %v1479_v60  ;;  %v2713_v2 = vand.u32 4294901760, %v2712_v58  ;;  %v6437_v14 = vpop.f32.mrf.mxu0 }
 0x22f   : > { %2338 = vmatpush1.msra.mxu1 %v6284_v50  ;;  %2433 = vmatprep.subr.mxu0 %v2161_v4  ;;  %v2705_v4 = vand.u32 4294901760, %v6366_v17  ;;  %v1991_v37 = vadd.f32 %v6368_v7, %v1798_v1 }
 0x230   : > { %2340 = vmatprep.subr.mxu1 %v6282_v15  ;;  %2437 = vmatpush1.msra.mxu0 %v2167_v46  ;;  %v1992_v8 = vpop.f32.mrf.mxu1  ;;  %v2695_v46 = vand.u32 4294901760, %v2694_v45  ;;  %v1815_v43 = vpop.f32.mrf.mxu0 }
 0x231   : > { %2210 = vmatprep.mubr.f32.mxu1 %v4581_v11  ;;  %2298 = vmatprep.mubr.f32.mxu0 %v4581_v11  ;;  %v1993_v29 = vadd.f32 %v1992_v8, %v1800_v49  ;;  %v6432_v47 = vand.u32 4294901760, %v1991_v37  ;;  %v1816_v3 = vadd.f32 %v1815_v43, %v6248_v33 }
 0x232   : > { %2342 = vmatpush1.msra.mxu1 %v6280_v5  ;;  %2601 = vmatprep.subr.mxu0 %v6332_v34 }
 0x233   : > { %2212 = vmatmul.mubr.f32.gmra.mxu1 %v6268_v18  ;;  %2301 = vmatmul.mubr.f32.gmra.mxu0 %v6278_v22  ;;  %v6428_v21 = vand.u32 4294901760, %v1993_v29  ;;  %v6450_v26 = vsub.f32 %v1991_v37, %v6432_v47 }
 0x234   : > { %2514 = vmatprep.subr.mxu1 %v6298_v63  ;;  %2375 = vmatprep.mubr.f32.mxu1 %v4581_v11  ;;  %v2699_v63 = vand.u32 4294901760, %v6361_v48 }
 0x235   : > { %2470 = vmatprep.mubr.f32.mxu0 %v4581_v11  ;;  %v6447_v40 = vsub.f32 %v1993_v29, %v6428_v21  ;;  %v3256_v39 = vand.u32 4294901760, %v6450_v26 }
 0x237   : > { %2379 = vmatmul.mubr.f32.vlgmr.msra.gmra.mxu1 %v6275_v51  ;;  %2472 = vmatmul.mubr.f32.vlgmr.msra.gmra.mxu0 %v6257_v6  ;;  %v3257_v7 = vsub.f32 %v6450_v26, %v3256_v39 }
 0x238   : > { %2516 = vmatpush1.msra.mxu1 %v6284_v50  ;;  %2603 = vmatpush1.msra.mxu0 %v6344_v23  ;;  %v2700_v50 = vsub.f32 %v6361_v48, %v2699_v63 }
 0x239   : > { %2518 = vmatprep.subr.mxu1 %v6282_v15  ;;  %2605 = vmatprep.subr.mxu0 %v6347_v16  ;;  %v1998_v15 = vpop.f32.mrf.mxu1 }
 0x23a   : > { %2520 = vmatpush1.msra.mxu1 %v6280_v5  ;;  %2607 = vmatpush1.msra.mxu0 %v6351_v27  ;;  %v2706_v5 = vsub.f32 %v6366_v17, %v2705_v4  ;;  %v2701_v28 = vand.u32 4294901760, %v2700_v50  ;;  %v1999_v57 = vadd.f32 %v1998_v15, %v1806_v41  ;;  %v1814_v50 = vadd.f32 %v6437_v14, %v6246_v25 }
 0x23b   : > { %2384 = vmatprep.mubr.f32.mxu1 %v4581_v11  ;;  %2477 = vmatprep.mubr.f32.mxu0 %v4581_v11  ;;  %v2000_v12 = vpop.f32.mrf.mxu1 }
 0x23c   : > { %2696 = vmatprep.subr.mxu1 %v2695_v46  ;;  %2792 = vmatprep.subr.mxu0 %v6340_v61  ;;  %v2707_v56 = vand.u32 4294901760, %v2706_v5  ;;  %v2001_v35 = vadd.f32 %v2000_v12, %v1808_v42  ;;  %v6425_v44 = vand.u32 4294901760, %v1999_v57 }
 0x23d   : > { %2388 = vmatmul.mubr.f32.gmra.mxu1 %v6292_v13  ;;  %2479 = vmatmul.mubr.f32.gmra.mxu0 %v6268_v18 }
 0x23e   : > { %2553 = vmatprep.mubr.f32.mxu1 %v4581_v11  ;;  %2640 = vmatprep.mubr.f32.mxu0 %v4581_v11  ;;  %v6410_v55 = vand.u32 4294901760, %v2001_v35  ;;  %v6442_v10 = vsub.f32 %v1999_v57, %v6425_v44 }
 0x240   : > { %v6421_v52 = vsub.f32 %v2001_v35, %v6410_v55  ;;  %v3244_v38 = vand.u32 4294901760, %v6442_v10 }
 0x241   : > { %2555 = vmatmul.mubr.f32.vlgmr.msra.gmra.mxu1 %v6257_v6  ;;  %2646 = vmatmul.mubr.f32.vlgmr.msra.gmra.mxu0 %v6304_v0 }
 0x242   : > { %2702 = vmatpush1.msra.mxu1 %v2701_v28  ;;  %2795 = vmatpush1.msra.mxu0 %v6361_v48  ;;  %v3238_v30 = vand.u32 4294901760, %v6421_v52 }
 0x243   : > { %2708 = vmatprep.subr.mxu1 %v2707_v56  ;;  %2798 = vmatprep.subr.mxu0 %v6366_v17  ;;  %v1821_v17 = vpop.f32.mrf.mxu0 }
 0x244   : > { %2714 = vmatpush1.msra.mxu1 %v2713_v2  ;;  %2801 = vmatpush1.msra.mxu0 %v6372_v32  ;;  %v3239_v9 = vsub.f32 %v6421_v52, %v3238_v30 }
 0x245   : > { %2560 = vmatprep.mubr.f32.mxu1 %v4581_v11  ;;  %2651 = vmatprep.mubr.f32.mxu0 %v4581_v11  ;;  %v1823_v32 = vpop.f32.mrf.mxu0 }
 0x246   : > { %2880 = vmatprep.subr.mxu1 %v6332_v34  ;;  %2969 = vmatprep.subr.mxu0 %v2693_v36  ;;  %v3250_v36 = vand.u32 4294901760, %v6447_v40  ;;  %v3240_v48 = vand.u32 4294901760, %v3239_v9  ;;  %v1824_v8 = vadd.f32 %v1823_v32, %v6252_v19  ;;  %v1822_v19 = vadd.f32 %v1821_v17, %v6250_v62 }
 0x247   : > { %2562 = vmatmul.mubr.f32.gmra.mxu1 %v6268_v18  ;;  %2657 = vmatmul.mubr.f32.gmra.mxu0 %v6315_v20 }
 0x248   : > { %2747 = vmatprep.mubr.f32.mxu1 %v4581_v11  ;;  %2834 = vmatprep.mubr.f32.mxu0 %v4581_v11 }
 0x24b   : > { %2749 = vmatmul.mubr.f32.vlgmr.msra.gmra.mxu1 %v6257_v6  ;;  %2837 = vmatmul.mubr.f32.vlgmr.msra.gmra.mxu0 %v6266_v24 }
 0x24c   : > { %2882 = vmatpush1.msra.mxu1 %v6344_v23  ;;  %2973 = vmatpush1.msra.mxu0 %v2699_v63 }
 0x24d   : > { %2884 = vmatprep.subr.mxu1 %v6347_v16  ;;  %2977 = vmatprep.subr.mxu0 %v2705_v4  ;;  %v3258_v4 = vand.u32 4294901760, %v3257_v7 }
 0x24e   : > { %2886 = vmatpush1.msra.mxu1 %v6351_v27  ;;  %2981 = vmatpush1.msra.mxu0 %v2711_v54 }
 0x24f   : > { %2754 = vmatprep.mubr.f32.mxu1 %v4581_v11  ;;  %2842 = vmatprep.mubr.f32.mxu0 %v4581_v11 }
 0x250   : > { %3058 = vmatprep.subr.mxu1 %v6332_v34  ;;  %3146 = vmatprep.subr.mxu0 %v6410_v55  ;;  %v2006_v34 = vpop.f32.mrf.mxu1 }
 0x251   : > { %2756 = vmatmul.mubr.f32.gmra.mxu1 %v6268_v18  ;;  %2845 = vmatmul.mubr.f32.gmra.mxu0 %v6278_v22  ;;  %v2007_v53 = vadd.f32 %v2006_v34, %v1814_v50 }
 0x252   : > { %2919 = vmatprep.mubr.f32.mxu1 %v4581_v11  ;;  %3014 = vmatprep.mubr.f32.mxu0 %v4581_v11  ;;  %v2008_v61 = vpop.f32.mrf.mxu1 }
 0x253   : > { %v2009_v5 = vadd.f32 %v2008_v61, %v1816_v3  ;;  %v6505_v33 = vand.u32 4294901760, %v2007_v53 }
 0x255   : > { %2923 = vmatmul.mubr.f32.vlgmr.msra.gmra.mxu1 %v6275_v51  ;;  %3016 = vmatmul.mubr.f32.vlgmr.msra.gmra.mxu0 %v6257_v6  ;;  %v6501_v25 = vand.u32 4294901760, %v2009_v5  ;;  %v3800_v12 = vsub.f32 %v2007_v53, %v6505_v33 }
 0x256   : > { %3060 = vmatpush1.msra.mxu1 %v6344_v23  ;;  %3148 = vmatpush1.msra.mxu0 %v6425_v44  ;;  %v3245_v23 = vsub.f32 %v6442_v10, %v3244_v38 }
 0x257   : > { %3062 = vmatprep.subr.mxu1 %v6347_v16  ;;  %3150 = vmatprep.subr.mxu0 %v6428_v21  ;;  %v2014_v16 = vpop.f32.mrf.mxu1  ;;  %v3794_v28 = vsub.f32 %v2009_v5, %v6501_v25  ;;  %v3801_v35 = vand.u32 4294901760, %v3800_v12 }
 0x258   : > { %3064 = vmatpush1.msra.mxu1 %v6351_v27  ;;  %3152 = vmatpush1.msra.mxu0 %v6432_v47  ;;  %v3251_v27 = vsub.f32 %v6447_v40, %v3250_v36  ;;  %v3246_v45 = vand.u32 4294901760, %v3245_v23  ;;  %v2015_v15 = vadd.f32 %v2014_v16, %v1822_v19 }
 0x259   : > { %2928 = vmatprep.mubr.f32.mxu1 %v4581_v11  ;;  %3021 = vmatprep.mubr.f32.mxu0 %v4581_v11  ;;  %v2016_v59 = vpop.f32.mrf.mxu1  ;;  %v3795_v2 = vand.u32 4294901760, %v3794_v28  ;;  %v3802_v1 = vsub.f32 %v3800_v12, %v3801_v35 }
 0x25a   : > { %3241 = vmatprep.subr.mxu1 %v3240_v48  ;;  %3337 = vmatprep.subr.mxu0 %v6421_v52  ;;  %v3252_v63 = vand.u32 4294901760, %v3251_v27  ;;  %v2017_v54 = vadd.f32 %v2016_v59, %v1824_v8  ;;  %v6498_v58 = vand.u32 4294901760, %v2015_v15 }
 0x25b   : > { %2932 = vmatmul.mubr.f32.gmra.mxu1 %v6292_v13  ;;  %3023 = vmatmul.mubr.f32.gmra.mxu0 %v6268_v18  ;;  %v3796_v49 = vsub.f32 %v3794_v28, %v3795_v2  ;;  %v3803_v37 = vand.u32 4294901760, %v3802_v1 }
 0x25c   : > { %3097 = vmatprep.mubr.f32.mxu1 %v4581_v11  ;;  %3185 = vmatprep.mubr.f32.mxu0 %v4581_v11  ;;  %v6486_v46 = vand.u32 4294901760, %v2017_v54  ;;  %v3788_v60 = vsub.f32 %v2015_v15, %v6498_v58 }
 0x25d   : > { %v3797_v29 = vand.u32 4294901760, %v3796_v49 }
 0x25e   : > { %v3782_v62 = vsub.f32 %v2017_v54, %v6486_v46  ;;  %v3789_v42 = vand.u32 4294901760, %v3788_v60 }
 0x25f   : > { %3099 = vmatmul.mubr.f32.vlgmr.msra.gmra.mxu1 %v6257_v6  ;;  %3191 = vmatmul.mubr.f32.vlgmr.msra.gmra.mxu0 %v6304_v0 }
 0x260   : > { %3247 = vmatpush1.msra.mxu1 %v3246_v45  ;;  %3340 = vmatpush1.msra.mxu0 %v6442_v10  ;;  %v3783_v31 = vand.u32 4294901760, %v3782_v62 }
 0x261   : > { %3253 = vmatprep.subr.mxu1 %v3252_v63  ;;  %3343 = vmatprep.subr.mxu0 %v6447_v40 }
 0x262   : > { %3259 = vmatpush1.msra.mxu1 %v3258_v4  ;;  %3346 = vmatpush1.msra.mxu0 %v6450_v26  ;;  %v3784_v56 = vsub.f32 %v3782_v62, %v3783_v31 }
 0x263   : > { %3104 = vmatprep.mubr.f32.mxu1 %v4581_v11  ;;  %3196 = vmatprep.mubr.f32.mxu0 %v4581_v11 }
 0x264   : > { %3425 = vmatprep.subr.mxu1 %v6410_v55  ;;  %3514 = vmatprep.subr.mxu0 %v3238_v30  ;;  %v3785_v41 = vand.u32 4294901760, %v3784_v56 }
 0x265   : > { %3106 = vmatmul.mubr.f32.gmra.mxu1 %v6268_v18  ;;  %3202 = vmatmul.mubr.f32.gmra.mxu0 %v6315_v20 }
 0x266   : > { %3292 = vmatprep.mubr.f32.mxu1 %v4581_v11  ;;  %3379 = vmatprep.mubr.f32.mxu0 %v4581_v11 }
 0x269   : > { %3294 = vmatmul.mubr.f32.vlgmr.msra.gmra.mxu1 %v6257_v6  ;;  %3382 = vmatmul.mubr.f32.vlgmr.msra.gmra.mxu0 %v6266_v24 }
 0x26a   : > { %3427 = vmatpush1.msra.mxu1 %v6425_v44  ;;  %3518 = vmatpush1.msra.mxu0 %v3244_v38 }
 0x26b   : > { %3429 = vmatprep.subr.mxu1 %v6428_v21  ;;  %3522 = vmatprep.subr.mxu0 %v3250_v36 }
 0x26c   : > { %3431 = vmatpush1.msra.mxu1 %v6432_v47  ;;  %3526 = vmatpush1.msra.mxu0 %v3256_v39 }
 0x26d   : > { %3299 = vmatprep.mubr.f32.mxu1 %v4581_v11  ;;  %3387 = vmatprep.mubr.f32.mxu0 %v4581_v11 }
 0x26e   : > { %3603 = vmatprep.subr.mxu1 %v6410_v55  ;;  %3691 = vmatprep.subr.mxu0 %v6486_v46  ;;  %v3790_v55 = vsub.f32 %v3788_v60, %v3789_v42 }
 0x26f   : > { %3301 = vmatmul.mubr.f32.gmra.mxu1 %v6268_v18  ;;  %3390 = vmatmul.mubr.f32.gmra.mxu0 %v6278_v22 }
 0x270   : > { %3464 = vmatprep.mubr.f32.mxu1 %v4581_v11  ;;  %3559 = vmatprep.mubr.f32.mxu0 %v4581_v11  ;;  %v3791_v57 = vand.u32 4294901760, %v3790_v55 }
 0x273   : > { %3468 = vmatmul.mubr.f32.vlgmr.msra.gmra.mxu1 %v6275_v51  ;;  %3561 = vmatmul.mubr.f32.vlgmr.msra.gmra.mxu0 %v6257_v6 }
 0x274   : > { %3605 = vmatpush1.msra.mxu1 %v6425_v44  ;;  %3693 = vmatpush1.msra.mxu0 %v6498_v58 }
 0x275   : > { %3607 = vmatprep.subr.mxu1 %v6428_v21  ;;  %3695 = vmatprep.subr.mxu0 %v6501_v25 }
 0x276   : > { %3609 = vmatpush1.msra.mxu1 %v6432_v47  ;;  %3697 = vmatpush1.msra.mxu0 %v6505_v33 }
 0x277   : > { %3473 = vmatprep.mubr.f32.mxu1 %v4581_v11  ;;  %3566 = vmatprep.mubr.f32.mxu0 %v4581_v11 }
 0x278   : > { %3786 = vmatprep.subr.mxu1 %v3785_v41  ;;  %3882 = vmatprep.subr.mxu0 %v3782_v62 }
 0x279   : > { %3477 = vmatmul.mubr.f32.gmra.mxu1 %v6292_v13  ;;  %3568 = vmatmul.mubr.f32.gmra.mxu0 %v6268_v18 }
 0x27a   : > { %3642 = vmatprep.mubr.f32.mxu1 %v4581_v11  ;;  %3730 = vmatprep.mubr.f32.mxu0 %v4581_v11 }
 0x27d   : > { %3644 = vmatmul.mubr.f32.vlgmr.msra.gmra.mxu1 %v6257_v6  ;;  %3736 = vmatmul.mubr.f32.vlgmr.msra.gmra.mxu0 %v6304_v0 }
 0x27e   : > { %3792 = vmatpush1.msra.mxu1 %v3791_v57  ;;  %3885 = vmatpush1.msra.mxu0 %v3788_v60 }
 0x27f   : > { %3798 = vmatprep.subr.mxu1 %v3797_v29  ;;  %3888 = vmatprep.subr.mxu0 %v3794_v28 }
 0x280   : > { %3804 = vmatpush1.msra.mxu1 %v3803_v37  ;;  %3891 = vmatpush1.msra.mxu0 %v3800_v12 }
 0x281   : > { %3649 = vmatprep.mubr.f32.mxu1 %v4581_v11  ;;  %3741 = vmatprep.mubr.f32.mxu0 %v4581_v11 }
 0x282   : > { %3970 = vmatprep.subr.mxu1 %v6486_v46  ;;  %4059 = vmatprep.subr.mxu0 %v3783_v31 }
 0x283   : > { %3651 = vmatmul.mubr.f32.gmra.mxu1 %v6268_v18  ;;  %3747 = vmatmul.mubr.f32.gmra.mxu0 %v6315_v20 }
 0x284   : > { %3837 = vmatprep.mubr.f32.mxu1 %v4581_v11  ;;  %3924 = vmatprep.mubr.f32.mxu0 %v4581_v11 }
 0x287   : > { %3839 = vmatmul.mubr.f32.vlgmr.msra.gmra.mxu1 %v6257_v6  ;;  %3927 = vmatmul.mubr.f32.vlgmr.msra.gmra.mxu0 %v6266_v24 }
 0x288   : > { %3972 = vmatpush1.msra.mxu1 %v6498_v58  ;;  %4063 = vmatpush1.msra.mxu0 %v3789_v42 }
 0x289   : > { %3974 = vmatprep.subr.mxu1 %v6501_v25  ;;  %4067 = vmatprep.subr.mxu0 %v3795_v2 }
 0x28a   : > { %3976 = vmatpush1.msra.mxu1 %v6505_v33  ;;  %4071 = vmatpush1.msra.mxu0 %v3801_v35 }
 0x28b   : > { %3844 = vmatprep.mubr.f32.mxu1 %v4581_v11  ;;  %4148 = vmatprep.subr.mxu1 %v6486_v46 }
 0x28c   : > { %3846 = vmatmul.mubr.f32.gmra.mxu1 %v6268_v18  ;;  %3932 = vmatprep.mubr.f32.mxu0 %v4581_v11 }
 0x28d   : > { %4009 = vmatprep.mubr.f32.mxu1 %v4581_v11  ;;  %3935 = vmatmul.mubr.f32.gmra.mxu0 %v6278_v22 }
 0x28e   : > { %4104 = vmatprep.mubr.f32.mxu0 %v4581_v11 }
 0x290   : > { %4013 = vmatmul.mubr.f32.vlgmr.msra.gmra.mxu1 %v6275_v51 }
 0x291   : > { %4150 = vmatpush1.msra.mxu1 %v6498_v58  ;;  %4018 = vmatprep.mubr.f32.mxu1 %v4581_v11 }
 0x292   : > { %4152 = vmatprep.subr.mxu1 %v6501_v25  ;;  %4106 = vmatmul.mubr.f32.vlgmr.msra.gmra.mxu0 %v6257_v6 }
 0x293   : > { %4154 = vmatpush1.msra.mxu1 %v6505_v33  ;;  %4111 = vmatprep.mubr.f32.mxu0 %v4581_v11 }
 0x294   : > { %4022 = vmatmul.mubr.f32.gmra.mxu1 %v6292_v13 }
 0x295   : > { %4187 = vmatprep.mubr.f32.mxu1 %v4581_v11 }
 0x296   : > { %4113 = vmatmul.mubr.f32.gmra.mxu0 %v6268_v18 }
 0x298   : > { %4189 = vmatmul.mubr.f32.vlgmr.msra.gmra.mxu1 %v6257_v6 }
 0x299   : > { %4194 = vmatprep.mubr.f32.mxu1 %v4581_v11 }
 0x29c   : > { %4196 = vmatmul.mubr.f32.gmra.mxu1 %v6268_v18 }
 0x2e5   : > { %v2103_v24 = vpop.f32.mrf.mxu0 }
 0x2e7   : > { %v2105_v51 = vpop.f32.mrf.mxu0 }
 0x2e9   : > { %v2114_v22 = vpop.f32.mrf.mxu0 }
 0x2eb   : > { %v2116_v0 = vpop.f32.mrf.mxu0 }
 0x2ed   : > { %v2206_v20 = vpop.f32.mrf.mxu1  ;;  %v2294_v52 = vpop.f32.mrf.mxu0 }
 0x2ee   : > { %v2207_v10 = vadd.f32 %v2206_v20, %v2103_v24 }
 0x2ef   : > { %v2208_v44 = vpop.f32.mrf.mxu1  ;;  %v2296_v21 = vpop.f32.mrf.mxu0 }
 0x2f0   : > { %v2209_v6 = vadd.f32 %v2208_v44, %v2105_v51  ;;  %v2295_v9 = vadd.f32 %v2294_v52, %v2207_v10 }
 0x2f2   : > { %v2297_v43 = vadd.f32 %v2296_v21, %v2209_v6 }
 0x2f3   : > { %v2213_v47 = vpop.f32.mrf.mxu1  ;;  %v2302_v13 = vpop.f32.mrf.mxu0 }
 0x2f4   : > { %v2214_v18 = vadd.f32 %v2213_v47, %v2114_v22 }
 0x2f5   : > { %v2215_v30 = vpop.f32.mrf.mxu1  ;;  %v2304_v14 = vpop.f32.mrf.mxu0 }
 0x2f6   : > { %v2216_v39 = vadd.f32 %v2215_v30, %v2116_v0  ;;  %v2303_v16 = vadd.f32 %v2302_v13, %v2214_v18 }
 0x2f7   : > { %v2380_v40 = vpop.f32.mrf.mxu1  ;;  %v2473_v34 = vpop.f32.mrf.mxu0 }
 0x2f8   : > { %v2381_v38 = vadd.f32 %v2380_v40, %v2295_v9  ;;  %v2305_v45 = vadd.f32 %v2304_v14, %v2216_v39 }
 0x2f9   : > { %v2382_v26 = vpop.f32.mrf.mxu1  ;;  %v2475_v11 = vpop.f32.mrf.mxu0 }
 0x2fa   : > { %v2383_v48 = vadd.f32 %v2382_v26, %v2297_v43  ;;  %v2474_v27 = vadd.f32 %v2473_v34, %v2381_v38 }
 0x2fc   : > { %v2476_v63 = vadd.f32 %v2475_v11, %v2383_v48 }
 0x2fd   : > { %v2389_v61 = vpop.f32.mrf.mxu1  ;;  %v2480_v36 = vpop.f32.mrf.mxu0 }
 0x2fe   : > { %v2390_v59 = vadd.f32 %v2389_v61, %v2303_v16 }
 0x2ff   : > { %v2391_v17 = vpop.f32.mrf.mxu1  ;;  %v2482_v23 = vpop.f32.mrf.mxu0 }
 0x300   : > { %v2392_v19 = vadd.f32 %v2391_v17, %v2305_v45  ;;  %v2481_v3 = vadd.f32 %v2480_v36, %v2390_v59 }
 0x301   : > { %v2556_v7 = vpop.f32.mrf.mxu1  ;;  %v2647_v32 = vpop.f32.mrf.mxu0 }
 0x302   : > { %v2557_v8 = vadd.f32 %v2556_v7, %v2474_v27  ;;  %v2483_v5 = vadd.f32 %v2482_v23, %v2392_v19 }
 0x303   : > { %v2558_v4 = vpop.f32.mrf.mxu1  ;;  %v2649_v54 = vpop.f32.mrf.mxu0 }
 0x304   : > { %2568 = vst [vmem:[%s6566_s18] sm:$0xff] %v2557_v8  ;;  %v2559_v46 = vadd.f32 %v2558_v4, %v2476_v63 }
 0x306   : > { %2569 = vst [vmem:[%s6566_s18 + $0x8] sm:$0xff] %v2559_v46 }
 0x307   : > { %v2563_v50 = vpop.f32.mrf.mxu1  ;;  %v2658_v15 = vpop.f32.mrf.mxu0 }
 0x308   : > { %v2564_v53 = vadd.f32 %v2563_v50, %v2481_v3 }
 0x309   : > { %v2565_v62 = vpop.f32.mrf.mxu1  ;;  %v2660_v58 = vpop.f32.mrf.mxu0 }
 0x30a   : > { %2570 = vst [vmem:[%s6566_s18 + $0x10] sm:$0xff] %v2564_v53  ;;  %v2566_v25 = vadd.f32 %v2565_v62, %v2483_v5 }
 0x30b   : > { %v2750_v33 = vpop.f32.mrf.mxu1  ;;  %v2838_v31 = vpop.f32.mrf.mxu0 }
 0x30c   : > { %2571 = vst [vmem:[%s6566_s18 + $0x18] sm:$0xff] %v2566_v25  ;;  %v2751_v35 = vadd.f32 %v2750_v33, %v2647_v32 }
 0x30d   : > { %v2752_v60 = vpop.f32.mrf.mxu1  ;;  %v2840_v28 = vpop.f32.mrf.mxu0 }
 0x30e   : > { %v2753_v49 = vadd.f32 %v2752_v60, %v2649_v54  ;;  %v2839_v29 = vadd.f32 %v2838_v31, %v2751_v35 }
 0x310   : > { %v2841_v24 = vadd.f32 %v2840_v28, %v2753_v49 }
 0x311   : > { %v2757_v12 = vpop.f32.mrf.mxu1  ;;  %v2846_v56 = vpop.f32.mrf.mxu0 }
 0x312   : > { %v2758_v37 = vadd.f32 %v2757_v12, %v2658_v15 }
 0x313   : > { %v2759_v42 = vpop.f32.mrf.mxu1  ;;  %v2848_v2 = vpop.f32.mrf.mxu0 }
 0x314   : > { %v2760_v20 = vadd.f32 %v2759_v42, %v2660_v58  ;;  %v2847_v47 = vadd.f32 %v2846_v56, %v2758_v37 }
 0x315   : > { %v2924_v41 = vpop.f32.mrf.mxu1  ;;  %v3017_v55 = vpop.f32.mrf.mxu0 }
 0x316   : > { %v2925_v51 = vadd.f32 %v2924_v41, %v2839_v29  ;;  %v2849_v10 = vadd.f32 %v2848_v2, %v2760_v20 }
 0x317   : > { %v2926_v1 = vpop.f32.mrf.mxu1  ;;  %v3019_v57 = vpop.f32.mrf.mxu0 }
 0x318   : > { %v2927_v52 = vadd.f32 %v2926_v1, %v2841_v24  ;;  %v3018_v13 = vadd.f32 %v3017_v55, %v2925_v51 }
 0x31a   : > { %v3020_v34 = vadd.f32 %v3019_v57, %v2927_v52 }
 0x31b   : > { %v2933_v22 = vpop.f32.mrf.mxu1  ;;  %v3024_v0 = vpop.f32.mrf.mxu0 }
 0x31c   : > { %v2934_v40 = vadd.f32 %v2933_v22, %v2847_v47 }
 0x31d   : > { %v2935_v44 = vpop.f32.mrf.mxu1  ;;  %v3026_v21 = vpop.f32.mrf.mxu0 }
 0x31e   : > { %v2936_v9 = vadd.f32 %v2935_v44, %v2849_v10  ;;  %v3025_v43 = vadd.f32 %v3024_v0, %v2934_v40 }
 0x31f   : > { %v3100_v30 = vpop.f32.mrf.mxu1  ;;  %v3192_v14 = vpop.f32.mrf.mxu0 }
 0x320   : > { %v3101_v6 = vadd.f32 %v3100_v30, %v3018_v13  ;;  %v3027_v36 = vadd.f32 %v3026_v21, %v2936_v9 }
 0x321   : > { %v3102_v26 = vpop.f32.mrf.mxu1  ;;  %v3194_v11 = vpop.f32.mrf.mxu0 }
 0x322   : > { %4328 = vst [vmem:[%s6566_s18 + $0x20] sm:$0xff] %v3101_v6  ;;  %v3103_v18 = vadd.f32 %v3102_v26, %v3020_v34 }
 0x324   : > { %4329 = vst [vmem:[%s6566_s18 + $0x28] sm:$0xff] %v3103_v18 }
 0x325   : > { %v3107_v38 = vpop.f32.mrf.mxu1  ;;  %v3203_v61 = vpop.f32.mrf.mxu0 }
 0x326   : > { %v3108_v39 = vadd.f32 %v3107_v38, %v3025_v43 }
 0x327   : > { %v3109_v48 = vpop.f32.mrf.mxu1  ;;  %v3205_v17 = vpop.f32.mrf.mxu0 }
 0x328   : > { %4330 = vst [vmem:[%s6566_s18 + $0x30] sm:$0xff] %v3108_v39  ;;  %v3110_v23 = vadd.f32 %v3109_v48, %v3027_v36 }
 0x329   : > { %v3295_v16 = vpop.f32.mrf.mxu1  ;;  %v3383_v27 = vpop.f32.mrf.mxu0 }
 0x32a   : > { %4331 = vst [vmem:[%s6566_s18 + $0x38] sm:$0xff] %v3110_v23  ;;  %v3296_v4 = vadd.f32 %v3295_v16, %v3192_v14 }
 0x32b   : > { %v3297_v7 = vpop.f32.mrf.mxu1  ;;  %v3385_v32 = vpop.f32.mrf.mxu0 }
 0x32c   : > { %v3298_v46 = vadd.f32 %v3297_v7, %v3194_v11  ;;  %v3384_v15 = vadd.f32 %v3383_v27, %v3296_v4 }
 0x32e   : > { %v3386_v53 = vadd.f32 %v3385_v32, %v3298_v46 }
 0x32f   : > { %v3302_v45 = vpop.f32.mrf.mxu1  ;;  %v3391_v59 = vpop.f32.mrf.mxu0 }
 0x330   : > { %v3303_v5 = vadd.f32 %v3302_v45, %v3203_v61 }
 0x331   : > { %v3304_v63 = vpop.f32.mrf.mxu1  ;;  %v3393_v8 = vpop.f32.mrf.mxu0 }
 0x332   : > { %v3305_v33 = vadd.f32 %v3304_v63, %v3205_v17  ;;  %v3392_v12 = vadd.f32 %v3391_v59, %v3303_v5 }
 0x333   : > { %v3469_v54 = vpop.f32.mrf.mxu1  ;;  %v3562_v19 = vpop.f32.mrf.mxu0 }
 0x334   : > { %v3470_v62 = vadd.f32 %v3469_v54, %v3384_v15  ;;  %v3394_v35 = vadd.f32 %v3393_v8, %v3305_v33 }
 0x335   : > { %v3471_v3 = vpop.f32.mrf.mxu1  ;;  %v3564_v50 = vpop.f32.mrf.mxu0 }
 0x336   : > { %v3472_v31 = vadd.f32 %v3471_v3, %v3386_v53  ;;  %v3563_v56 = vadd.f32 %v3562_v19, %v3470_v62 }
 0x338   : > { %v3565_v55 = vadd.f32 %v3564_v50, %v3472_v31 }
 0x339   : > { %v3478_v58 = vpop.f32.mrf.mxu1  ;;  %v3569_v25 = vpop.f32.mrf.mxu0 }
 0x33a   : > { %v3479_v41 = vadd.f32 %v3478_v58, %v3392_v12 }
 0x33b   : > { %v3480_v60 = vpop.f32.mrf.mxu1  ;;  %v3571_v28 = vpop.f32.mrf.mxu0 }
 0x33c   : > { %v3481_v29 = vadd.f32 %v3480_v60, %v3394_v35  ;;  %v3570_v24 = vadd.f32 %v3569_v25, %v3479_v41 }
 0x33d   : > { %v3645_v42 = vpop.f32.mrf.mxu1  ;;  %v3737_v2 = vpop.f32.mrf.mxu0 }
 0x33e   : > { %v3646_v49 = vadd.f32 %v3645_v42, %v3563_v56  ;;  %v3572_v0 = vadd.f32 %v3571_v28, %v3481_v29 }
 0x33f   : > { %v3647_v1 = vpop.f32.mrf.mxu1  ;;  %v3739_v57 = vpop.f32.mrf.mxu0 }
 0x340   : > { %4332 = vst [vmem:[%s6566_s18 + $0x40] sm:$0xff] %v3646_v49  ;;  %v3648_v37 = vadd.f32 %v3647_v1, %v3565_v55 }
 0x342   : > { %4333 = vst [vmem:[%s6566_s18 + $0x48] sm:$0xff] %v3648_v37 }
 0x343   : > { %v3652_v51 = vpop.f32.mrf.mxu1  ;;  %v3748_v22 = vpop.f32.mrf.mxu0 }
 0x344   : > { %v3653_v20 = vadd.f32 %v3652_v51, %v3570_v24 }
 0x345   : > { %v3654_v52 = vpop.f32.mrf.mxu1  ;;  %v3750_v44 = vpop.f32.mrf.mxu0 }
 0x346   : > { %4334 = vst [vmem:[%s6566_s18 + $0x50] sm:$0xff] %v3653_v20  ;;  %v3655_v21 = vadd.f32 %v3654_v52, %v3572_v0 }
 0x347   : > { %v3840_v47 = vpop.f32.mrf.mxu1  ;;  %v3928_v13 = vpop.f32.mrf.mxu0 }
 0x348   : > { %4335 = vst [vmem:[%s6566_s18 + $0x58] sm:$0xff] %v3655_v21  ;;  %v3841_v40 = vadd.f32 %v3840_v47, %v3737_v2 }
 0x349   : > { %v3842_v30 = vpop.f32.mrf.mxu1  ;;  %v3930_v14 = vpop.f32.mrf.mxu0 }
 0x34a   : > { %v3843_v26 = vadd.f32 %v3842_v30, %v3739_v57  ;;  %v3929_v43 = vadd.f32 %v3928_v13, %v3841_v40 }
 0x34c   : > { %v3847_v10 = vpop.f32.mrf.mxu1  ;;  %v3931_v39 = vadd.f32 %v3930_v14, %v3843_v26 }
 0x34d   : > { %v3936_v34 = vpop.f32.mrf.mxu0  ;;  %v3848_v18 = vadd.f32 %v3847_v10, %v3748_v22 }
 0x34e   : > { %v3849_v6 = vpop.f32.mrf.mxu1 }
 0x34f   : > { %v3938_v11 = vpop.f32.mrf.mxu0  ;;  %v3850_v36 = vadd.f32 %v3849_v6, %v3750_v44  ;;  %v3937_v16 = vadd.f32 %v3936_v34, %v3848_v18 }
 0x350   : > { %v4014_v9 = vpop.f32.mrf.mxu1 }
 0x351   : > { %v4015_v48 = vadd.f32 %v4014_v9, %v3929_v43  ;;  %v3939_v45 = vadd.f32 %v3938_v11, %v3850_v36 }
 0x352   : > { %v4016_v38 = vpop.f32.mrf.mxu1  ;;  %v4107_v61 = vpop.f32.mrf.mxu0 }
 0x353   : > { %v4017_v27 = vadd.f32 %v4016_v38, %v3931_v39  ;;  %v4108_v63 = vadd.f32 %v4107_v61, %v4015_v48 }
 0x354   : > { %v4023_v17 = vpop.f32.mrf.mxu1  ;;  %v4109_v23 = vpop.f32.mrf.mxu0 }
 0x355   : > { %v4024_v59 = vadd.f32 %v4023_v17, %v3937_v16  ;;  %v4110_v54 = vadd.f32 %v4109_v23, %v4017_v27 }
 0x356   : > { %v4025_v7 = vpop.f32.mrf.mxu1  ;;  %v4114_v32 = vpop.f32.mrf.mxu0 }
 0x357   : > { %v4026_v4 = vadd.f32 %v4025_v7, %v3939_v45  ;;  %v4115_v50 = vadd.f32 %v4114_v32, %v4024_v59 }
 0x358   : > { %v4190_v8 = vpop.f32.mrf.mxu1  ;;  %v4116_v3 = vpop.f32.mrf.mxu0 }
 0x359   : > { %v4191_v19 = vadd.f32 %v4190_v8, %v4108_v63  ;;  %v4117_v53 = vadd.f32 %v4116_v3, %v4026_v4 }
 0x35a   : > { %v4192_v46 = vpop.f32.mrf.mxu1 }
 0x35b   : > { %4336 = vst [vmem:[%s6566_s18 + $0x60] sm:$0xff] %v4191_v19  ;;  %v4193_v15 = vadd.f32 %v4192_v46, %v4110_v54 }
 0x35c   : > { %v4197_v5 = vpop.f32.mrf.mxu1 }
 0x35d   : > { %4337 = vst [vmem:[%s6566_s18 + $0x68] sm:$0xff] %v4193_v15  ;;  %v4198_v62 = vadd.f32 %v4197_v5, %v4115_v50 }
 0x35e   : > { %v4199_v58 = vpop.f32.mrf.mxu1 }
 0x35f   : > { %4338 = vst [vmem:[%s6566_s18 + $0x70] sm:$0xff] %v4198_v62  ;;  %v4200_v25 = vadd.f32 %v4199_v58, %v4117_v53 }
 0x361   : > { %4339 = vst [vmem:[%s6566_s18 + $0x78] sm:$0xff] %v4200_v25 }
 0x362   : > { %4517 = shalt.err (!%p4514_p3)
}
 0x363   : > { %s4518_s22 = scalar_lea.hbm %s6587_s4, 2048  ;;  %s4522_s30 = scalar_lea.hbm %s6637_s3, 4096 }
 0x364   : > { %p4519_p11 = scmp.ne.s32.totalorder %s6587_s4, %s4518_s22  ;;  %p4523_p4 = scmp.lt.s32.totalorder %s6587_s4, %s6637_s3 }
 0x365   : > { %p4524_p6 = scmp.lt.s32.totalorder %s4522_s30, %s4518_s22 }
 0x366   : > { %p4520_p9 = pnand %p4519_p11, %p7328_p2 }
 0x367   : > { %p4525_p8 = por %p4524_p6, %p4523_p4 }
 0x368   : > { %p4521_p1 = pneg %p4520_p9 }
 0x36a   : > { %p4526_p10 = pnand %p4525_p8, %p4521_p1 }
 0x36c   : > { %4529 = shalt.err (!%p4526_p10)
}
 0x36d   : > { %s4583_s5 = smov 256   ;;  %s4584_s18 = smov 16  }
 0x36e   : > { %4360 = dma.vmem_to_hbm [thread:$0]  (%p7328_p2), %s6589_s27, 2048, %s6587_s4, %s4208_s16, %s4583_s5, %s4583_s5, %s4584_s18  }
 0x36f PF: > { %s4237_s20 = sand.u32 1, %s4560_s12   ;;  %p7329_p7 = scmp.ne.s32.totalorder %s6897_s19, 0 }
 0x370   : > { %p7330_p12 = scmp.ge.s32.totalorder %s4572_s15, 2  ;;  %s4238_s28 = scalar_lea.sflag [#allocation4], %s4237_s20 }
 0x372   : > { %p4374_p13 = pnand %p7330_p12, %p7329_p7 }
 0x374   : > { %p4375_p0 = pneg %p4374_p13 }
 0x376   : > { %4555 = dma.done.wait (%p4375_p0), %s4238_s28, 2048  }
 0x377   : > { %4557 = vsyncadd (%p4375_p0), %s4238_s28, 4294965248  ;;  %p17_p5 = scmp.ge.s32.totalorder %s4680_s9, 4   ;;  %s7331_s12 = smov %s4564_s13 }
 0x378   : > { %s7332_s13 = smov %s4568_s14  ;;  %s7333_s14 = smov %s4689_s17 }
 0x379   : > { %s7334_s15 = smov %s4680_s9  ;;  %19 = sbr.rel (!%p17_p5) target bundleno = 6 (0x6), region = 88 }
 0x37e   :  { %4243 = vsyncpa [#allocation3], 1 }
 0x37f   :  { %4245 = vsyncpa [#allocation3 + $0x1], 1 }
 0x380   :  { %4246 = vsyncpa [#allocation6], 1 }
 0x381   :  { %4247 = vsyncpa [#allocation4], 1 }
 0x382   :  { %4249 = vsyncpa [#allocation4 + $0x1], 1 }

</bundles_post_ra>
